<compile_context>
chip_gen: v7x
topology: tpu7x:2x2x1
jax: 0.10.0
libtpu: 0.0.40
codegen_flags: <defaults>
</compile_context>

<pallas_src>
import jax
import jax.numpy as jnp
from jax import lax
from jax.experimental import pallas as pl
from jax.experimental.pallas import tpu as pltpu


def chan_reduct_kernel(x_ref, wcat_ref, bcat_ref, w2_ref, b2_ref, w3_ref, b3_ref,
                       o_ref, pad_ref, col_ref, br_ref):
    Hp, Wp, Cm = pad_ref.shape          # spatially padded h1 buffer
    H, W = Hp - 2, Wp - 2
    HW = H * W
    Cop = br_ref.shape[1]               # (lane-padded) output channels

    x = x_ref[0]                        # (HW, Cp), compute dtype

    # ---- fused (bottleneck 1x1 | branch 1x1) conv + folded BN: one MXU pass over x
    h_cat = jnp.dot(x, wcat_ref[...], preferred_element_type=jnp.float32)
    h_cat = h_cat + bcat_ref[...]
    br_ref[...] = h_cat[:, Cm:Cm + Cop]            # branch result parked in VMEM (f32)
    h1 = jnp.maximum(h_cat[:, :Cm], 0.0)           # bottleneck mid + ReLU (f32)

    # ---- spatially padded copy of h1 for the 3x3 conv (padding=1)
    # Zero only the 1-pixel halo; the interior is fully overwritten every step.
    zdt = pad_ref.dtype
    pad_ref[0:1, :, :] = jnp.zeros((1, Wp, Cm), zdt)
    pad_ref[Hp - 1:Hp, :, :] = jnp.zeros((1, Wp, Cm), zdt)
    pad_ref[:, 0:1, :] = jnp.zeros((Hp, 1, Cm), zdt)
    pad_ref[:, Wp - 1:Wp, :] = jnp.zeros((Hp, 1, Cm), zdt)
    pad_ref[1:H + 1, 1:W + 1, :] = h1.reshape(H, W, Cm).astype(zdt)

    # ---- im2col: 9 shifted windows -> (HW, 9*Cm), then ONE matmul for the 3x3 conv
    for t in range(9):
        dy, dx = t // 3, t % 3
        col_ref[:, t * Cm:(t + 1) * Cm] = (
            pad_ref[dy:dy + H, dx:dx + W, :].reshape(HW, Cm))
    h2 = jnp.dot(col_ref[...].astype(w2_ref.dtype), w2_ref[...],
                 preferred_element_type=jnp.float32)
    h2 = jnp.maximum(h2 + b2_ref[...], 0.0)

    # ---- last 1x1 conv + folded BN, add branch, final ReLU (lane-dense store)
    h3 = jnp.dot(h2.astype(w3_ref.dtype), w3_ref[...],
                 preferred_element_type=jnp.float32) + b3_ref[...]
    o_ref[0] = jnp.maximum(h3 + br_ref[...], 0.0).astype(o_ref.dtype)


def _round_up(x, m):
    return (x + m - 1) // m * m


def chan_reduct(x_nhwc, w1, b1, w2, b2, w3, b3, wb, bb, *,
                compute_dtype=jnp.float32, lane=128):
    """x_nhwc: (N,H,W,Cin); w1:(Cin,Cmid) b1:(1,Cmid); w2:(3,3,Cmid,Cmid) HWIO
    b2:(1,Cmid); w3:(Cmid,Cout) b3:(1,Cout); wb:(Cin,Cout) bb:(1,Cout)."""
    N, H, W, Cin = x_nhwc.shape
    Cmid = w1.shape[1]
    Cout = w3.shape[1]
    HW = H * W

    # Lane-densify: zero-pad all channel dims up to a multiple of 128.
    Cp = _round_up(Cin, lane)
    Cm = _round_up(Cmid, lane)
    Cop = _round_up(Cout, lane)

    xp = jnp.pad(x_nhwc, ((0, 0), (0, 0), (0, 0), (0, Cp - Cin)))
    xp = xp.reshape(N, HW, Cp).astype(compute_dtype)

    def pad2(a, rows, cols):
        return jnp.pad(a, ((0, rows - a.shape[0]), (0, cols - a.shape[1])))

    # Fuse the first bottleneck 1x1 and the branch 1x1 into one weight matrix.
    wcat = jnp.concatenate([pad2(w1, Cp, Cm), pad2(wb, Cp, Cop)], axis=1)
    bcat = jnp.concatenate([pad2(b1, 1, Cm), pad2(bb, 1, Cop)], axis=1)

    # 3x3 conv weights (HWIO) -> im2col layout (9*Cm, Cm), tap-major.
    w2p = jnp.pad(w2, ((0, 0), (0, 0), (0, Cm - Cmid), (0, Cm - Cmid)))
    w2p = w2p.reshape(9 * Cm, Cm)
    b2p = pad2(b2, 1, Cm)

    w3p = pad2(w3, Cm, Cop)
    b3p = pad2(b3, 1, Cop)

    # Matmul operands in compute_dtype (bf16 recommended on v6e/v7x); biases f32.
    wcat = wcat.astype(compute_dtype)
    w2p = w2p.astype(compute_dtype)
    w3p = w3p.astype(compute_dtype)
    bcat = bcat.astype(jnp.float32)
    b2p = b2p.astype(jnp.float32)
    b3p = b3p.astype(jnp.float32)

    def full_spec(a):
        return pl.BlockSpec(a.shape, lambda n, nd=a.ndim: (0,) * nd)

    out = pl.pallas_call(
        chan_reduct_kernel,
        out_shape=jax.ShapeDtypeStruct((N, HW, Cop), x_nhwc.dtype),
        grid_spec=pltpu.PrefetchScalarGridSpec(
            num_scalar_prefetch=0,
            grid=(N,),
            in_specs=[
                pl.BlockSpec((1, HW, Cp), lambda n: (n, 0, 0)),
                full_spec(wcat), full_spec(bcat),
                full_spec(w2p), full_spec(b2p),
                full_spec(w3p), full_spec(b3p),
            ],
            out_specs=pl.BlockSpec((1, HW, Cop), lambda n: (n, 0, 0)),
            scratch_shapes=[
                pltpu.VMEM((H + 2, W + 2, Cm), jnp.float32),   # padded h1
                pltpu.VMEM((HW, 9 * Cm), jnp.float32),         # im2col buffer
                pltpu.VMEM((HW, Cop), jnp.float32),            # branch result
            ],
        ),
        compiler_params=pltpu.CompilerParams(
            dimension_semantics=("parallel",)),
    )(xp, wcat, bcat, w2p, b2p, w3p, b3p)

    return out.reshape(N, H, W, Cop)[..., :Cout]


# ---------------------------------------------------------------------------
# Parameter construction (deterministic, kaiming-like) + BN folding
# ---------------------------------------------------------------------------
def make_bn(key, c):
    k1, k2, k3, k4 = jax.random.split(key, 4)
    gamma = jax.random.uniform(k1, (c,), jnp.float32, 0.5, 1.5)
    beta = 0.1 * jax.random.normal(k2, (c,), jnp.float32)
    mean = 0.1 * jax.random.normal(k3, (c,), jnp.float32)
    var = jax.random.uniform(k4, (c,), jnp.float32, 0.5, 1.5)
    return gamma, beta, mean, var


def fold_bn(w_io, bn, eps=1e-5):
    # w_io: (Cin, Cout) or (3, 3, Cin, Cout); BN applied per output channel.
    gamma, beta, mean, var = bn
    scale = gamma / jnp.sqrt(var + eps)
    shift = beta - mean * scale
    w_folded = w_io * scale                     # broadcasts over output-channel axis
    return w_folded.astype(jnp.float32), shift.reshape(1, -1).astype(jnp.float32)


def build_params(key, cin, cmid, cout):
    ks = jax.random.split(key, 8)

    def kaiming(k, shape, fan_in):
        return jnp.sqrt(2.0 / fan_in) * jax.random.normal(k, shape, jnp.float32)

    w1 = kaiming(ks[0], (cin, cmid), cin)               # 1x1 conv (Cin, Cmid)
    w2 = kaiming(ks[1], (3, 3, cmid, cmid), 9 * cmid)   # 3x3 conv (HWIO)
    w3 = kaiming(ks[2], (cmid, cout), cmid)             # 1x1 conv (Cmid, Cout)
    wb = kaiming(ks[3], (cin, cout), cin)               # branch 1x1 (Cin, Cout)

    w1f, b1 = fold_bn(w1, make_bn(ks[4], cmid))
    w2f, b2 = fold_bn(w2, make_bn(ks[5], cmid))
    w3f, b3 = fold_bn(w3, make_bn(ks[6], cout))
    wbf, bb = fold_bn(wb, make_bn(ks[7], cout))
    return w1f, b1, w2f, b2, w3f, b3, wbf, bb


# ---------------------------------------------------------------------------
# Pure-JAX reference (NHWC) for verification
# ---------------------------------------------------------------------------
def reference(x, w1, b1, w2, b2, w3, b3, wb, bb):
    dn = ("NHWC", "HWIO", "NHWC")

    def conv(inp, w):
        if w.ndim == 2:
            w = w.reshape(1, 1, *w.shape)
        return lax.conv_general_dilated(inp, w, (1, 1), "SAME",
                                        dimension_numbers=dn)

    h = jnp.maximum(conv(x, w1) + b1.reshape(1, 1, 1, -1), 0.0)
    h = jnp.maximum(conv(h, w2) + b2.reshape(1, 1, 1, -1), 0.0)
    h = conv(h, w3) + b3.reshape(1, 1, 1, -1)
    br = conv(x, wb) + bb.reshape(1, 1, 1, -1)
    return jnp.maximum(br + h, 0.0)


if __name__ == "__main__":
    N, H, W = 2, 16, 16
    Cin, Cmid, Cout = 16, 8, 8

    key = jax.random.PRNGKey(0)
    kx, kp = jax.random.split(key)
    x = jax.random.normal(kx, (N, H, W, Cin), jnp.float32)   # NHWC input

    params = build_params(kp, Cin, Cmid, Cout)
    ref = reference(x, *params)

    # f32 matmul operands (default; safest on v5e).
    out = jax.block_until_ready(chan_reduct(x, *params))
    assert out.shape == (N, H, W, Cout)
    assert jnp.allclose(out, ref, rtol=1e-3, atol=1e-3), (
        float(jnp.max(jnp.abs(out - ref))))

    # bf16 matmul operands (recommended on v6e/v7x); f32 accumulation and
    # element-wise math, so only matmul-input rounding -> loose tolerance.
    out_bf16 = jax.block_until_ready(
        chan_reduct(x, *params, compute_dtype=jnp.bfloat16))
    assert jnp.allclose(out_bf16, ref, rtol=1e-1, atol=2e-1), (
        float(jnp.max(jnp.abs(out_bf16 - ref))))

    print("KERNEL_OK")
</pallas_src>

<mosaic_0001>
module attributes {stable_mosaic.version = 11 : i64} {
  func.func @chan_reduct_kernel(%arg0: i32, %arg1: memref<1x256x128xf32, #tpu.memory_space<vmem>>, %arg2: memref<128x256xf32, #tpu.memory_space<vmem>>, %arg3: memref<1x256xf32, #tpu.memory_space<vmem>>, %arg4: memref<1152x128xf32, #tpu.memory_space<vmem>>, %arg5: memref<1x128xf32, #tpu.memory_space<vmem>>, %arg6: memref<128x128xf32, #tpu.memory_space<vmem>>, %arg7: memref<1x128xf32, #tpu.memory_space<vmem>>, %arg8: memref<1x256x128xf32, #tpu.memory_space<vmem>>, %arg9: memref<18x18x128xf32, #tpu.memory_space<vmem>>, %arg10: memref<256x1152xf32, #tpu.memory_space<vmem>>, %arg11: memref<256x128xf32, #tpu.memory_space<vmem>>) attributes {dimension_semantics = [#tpu.dimension_semantics<parallel>], iteration_bounds = array<i64: 2>, scalar_prefetch = 0 : i64, scratch_operands = 3 : i64, tpu.core_type = #tpu.core_type<tc>, window_params = [{transform_indices = @transform_0, window_bounds = array<i64: 1, 256, 128>}, {pipeline_mode = #tpu.pipeline_mode<synchronous>, transform_indices = @transform_1, window_bounds = array<i64: 128, 256>}, {pipeline_mode = #tpu.pipeline_mode<synchronous>, transform_indices = @transform_2, window_bounds = array<i64: 1, 256>}, {pipeline_mode = #tpu.pipeline_mode<synchronous>, transform_indices = @transform_3, window_bounds = array<i64: 1152, 128>}, {pipeline_mode = #tpu.pipeline_mode<synchronous>, transform_indices = @transform_4, window_bounds = array<i64: 1, 128>}, {pipeline_mode = #tpu.pipeline_mode<synchronous>, transform_indices = @transform_5, window_bounds = array<i64: 128, 128>}, {pipeline_mode = #tpu.pipeline_mode<synchronous>, transform_indices = @transform_6, window_bounds = array<i64: 1, 128>}, {transform_indices = @transform_7, window_bounds = array<i64: 1, 256, 128>}]} {
    %c0 = arith.constant 0 : index
    %c0_0 = arith.constant 0 : index
    %c0_1 = arith.constant 0 : index
    %0 = vector.load %arg1[%c0, %c0_0, %c0_1] : memref<1x256x128xf32, #tpu.memory_space<vmem>>, vector<1x256x128xf32>
    %1 = vector.shape_cast %0 : vector<1x256x128xf32> to vector<256x128xf32>
    %c0_2 = arith.constant 0 : index
    %c0_3 = arith.constant 0 : index
    %2 = vector.load %arg2[%c0_2, %c0_3] : memref<128x256xf32, #tpu.memory_space<vmem>>, vector<128x256xf32>
    %cst = arith.constant dense<0.000000e+00> : vector<256x256xf32>
    %3 = tpu.matmul %1, %2, %cst {dimension_numbers = #tpu.dot_dimension_numbers<[1], [0], [0], [1], [0, 0, 1, 1], [], []>} : vector<256x128xf32>, vector<128x256xf32>, vector<256x256xf32> -> vector<256x256xf32>
    %c0_4 = arith.constant 0 : index
    %c0_5 = arith.constant 0 : index
    %4 = vector.load %arg3[%c0_4, %c0_5] : memref<1x256xf32, #tpu.memory_space<vmem>>, vector<1x256xf32>
    %5 = vector.broadcast %4 : vector<1x256xf32> to vector<256x256xf32>
    %6 = arith.addf %3, %5 : vector<256x256xf32>
    %7 = vector.extract_strided_slice %6 {offsets = [0, 128], sizes = [256, 128], strides = [1, 1]} : vector<256x256xf32> to vector<256x128xf32>
    %c0_6 = arith.constant 0 : index
    %c0_7 = arith.constant 0 : index
    %8 = vector.load %arg11[%c0_6, %c0_7] : memref<256x128xf32, #tpu.memory_space<vmem>>, vector<256x128xf32>
    tpu.vector_store %arg11[%c0_6, %c0_7], %7 {strides = array<i32>} : memref<256x128xf32, #tpu.memory_space<vmem>>, vector<256x128xf32>,
    %9 = vector.extract_strided_slice %6 {offsets = [0, 0], sizes = [256, 128], strides = [1, 1]} : vector<256x256xf32> to vector<256x128xf32>
    %cst_8 = arith.constant 0.000000e+00 : f32
    %10 = vector.broadcast %cst_8 : f32 to vector<256x128xf32>
    %11 = arith.maximumf %9, %10 : vector<256x128xf32>
    %cst_9 = arith.constant 0.000000e+00 : f32
    %12 = vector.broadcast %cst_9 : f32 to vector<1x18x128xf32>
    %c0_10 = arith.constant 0 : index
    %c0_11 = arith.constant 0 : index
    %c0_12 = arith.constant 0 : index
    %13 = vector.load %arg9[%c0_10, %c0_11, %c0_12] : memref<18x18x128xf32, #tpu.memory_space<vmem>>, vector<1x18x128xf32>
    tpu.vector_store %arg9[%c0_10, %c0_11, %c0_12], %12 {strides = array<i32>} : memref<18x18x128xf32, #tpu.memory_space<vmem>>, vector<1x18x128xf32>,
    %cst_13 = arith.constant 0.000000e+00 : f32
    %14 = vector.broadcast %cst_13 : f32 to vector<1x18x128xf32>
    %c17 = arith.constant 17 : index
    %c0_14 = arith.constant 0 : index
    %c0_15 = arith.constant 0 : index
    %15 = vector.load %arg9[%c17, %c0_14, %c0_15] : memref<18x18x128xf32, #tpu.memory_space<vmem>>, vector<1x18x128xf32>
    tpu.vector_store %arg9[%c17, %c0_14, %c0_15], %14 {strides = array<i32>} : memref<18x18x128xf32, #tpu.memory_space<vmem>>, vector<1x18x128xf32>,
    %cst_16 = arith.constant 0.000000e+00 : f32
    %16 = vector.broadcast %cst_16 : f32 to vector<18x1x128xf32>
    %c0_17 = arith.constant 0 : index
    %c0_18 = arith.constant 0 : index
    %c0_19 = arith.constant 0 : index
    %17 = vector.load %arg9[%c0_17, %c0_18, %c0_19] : memref<18x18x128xf32, #tpu.memory_space<vmem>>, vector<18x1x128xf32>
    tpu.vector_store %arg9[%c0_17, %c0_18, %c0_19], %16 {strides = array<i32>} : memref<18x18x128xf32, #tpu.memory_space<vmem>>, vector<18x1x128xf32>,
    %cst_20 = arith.constant 0.000000e+00 : f32
    %18 = vector.broadcast %cst_20 : f32 to vector<18x1x128xf32>
    %c0_21 = arith.constant 0 : index
    %c17_22 = arith.constant 17 : index
    %c0_23 = arith.constant 0 : index
    %19 = vector.load %arg9[%c0_21, %c17_22, %c0_23] : memref<18x18x128xf32, #tpu.memory_space<vmem>>, vector<18x1x128xf32>
    tpu.vector_store %arg9[%c0_21, %c17_22, %c0_23], %18 {strides = array<i32>} : memref<18x18x128xf32, #tpu.memory_space<vmem>>, vector<18x1x128xf32>,
    %20 = vector.shape_cast %11 : vector<256x128xf32> to vector<16x16x128xf32>
    %c1 = arith.constant 1 : index
    %c1_24 = arith.constant 1 : index
    %c0_25 = arith.constant 0 : index
    %21 = vector.load %arg9[%c1, %c1_24, %c0_25] : memref<18x18x128xf32, #tpu.memory_space<vmem>>, vector<16x16x128xf32>
    tpu.vector_store %arg9[%c1, %c1_24, %c0_25], %20 {strides = array<i32>} : memref<18x18x128xf32, #tpu.memory_space<vmem>>, vector<16x16x128xf32>,
    %c0_26 = arith.constant 0 : index
    %c0_27 = arith.constant 0 : index
    %c0_28 = arith.constant 0 : index
    %22 = vector.load %arg9[%c0_26, %c0_27, %c0_28] : memref<18x18x128xf32, #tpu.memory_space<vmem>>, vector<16x16x128xf32>
    %23 = vector.shape_cast %22 : vector<16x16x128xf32> to vector<256x128xf32>
    %c0_29 = arith.constant 0 : index
    %c0_30 = arith.constant 0 : index
    %24 = vector.load %arg10[%c0_29, %c0_30] : memref<256x1152xf32, #tpu.memory_space<vmem>>, vector<256x128xf32>
    tpu.vector_store %arg10[%c0_29, %c0_30], %23 {strides = array<i32>} : memref<256x1152xf32, #tpu.memory_space<vmem>>, vector<256x128xf32>,
    %c0_31 = arith.constant 0 : index
    %c1_32 = arith.constant 1 : index
    %c0_33 = arith.constant 0 : index
    %25 = vector.load %arg9[%c0_31, %c1_32, %c0_33] : memref<18x18x128xf32, #tpu.memory_space<vmem>>, vector<16x16x128xf32>
    %26 = vector.shape_cast %25 : vector<16x16x128xf32> to vector<256x128xf32>
    %c0_34 = arith.constant 0 : index
    %c128 = arith.constant 128 : index
    %27 = vector.load %arg10[%c0_34, %c128] : memref<256x1152xf32, #tpu.memory_space<vmem>>, vector<256x128xf32>
    tpu.vector_store %arg10[%c0_34, %c128], %26 {strides = array<i32>} : memref<256x1152xf32, #tpu.memory_space<vmem>>, vector<256x128xf32>,
    %c0_35 = arith.constant 0 : index
    %c2 = arith.constant 2 : index
    %c0_36 = arith.constant 0 : index
    %28 = vector.load %arg9[%c0_35, %c2, %c0_36] : memref<18x18x128xf32, #tpu.memory_space<vmem>>, vector<16x16x128xf32>
    %29 = vector.shape_cast %28 : vector<16x16x128xf32> to vector<256x128xf32>
    %c0_37 = arith.constant 0 : index
    %c256 = arith.constant 256 : index
    %30 = vector.load %arg10[%c0_37, %c256] : memref<256x1152xf32, #tpu.memory_space<vmem>>, vector<256x128xf32>
    tpu.vector_store %arg10[%c0_37, %c256], %29 {strides = array<i32>} : memref<256x1152xf32, #tpu.memory_space<vmem>>, vector<256x128xf32>,
    %c1_38 = arith.constant 1 : index
    %c0_39 = arith.constant 0 : index
    %c0_40 = arith.constant 0 : index
    %31 = vector.load %arg9[%c1_38, %c0_39, %c0_40] : memref<18x18x128xf32, #tpu.memory_space<vmem>>, vector<16x16x128xf32>
    %32 = vector.shape_cast %31 : vector<16x16x128xf32> to vector<256x128xf32>
    %c0_41 = arith.constant 0 : index
    %c384 = arith.constant 384 : index
    %33 = vector.load %arg10[%c0_41, %c384] : memref<256x1152xf32, #tpu.memory_space<vmem>>, vector<256x128xf32>
    tpu.vector_store %arg10[%c0_41, %c384], %32 {strides = array<i32>} : memref<256x1152xf32, #tpu.memory_space<vmem>>, vector<256x128xf32>,
    %c1_42 = arith.constant 1 : index
    %c1_43 = arith.constant 1 : index
    %c0_44 = arith.constant 0 : index
    %34 = vector.load %arg9[%c1_42, %c1_43, %c0_44] : memref<18x18x128xf32, #tpu.memory_space<vmem>>, vector<16x16x128xf32>
    %35 = vector.shape_cast %34 : vector<16x16x128xf32> to vector<256x128xf32>
    %c0_45 = arith.constant 0 : index
    %c512 = arith.constant 512 : index
    %36 = vector.load %arg10[%c0_45, %c512] : memref<256x1152xf32, #tpu.memory_space<vmem>>, vector<256x128xf32>
    tpu.vector_store %arg10[%c0_45, %c512], %35 {strides = array<i32>} : memref<256x1152xf32, #tpu.memory_space<vmem>>, vector<256x128xf32>,
    %c1_46 = arith.constant 1 : index
    %c2_47 = arith.constant 2 : index
    %c0_48 = arith.constant 0 : index
    %37 = vector.load %arg9[%c1_46, %c2_47, %c0_48] : memref<18x18x128xf32, #tpu.memory_space<vmem>>, vector<16x16x128xf32>
    %38 = vector.shape_cast %37 : vector<16x16x128xf32> to vector<256x128xf32>
    %c0_49 = arith.constant 0 : index
    %c640 = arith.constant 640 : index
    %39 = vector.load %arg10[%c0_49, %c640] : memref<256x1152xf32, #tpu.memory_space<vmem>>, vector<256x128xf32>
    tpu.vector_store %arg10[%c0_49, %c640], %38 {strides = array<i32>} : memref<256x1152xf32, #tpu.memory_space<vmem>>, vector<256x128xf32>,
    %c2_50 = arith.constant 2 : index
    %c0_51 = arith.constant 0 : index
    %c0_52 = arith.constant 0 : index
    %40 = vector.load %arg9[%c2_50, %c0_51, %c0_52] : memref<18x18x128xf32, #tpu.memory_space<vmem>>, vector<16x16x128xf32>
    %41 = vector.shape_cast %40 : vector<16x16x128xf32> to vector<256x128xf32>
    %c0_53 = arith.constant 0 : index
    %c768 = arith.constant 768 : index
    %42 = vector.load %arg10[%c0_53, %c768] : memref<256x1152xf32, #tpu.memory_space<vmem>>, vector<256x128xf32>
    tpu.vector_store %arg10[%c0_53, %c768], %41 {strides = array<i32>} : memref<256x1152xf32, #tpu.memory_space<vmem>>, vector<256x128xf32>,
    %c2_54 = arith.constant 2 : index
    %c1_55 = arith.constant 1 : index
    %c0_56 = arith.constant 0 : index
    %43 = vector.load %arg9[%c2_54, %c1_55, %c0_56] : memref<18x18x128xf32, #tpu.memory_space<vmem>>, vector<16x16x128xf32>
    %44 = vector.shape_cast %43 : vector<16x16x128xf32> to vector<256x128xf32>
    %c0_57 = arith.constant 0 : index
    %c896 = arith.constant 896 : index
    %45 = vector.load %arg10[%c0_57, %c896] : memref<256x1152xf32, #tpu.memory_space<vmem>>, vector<256x128xf32>
    tpu.vector_store %arg10[%c0_57, %c896], %44 {strides = array<i32>} : memref<256x1152xf32, #tpu.memory_space<vmem>>, vector<256x128xf32>,
    %c2_58 = arith.constant 2 : index
    %c2_59 = arith.constant 2 : index
    %c0_60 = arith.constant 0 : index
    %46 = vector.load %arg9[%c2_58, %c2_59, %c0_60] : memref<18x18x128xf32, #tpu.memory_space<vmem>>, vector<16x16x128xf32>
    %47 = vector.shape_cast %46 : vector<16x16x128xf32> to vector<256x128xf32>
    %c0_61 = arith.constant 0 : index
    %c1024 = arith.constant 1024 : index
    %48 = vector.load %arg10[%c0_61, %c1024] : memref<256x1152xf32, #tpu.memory_space<vmem>>, vector<256x128xf32>
    tpu.vector_store %arg10[%c0_61, %c1024], %47 {strides = array<i32>} : memref<256x1152xf32, #tpu.memory_space<vmem>>, vector<256x128xf32>,
    %c0_62 = arith.constant 0 : index
    %c0_63 = arith.constant 0 : index
    %49 = vector.load %arg10[%c0_62, %c0_63] : memref<256x1152xf32, #tpu.memory_space<vmem>>, vector<256x1152xf32>
    %c0_64 = arith.constant 0 : index
    %c0_65 = arith.constant 0 : index
    %50 = vector.load %arg4[%c0_64, %c0_65] : memref<1152x128xf32, #tpu.memory_space<vmem>>, vector<1152x128xf32>
    %cst_66 = arith.constant dense<0.000000e+00> : vector<256x128xf32>
    %51 = tpu.matmul %49, %50, %cst_66 {dimension_numbers = #tpu.dot_dimension_numbers<[1], [0], [0], [1], [0, 0, 1, 1], [], []>} : vector<256x1152xf32>, vector<1152x128xf32>, vector<256x128xf32> -> vector<256x128xf32>
    %c0_67 = arith.constant 0 : index
    %c0_68 = arith.constant 0 : index
    %52 = vector.load %arg5[%c0_67, %c0_68] : memref<1x128xf32, #tpu.memory_space<vmem>>, vector<1x128xf32>
    %53 = vector.broadcast %52 : vector<1x128xf32> to vector<256x128xf32>
    %54 = arith.addf %51, %53 : vector<256x128xf32>
    %cst_69 = arith.constant 0.000000e+00 : f32
    %55 = vector.broadcast %cst_69 : f32 to vector<256x128xf32>
    %56 = arith.maximumf %54, %55 : vector<256x128xf32>
    %c0_70 = arith.constant 0 : index
    %c0_71 = arith.constant 0 : index
    %57 = vector.load %arg6[%c0_70, %c0_71] : memref<128x128xf32, #tpu.memory_space<vmem>>, vector<128x128xf32>
    %cst_72 = arith.constant dense<0.000000e+00> : vector<256x128xf32>
    %58 = tpu.matmul %56, %57, %cst_72 {dimension_numbers = #tpu.dot_dimension_numbers<[1], [0], [0], [1], [0, 0, 1, 1], [], []>} : vector<256x128xf32>, vector<128x128xf32>, vector<256x128xf32> -> vector<256x128xf32>
    %c0_73 = arith.constant 0 : index
    %c0_74 = arith.constant 0 : index
    %59 = vector.load %arg7[%c0_73, %c0_74] : memref<1x128xf32, #tpu.memory_space<vmem>>, vector<1x128xf32>
    %60 = vector.broadcast %59 : vector<1x128xf32> to vector<256x128xf32>
    %61 = arith.addf %58, %60 : vector<256x128xf32>
    %c0_75 = arith.constant 0 : index
    %c0_76 = arith.constant 0 : index
    %62 = vector.load %arg11[%c0_75, %c0_76] : memref<256x128xf32, #tpu.memory_space<vmem>>, vector<256x128xf32>
    %63 = arith.addf %61, %62 : vector<256x128xf32>
    %cst_77 = arith.constant 0.000000e+00 : f32
    %64 = vector.broadcast %cst_77 : f32 to vector<256x128xf32>
    %65 = arith.maximumf %63, %64 : vector<256x128xf32>
    %c0_78 = arith.constant 0 : index
    %c0_79 = arith.constant 0 : index
    %c0_80 = arith.constant 0 : index
    %66 = vector.load %arg8[%c0_78, %c0_79, %c0_80] : memref<1x256x128xf32, #tpu.memory_space<vmem>>, vector<1x256x128xf32>
    %67 = vector.shape_cast %66 : vector<1x256x128xf32> to vector<256x128xf32>
    %68 = vector.shape_cast %65 : vector<256x128xf32> to vector<1x256x128xf32>
    tpu.vector_store %arg8[%c0_78, %c0_79, %c0_80], %68 {strides = array<i32>} : memref<1x256x128xf32, #tpu.memory_space<vmem>>, vector<1x256x128xf32>,
    return
  }
  func.func @transform_0(%arg0: i32) -> (i32, i32, i32) {
    %c0_i32 = arith.constant 0 : i32
    %c0_i32_0 = arith.constant 0 : i32
    %c0_i32_1 = arith.constant 0 : i32
    return %arg0, %c0_i32, %c0_i32_0 : i32, i32, i32
  }
  func.func @transform_1(%arg0: i32) -> (i32, i32) {
    %c0_i32 = arith.constant 0 : i32
    %c0_i32_0 = arith.constant 0 : i32
    %c0_i32_1 = arith.constant 0 : i32
    return %c0_i32, %c0_i32_0 : i32, i32
  }
  func.func @transform_2(%arg0: i32) -> (i32, i32) {
    %c0_i32 = arith.constant 0 : i32
    %c0_i32_0 = arith.constant 0 : i32
    %c0_i32_1 = arith.constant 0 : i32
    return %c0_i32, %c0_i32_0 : i32, i32
  }
  func.func @transform_3(%arg0: i32) -> (i32, i32) {
    %c0_i32 = arith.constant 0 : i32
    %c0_i32_0 = arith.constant 0 : i32
    %c0_i32_1 = arith.constant 0 : i32
    return %c0_i32, %c0_i32_0 : i32, i32
  }
  func.func @transform_4(%arg0: i32) -> (i32, i32) {
    %c0_i32 = arith.constant 0 : i32
    %c0_i32_0 = arith.constant 0 : i32
    %c0_i32_1 = arith.constant 0 : i32
    return %c0_i32, %c0_i32_0 : i32, i32
  }
  func.func @transform_5(%arg0: i32) -> (i32, i32) {
    %c0_i32 = arith.constant 0 : i32
    %c0_i32_0 = arith.constant 0 : i32
    %c0_i32_1 = arith.constant 0 : i32
    return %c0_i32, %c0_i32_0 : i32, i32
  }
  func.func @transform_6(%arg0: i32) -> (i32, i32) {
    %c0_i32 = arith.constant 0 : i32
    %c0_i32_0 = arith.constant 0 : i32
    %c0_i32_1 = arith.constant 0 : i32
    return %c0_i32, %c0_i32_0 : i32, i32
  }
  func.func @transform_7(%arg0: i32) -> (i32, i32, i32) {
    %c0_i32 = arith.constant 0 : i32
    %c0_i32_0 = arith.constant 0 : i32
    %c0_i32_1 = arith.constant 0 : i32
    return %arg0, %c0_i32, %c0_i32_0 : i32, i32, i32
  }
}

</mosaic_0001>

<bundles_post_ra>
// kernel: tpu_custom_call.1
= control target key start
LH: loop header
LB: loop body
LE: loop exit
PB: predicated region body
PF: predicated region fallthrough
CT: control target
= control target key end

     0   :  { %s5792_s0 = inlined_call_operand.hbm [shape: f32[2,256,128], index: 0, kind: input, shape index: {}]   ;;  %s5793_s1 = inlined_call_operand.hbm [shape: f32[128,256], index: 1, kind: input, shape index: {}]   ;;  %s5794_s2 = inlined_call_operand.vmem [shape: f32[1,256], index: 2, kind: input, shape index: {}]   ;;  %s5795_s3 = inlined_call_operand.hbm [shape: f32[1152,128], index: 3, kind: input, shape index: {}]   ;;  %s5796_s4 = inlined_call_operand.vmem [shape: f32[1,128], index: 4, kind: input, shape index: {}]   ;;  %s5797_s5 = inlined_call_operand.hbm [shape: f32[128,128], index: 5, kind: input, shape index: {}]   ;;  %s5798_s6 = inlined_call_operand.vmem [shape: f32[1,128], index: 6, kind: input, shape index: {}]   ;;  %s5799_s7 = inlined_call_operand.hbm [shape: f32[2,256,128], index: 7, kind: output, shape index: {}]  }
   0x1   :  { %5809 = sst [smem:[#allocation67_spill]] %s5793_s1 }
   0x2   :  { %12 = vsyncpa [#allocation6], 0 }
   0x3   :  { %14 = vsyncpa [#allocation6 + $0x1], 0 }
   0x4   :  { %15 = vsyncpa [#allocation9], 0 }
   0x5   :  { %16 = vsyncpa [#allocation12], 0 }
   0x6   :  { %17 = vsyncpa [#allocation7], 0 }
   0x7   :  { %19 = vsyncpa [#allocation7 + $0x1], 0  ;;  %s4569_s24 = smov 0   ;;  %s4571_s25 = smov 0  }
   0x8   :  { %s4573_s26 = smov 0   ;;  %s4575_s27 = smov 0  }
   0x9 LB: > { %s4590_s28 = sadd.s32 4294967295, %s4514_s27   ;;  %s3479_s29 = sadd.s32 4294967294, %s4514_s27   ;;  %s4514_s27 = sphi %s4575_s27, %s5931_s27   ;;  %s4510_s26 = sphi %s4573_s26, %s5930_s26   ;;  %s4506_s25 = sphi %s4571_s25, %s5929_s25   ;;  %s4502_s24 = sphi %s4569_s24, %s5928_s24  }
   0xa   : > { %p45_p0 = scmp.ne.s32.totalorder %s4506_s25, %s4502_s24  ;;  %p5800_p1 = scmp.eq.s32.totalorder %s4590_s28, 0 }
   0xb   : > { %p201_p3 = scmp.eq.s32.totalorder %s3479_s29, 1  ;;  %p3480_p5 = scmp.ge.s32.totalorder %s4514_s27, 1 }
   0xc   : > { %p4599_p4 = por %p5800_p1, %p45_p0  ;;  %p208_p7 = scmp.lt.s32.totalorder %s4514_s27, 3 }
   0xd   : > { %p4604_p6 = por %p201_p3, %p45_p0  ;;  %s4516_s10 = smov [#allocation8]  }
   0xe   : > { %s5810_s30 = scalar_select %p4599_p4, 1, 0 }
   0xf   : > { %s5811_s8 = scalar_select %p4604_p6, 1, 0 }
  0x10   : > { %p4609_p8 = pnand %p3480_p5, %p208_p7  ;;  %s220_s11 = sshll.u32 %s4516_s10, 4  ;;  %s4613_s11 = int_to_ptr.vmem [resolvable:$true] %s220_s11 }
  0x11   : > { %5812 = sst [smem:[#allocation18_spill]] %s5811_s8  ;;  %s4517_s13 = smov [#allocation10]  }
  0x12   : > { %s5813_s9 = scalar_select %p4609_p8, 1, 0 }
  0x13   : > { %p4255_p9 = pneg %p4609_p8  ;;  %s236_s14 = sshll.u32 %s4517_s13, 4  ;;  %s4624_s14 = int_to_ptr.vmem [resolvable:$true] %s236_s14 }
  0x14   : > { %s5815_s1 = sld [smem:[#allocation67_spill]] }
  0x15   : > { %p4620_p11 = pnand %p4255_p9, %p5800_p1 }
  0x17   : > { %p4634_p13 = pneg %p4620_p11 }
  0x1a   : > { %s4326_s17 = scalar_lea.hbm %s5815_s1, 4096 }
  0x1b   : > { %p4327_p12 = scmp.ne.s32.totalorder %s5815_s1, %s4326_s17  ;;  %p4333_p5 = scmp.lt.u32.totalorder %s4326_s17, %s5815_s1 }
  0x1d   : > { %p4329_p0 = pnand %p4634_p13, %p4327_p12 }
  0x1f   : > { %p4330_p3 = pneg %p4329_p0 }
  0x21   : > { %p4335_p7 = pnand %p4333_p5, %p4330_p3 }
  0x23   : > { %4338 = shalt.err (!%p4335_p7)
}
  0x24   : > { %s4339_s23 = scalar_lea.vmem %s4613_s11, 4096  ;;  %p4347_p2 = scmp.lt.s32.totalorder %s4613_s11, %s4613_s11 }
  0x25   : > { %p4340_p9 = scmp.ne.s32.totalorder %s4613_s11, %s4339_s23  ;;  %p4348_p6 = scmp.lt.s32.totalorder %s4339_s23, %s4339_s23 }
  0x27   : > { %p4342_p10 = pnand %p4340_p9, %p4634_p13  ;;  %p4349_p12 = por %p4348_p6, %p4347_p2 }
  0x29   : > { %p4343_p1 = pneg %p4342_p10 }
  0x2b   : > { %p4350_p0 = pnand %p4349_p12, %p4343_p1 }
  0x2d   : > { %4353 = shalt.err (!%p4350_p0)
}
  0x2e   : > { %s4518_s29 = smov 256   ;;  %s4519_s10 = smov 16  }
  0x2f   : > { %4258 = dma.hbm_to_vmem [thread:$0]  (!%p4620_p11), %s5815_s1, 4096, %s4613_s11, [#allocation9], %s4518_s29, %s4518_s29, %s4519_s10  }
  0x30   : > { %s4354_s18 = scalar_lea.hbm %s5795_s3, 18432 }
  0x31   : > { %p4355_p2 = scmp.ne.s32.totalorder %s5795_s3, %s4354_s18  ;;  %p4361_p10 = scmp.lt.u32.totalorder %s4354_s18, %s5795_s3 }
  0x33   : > { %p4357_p1 = pnand %p4355_p2, %p4634_p13 }
  0x35   : > { %p4358_p6 = pneg %p4357_p1 }
  0x37   : > { %p4363_p3 = pnand %p4361_p10, %p4358_p6 }
  0x39   : > { %4366 = shalt.err (!%p4363_p3)
}
  0x3a   : > { %s4367_s11 = scalar_lea.vmem %s4624_s14, 18432  ;;  %p4375_p12 = scmp.lt.s32.totalorder %s4624_s14, %s4624_s14 }
  0x3b   : > { %p4368_p5 = scmp.ne.s32.totalorder %s4624_s14, %s4367_s11  ;;  %p4376_p0 = scmp.lt.s32.totalorder %s4367_s11, %s4367_s11 }
  0x3d   : > { %p4370_p7 = pnand %p4368_p5, %p4634_p13  ;;  %p4377_p2 = por %p4376_p0, %p4375_p12 }
  0x3f   : > { %p4371_p9 = pneg %p4370_p7 }
  0x41   : > { %p4378_p1 = pnand %p4377_p2, %p4371_p9 }
  0x43   : > { %4381 = shalt.err (!%p4378_p1)
}
  0x44   : > { %s4520_s29 = smov 128   ;;  %s4521_s10 = smov 8  }
  0x45   : > { %4261 = dma.hbm_to_vmem [thread:$0]  (!%p4620_p11), %s5795_s3, 18432, %s4624_s14, [#allocation9], %s4520_s29, %s4520_s29, %s4521_s10  }
  0x46   : > { %s4522_s16 = smov [#allocation11]   ;;  %s4682_s18 = sadd.s32 1, %s4514_s27  }
  0x47   : > { %s252_s17 = sshll.u32 %s4522_s16, 4  ;;  %s4382_s22 = scalar_lea.hbm %s5797_s5, 2048  ;;  %s253_s17 = int_to_ptr.vmem [resolvable:$true] %s252_s17 }
  0x48   : > { %p4383_p6 = scmp.ne.s32.totalorder %s5797_s5, %s4382_s22  ;;  %p4389_p5 = scmp.lt.u32.totalorder %s4382_s22, %s5797_s5 }
  0x4a   : > { %p4385_p10 = pnand %p4383_p6, %p4634_p13 }
  0x4c   : > { %p4386_p3 = pneg %p4385_p10 }
  0x4e   : > { %p4391_p7 = pnand %p4389_p5, %p4386_p3 }
  0x50   : > { %4394 = shalt.err (!%p4391_p7)
}
  0x51   : > { %s4395_s14 = scalar_lea.vmem %s253_s17, 2048  ;;  %p4403_p2 = scmp.lt.s32.totalorder %s253_s17, %s253_s17 }
  0x52   : > { %p4396_p9 = scmp.ne.s32.totalorder %s253_s17, %s4395_s14  ;;  %p4404_p1 = scmp.lt.s32.totalorder %s4395_s14, %s4395_s14 }
  0x54   : > { %p4398_p12 = pnand %p4396_p9, %p4634_p13  ;;  %p4405_p4 = por %p4404_p1, %p4403_p2 }
  0x56   : > { %p4399_p0 = pneg %p4398_p12 }
  0x58   : > { %p4406_p8 = pnand %p4405_p4, %p4399_p0 }
  0x5a   : > { %4409 = shalt.err (!%p4406_p8)
}
  0x5b   : > { %4264 = dma.hbm_to_vmem [thread:$0]  (!%p4620_p11), %s5797_s5, 2048, %s253_s17, [#allocation12], %s4520_s29, %s4520_s29, %s4521_s10  }
  0x5c   : > { %s29_s20 = ssub.s32 %s4514_s27, %s4682_s18  ;;  %s32_s12 = sadd.s32 1, %s4510_s26 }
  0x5d   : > { %p30_p4 = scmp.eq.s32.totalorder %s29_s20, 0  ;;  %p39_p8 = scmp.ne.s32.totalorder %s4510_s26, %s4506_s25 }
  0x5e   : > { %p40_p13 = scmp.eq.s32.totalorder %s4514_s27, 0  ;;  %p4276_p6 = scmp.lt.s32.totalorder %s4514_s27, 2 }
  0x5f   : > { %s4713_s13 = scalar_select %p30_p4, %s4510_s26, %s32_s12  }
  0x60   : > { %p41_p10 = por %p40_p13, %p39_p8  ;;  %p5817_p3 = scmp.eq.s32.totalorder %s4590_s28, 1 }
  0x61   : > { %s269_s16 = sand.u32 1, %s4510_s26   ;;  %s3501_s19 = sshll.u32 %s4514_s27, 12 }
  0x62   : > { %p4717_p5 = por %p5817_p3, %p39_p8  ;;  %s3485_s21 = sshll.u32 %s269_s16, 8 }
  0x63   : > { %s4726_s17 = scalar_lea.hbm %s5792_s0, %s3501_s19  ;;  %s273_s11 = scalar_lea.vmem [#allocation5], %s3485_s21 }
  0x64   : > { %s280_s14 = sshll.u32 %s273_s11, 4  ;;  %p4728_p11 = pnand %p4276_p6, %p41_p10  ;;  %s4732_s14 = int_to_ptr.vmem [resolvable:$true] %s280_s14 }
  0x65   : > { %s4734_s8 = scalar_lea.sflag [#allocation6], %s269_s16  ;;  %s4410_s20 = scalar_lea.hbm %s4726_s17, 4096 }
  0x66   : > { %p4411_p7 = scmp.ne.s32.totalorder %s4726_s17, %s4410_s20  ;;  %p4412_p9 = pneg %p4728_p11 }
  0x67   : > { %s4415_s21 = scalar_lea.hbm %s5792_s0, 8192  ;;  %p4416_p2 = scmp.lt.u32.totalorder %s4726_s17, %s5792_s0 }
  0x68   : > { %p4413_p12 = pnand %p4412_p9, %p4411_p7  ;;  %p4417_p1 = scmp.lt.u32.totalorder %s4415_s21, %s4410_s20 }
  0x69   : > { %p4419_p8 = scmp.lt.u32.totalorder %s4410_s20, %s4726_s17 }
  0x6a   : > { %p4414_p0 = pneg %p4413_p12  ;;  %p4418_p4 = por %p4417_p1, %p4416_p2 }
  0x6c   : > { %p4420_p13 = por %p4419_p8, %p4418_p4 }
  0x6e   : > { %p4421_p6 = pnand %p4420_p13, %p4414_p0 }
  0x70   : > { %4424 = shalt.err (!%p4421_p6)
}
  0x71   : > { %s4425_s16 = scalar_lea.vmem %s4732_s14, 4096  ;;  %s4523_s11 = smov [#allocation5]  }
  0x72   : > { %p4426_p10 = scmp.ne.s32.totalorder %s4732_s14, %s4425_s16  ;;  %s4430_s12 = sshll.u32 %s4523_s11, 4  ;;  %s4431_s12 = int_to_ptr.vmem [resolvable:$false] %s4430_s12 }
  0x73   : > { %s4432_s19 = scalar_lea.vmem %s4431_s12, 8192  ;;  %p4433_p12 = scmp.lt.s32.totalorder %s4732_s14, %s4431_s12 }
  0x74   : > { %p4428_p3 = pnand %p4426_p10, %p4412_p9  ;;  %p4434_p2 = scmp.lt.s32.totalorder %s4432_s19, %s4425_s16 }
  0x76   : > { %p4429_p7 = pneg %p4428_p3  ;;  %p4435_p1 = por %p4434_p2, %p4433_p12 }
  0x78   : > { %p4436_p4 = pnand %p4435_p1, %p4429_p7 }
  0x7a   : > { %4439 = shalt.err (!%p4436_p4)
}
  0x7b   : > { %4268 = dma.hbm_to_vmem [thread:$0]  (!%p4728_p11), %s4726_s17, 4096, %s4732_s14, %s4734_s8, %s4520_s29, %s4520_s29, %s4521_s10  }
  0x7c   : > { %p5820_p9 = scmp.ne.s32.totalorder %s5813_s9, 0 }
  0x7e   : > { %292 = sbr.rel (%p5820_p9) target bundleno = 1236 (0x4d4), region = 48 }
  0x85   : > { %s4768_s20 = sand.u32 1, %s4506_s25   ;;  %p5821_p0 = scmp.ne.s32.totalorder %s5810_s30, 0 }
  0x86   : > { %s3489_s21 = sshll.u32 %s4768_s20, 8  ;;  %s295_s22 = scalar_lea.sflag [#allocation6], %s4768_s20 }
  0x87   : > { %s4774_s1 = scalar_lea.vmem [#allocation5], %s3489_s21 }
  0x88   : > { %4485 = dma.done.wait (%p5821_p0), %s295_s22, 4096  }
  0x89   : > { %4487 = vsyncadd (%p5821_p0), %s295_s22, 4294963200  ;;  %p5822_p11 = scmp.eq.s32.totalorder %s4590_s28, 0 }
  0x8b   : > { %4489 = dma.done.wait (%p5822_p11), [#allocation9], 22528   ;;  %p5823_p8 = pmov %p5822_p11 }
  0x8d   : > { %4491 = vsyncadd (%p5823_p8), [#allocation9], 4294944768  ;;  %p5824_p13 = pmov %p5823_p8 }
  0x8e   : > { %p5825_p6 = pmov %p5823_p8 }
  0x8f   : > { %4493 = dma.done.wait (%p5824_p13), [#allocation12], 2048  }
  0x90   : > { %4495 = vsyncadd (%p5825_p6), [#allocation12], 4294965248  ;;  %v4524_v0 = vmov 0.0   ;;  %v374_v1 = vld [vmem:[#allocation8 + $0x8] sm:$0xff]  ;;  %v376_v2 = vld [vmem:[#allocation8 + $0x18] sm:$0xff]  ;;  %v5804_v53 = vmov 0.0|0.0  }
  0x91   : > { %481 = vmatprep.mubr.f32.mxu0 %v4524_v0  ;;  %738 = vst [vmem:[#allocation2] sm:$0xff] %v4524_v0  ;;  %739 = vst [vmem:[#allocation2 + $0x8] sm:$0xff] %v4524_v0  ;;  %v373_v3 = vld [vmem:[#allocation8] sm:$0xff]  ;;  %v3759_v4 = vpack.c.bf16 %v376_v2, %v374_v1  ;;  %v375_v5 = vld [vmem:[#allocation8 + $0x10] sm:$0xff]  ;;  %3839 = vmatprep.subr.bf16.mxu1 %v5804_v53  ;;  %s5617_s16 = scalar_lea.vmem [#allocation13], %s3489_s21  ;;  %s3502_s11 = sshll.u32 %s4590_s28, 12 }
  0x92   : > { %740 = vst [vmem:[#allocation2 + $0x10] sm:$0x3] %v4524_v0  ;;  %742 = vst [vmem:[#allocation2 + $0x198] sm:$0xff] %v4524_v0  ;;  %v378_v6 = vld [vmem:[#allocation8 + $0x28] sm:$0xff]  ;;  %v380_v7 = vld [vmem:[#allocation8 + $0x38] sm:$0xff]  ;;  %v3761_v8 = vpack.c.bf16 %v375_v5, %v373_v3  ;;  %s3377_s12 = sshll.u32 %s5617_s16, 4  ;;  %s5744_s22 = scalar_lea.hbm %s5799_s7, %s3502_s11  ;;  %s5746_s12 = int_to_ptr.vmem [resolvable:$true] %s3377_s12 }
  0x93   : > { %743 = vst [vmem:[#allocation2 + $0x1a0] sm:$0xff] %v4524_v0  ;;  %744 = vst [vmem:[#allocation2 + $0x1a8] sm:$0x3] %v4524_v0  ;;  %v3763_v9 = vpack.c.bf16 %v380_v7, %v378_v6  ;;  %v377_v10 = vld [vmem:[#allocation8 + $0x20] sm:$0xff]  ;;  %v379_v11 = vld [vmem:[#allocation8 + $0x30] sm:$0xff]  ;;  %3760 = vmatprep.subr.bf16.mxu0 %v3759_v4  ;;  %s4440_s30 = scalar_lea.vmem %s5746_s12, 4096 }
  0x94   : > { %746 = vst [vmem:[#allocation2 + $0x18] sm:$0x1] %v4524_v0  ;;  %747 = vst [vmem:[#allocation2 + $0x30] sm:$0x1] %v4524_v0  ;;  %v382_v12 = vld [vmem:[#allocation8 + $0x48] sm:$0xff]  ;;  %v384_v13 = vld [vmem:[#allocation8 + $0x58] sm:$0xff]  ;;  %3762 = vmatpush1.bf16.msra.mxu0 %v3761_v8  ;;  %v3765_v14 = vpack.c.bf16 %v379_v11, %v377_v10  ;;  %p4441_p10 = scmp.ne.s32.totalorder %s5746_s12, %s4440_s30 }
  0x95   : > { %748 = vst [vmem:[#allocation2 + $0x48] sm:$0x1] %v4524_v0  ;;  %749 = vst [vmem:[#allocation2 + $0x60] sm:$0x1] %v4524_v0  ;;  %3764 = vmatprep.subr.bf16.mxu0 %v3763_v9  ;;  %v3767_v15 = vpack.c.bf16 %v384_v13, %v382_v12  ;;  %v381_v16 = vld [vmem:[#allocation8 + $0x40] sm:$0xff]  ;;  %v383_v17 = vld [vmem:[#allocation8 + $0x50] sm:$0xff] }
  0x96   : > { %750 = vst [vmem:[#allocation2 + $0x78] sm:$0x1] %v4524_v0  ;;  %751 = vst [vmem:[#allocation2 + $0x90] sm:$0x1] %v4524_v0  ;;  %v386_v18 = vld [vmem:[#allocation8 + $0x68] sm:$0xff]  ;;  %v388_v19 = vld [vmem:[#allocation8 + $0x78] sm:$0xff]  ;;  %v3769_v20 = vpack.c.bf16 %v383_v17, %v381_v16  ;;  %p4442_p3 = pnand %p4441_p10, %p4717_p5 }
  0x97   : > { %752 = vst [vmem:[#allocation2 + $0xa8] sm:$0x1] %v4524_v0  ;;  %753 = vst [vmem:[#allocation2 + $0xc0] sm:$0x1] %v4524_v0  ;;  %v3771_v21 = vpack.c.bf16 %v388_v19, %v386_v18  ;;  %v385_v22 = vld [vmem:[#allocation8 + $0x60] sm:$0xff]  ;;  %v387_v23 = vld [vmem:[#allocation8 + $0x70] sm:$0xff] }
  0x98   : > { %754 = vst [vmem:[#allocation2 + $0xd8] sm:$0x1] %v4524_v0  ;;  %755 = vst [vmem:[#allocation2 + $0xf0] sm:$0x1] %v4524_v0  ;;  %3766 = vmatpush1.bf16.msra.mxu0 %v3765_v14  ;;  %v390_v24 = vld [vmem:[#allocation8 + $0x88] sm:$0xff]  ;;  %v392_v25 = vld [vmem:[#allocation8 + $0x98] sm:$0xff]  ;;  %v3773_v26 = vpack.c.bf16 %v387_v23, %v385_v22  ;;  %p4443_p7 = pneg %p4442_p3 }
  0x99   : > { %756 = vst [vmem:[#allocation2 + $0x108] sm:$0x1] %v4524_v0  ;;  %757 = vst [vmem:[#allocation2 + $0x120] sm:$0x1] %v4524_v0  ;;  %3768 = vmatprep.subr.bf16.mxu0 %v3767_v15  ;;  %v3775_v27 = vpack.c.bf16 %v392_v25, %v390_v24  ;;  %v389_v28 = vld [vmem:[#allocation8 + $0x80] sm:$0xff]  ;;  %v391_v29 = vld [vmem:[#allocation8 + $0x90] sm:$0xff] }
  0x9a   : > { %758 = vst [vmem:[#allocation2 + $0x138] sm:$0x1] %v4524_v0  ;;  %759 = vst [vmem:[#allocation2 + $0x150] sm:$0x1] %v4524_v0  ;;  %v394_v30 = vld [vmem:[#allocation8 + $0xa8] sm:$0xff]  ;;  %v396_v31 = vld [vmem:[#allocation8 + $0xb8] sm:$0xff]  ;;  %v3777_v32 = vpack.c.bf16 %v391_v29, %v389_v28 }
  0x9b   : > { %760 = vst [vmem:[#allocation2 + $0x168] sm:$0x1] %v4524_v0  ;;  %761 = vst [vmem:[#allocation2 + $0x180] sm:$0x1] %v4524_v0  ;;  %v3779_v33 = vpack.c.bf16 %v396_v31, %v394_v30  ;;  %v393_v34 = vld [vmem:[#allocation8 + $0xa0] sm:$0xff]  ;;  %v395_v35 = vld [vmem:[#allocation8 + $0xb0] sm:$0xff] }
  0x9c   : > { %764 = vst [vmem:[#allocation2 + $0x29] sm:$0x1] %v4524_v0  ;;  %765 = vst [vmem:[#allocation2 + $0x41] sm:$0x1] %v4524_v0  ;;  %3770 = vmatpush1.bf16.msra.mxu0 %v3769_v20  ;;  %v398_v36 = vld [vmem:[#allocation8 + $0xc8] sm:$0xff]  ;;  %v400_v37 = vld [vmem:[#allocation8 + $0xd8] sm:$0xff]  ;;  %v3781_v38 = vpack.c.bf16 %v395_v35, %v393_v34 }
  0x9d   : > { %766 = vst [vmem:[#allocation2 + $0x59] sm:$0x1] %v4524_v0  ;;  %767 = vst [vmem:[#allocation2 + $0x71] sm:$0x1] %v4524_v0  ;;  %3772 = vmatprep.subr.bf16.mxu0 %v3771_v21  ;;  %v3783_v39 = vpack.c.bf16 %v400_v37, %v398_v36  ;;  %v397_v40 = vld [vmem:[#allocation8 + $0xc0] sm:$0xff]  ;;  %v399_v41 = vld [vmem:[#allocation8 + $0xd0] sm:$0xff] }
  0x9e   : > { %768 = vst [vmem:[#allocation2 + $0x89] sm:$0x1] %v4524_v0  ;;  %769 = vst [vmem:[#allocation2 + $0xa1] sm:$0x1] %v4524_v0  ;;  %v402_v42 = vld [vmem:[#allocation8 + $0xe8] sm:$0xff]  ;;  %v404_v43 = vld [vmem:[#allocation8 + $0xf8] sm:$0xff]  ;;  %v3785_v44 = vpack.c.bf16 %v399_v41, %v397_v40 }
  0x9f   : > { %770 = vst [vmem:[#allocation2 + $0xb9] sm:$0x1] %v4524_v0  ;;  %771 = vst [vmem:[#allocation2 + $0xd1] sm:$0x1] %v4524_v0  ;;  %v3787_v45 = vpack.c.bf16 %v404_v43, %v402_v42  ;;  %v401_v46 = vld [vmem:[#allocation8 + $0xe0] sm:$0xff]  ;;  %v403_v47 = vld [vmem:[#allocation8 + $0xf0] sm:$0xff] }
  0xa0   : > { %772 = vst [vmem:[#allocation2 + $0xe9] sm:$0x1] %v4524_v0  ;;  %773 = vst [vmem:[#allocation2 + $0x101] sm:$0x1] %v4524_v0  ;;  %3774 = vmatpush1.bf16.msra.mxu0 %v3773_v26  ;;  %v3789_v48 = vpack.c.bf16 %v403_v47, %v401_v46  ;;  %v1679_v49 = vld [vmem:[#allocation10] sm:$0xff]  ;;  %v1680_v50 = vld [vmem:[#allocation10 + $0x8] sm:$0xff] }
  0xa1   : > { %774 = vst [vmem:[#allocation2 + $0x119] sm:$0x1] %v4524_v0  ;;  %775 = vst [vmem:[#allocation2 + $0x131] sm:$0x1] %v4524_v0  ;;  %3776 = vmatprep.subr.bf16.mxu0 %v3775_v27  ;;  %v341_v51 = vld [vmem:[%s4774_s1] sm:$0xff]  ;;  %v3792_v52 = vpack.c.bf16 %v1680_v50, %v1679_v49  ;;  %v1712_v55 = vld [vmem:[#allocation10 + $0x108] sm:$0xff] }
  0xa2   : > { %776 = vst [vmem:[#allocation2 + $0x149] sm:$0x1] %v4524_v0  ;;  %777 = vst [vmem:[#allocation2 + $0x161] sm:$0x1] %v4524_v0  ;;  %v1711_v54 = vld [vmem:[#allocation10 + $0x100] sm:$0xff]  ;;  %v1681_v56 = vld [vmem:[#allocation10 + $0x10] sm:$0xff] }
  0xa3   : > { %778 = vst [vmem:[#allocation2 + $0x179] sm:$0x1] %v4524_v0  ;;  %779 = vst [vmem:[#allocation2 + $0x191] sm:$0x1] %v4524_v0  ;;  %v1682_v57 = vld [vmem:[#allocation10 + $0x18] sm:$0xff]  ;;  %v3840_v58 = vpack.c.bf16 %v1712_v55, %v1711_v54  ;;  %v1713_v59 = vld [vmem:[#allocation10 + $0x110] sm:$0xff] }
  0xa4   : > { %745 = vst [vmem:[#allocation2] sm:$0x1] %v4524_v0  ;;  %762 = vst [vmem:[#allocation2 + $0x198] sm:$0x1] %v4524_v0  ;;  %3778 = vmatpush1.bf16.msra.mxu0 %v3777_v32  ;;  %v1714_v60 = vld [vmem:[#allocation10 + $0x118] sm:$0xff]  ;;  %v342_v62 = vld [vmem:[%s4774_s1 + $0x8] sm:$0xff]  ;;  %v3795_v63 = vpack.c.bf16 %v1682_v57, %v1681_v56 }
  0xa5   : > { %763 = vst [vmem:[#allocation2 + $0x11] sm:$0x1] %v4524_v0  ;;  %780 = vst [vmem:[#allocation2 + $0x1a9] sm:$0x1] %v4524_v0  ;;  %3780 = vmatprep.subr.bf16.mxu0 %v3779_v33  ;;  %3841 = vmatpush1.bf16.msra.mxu1 %v3840_v58  ;;  %v3843_v61 = vpack.c.bf16 %v1714_v60, %v1713_v59  ;;  %v1715_v1 = vld [vmem:[#allocation10 + $0x120] sm:$0xff]  ;;  %v1716_v2 = vld [vmem:[#allocation10 + $0x128] sm:$0xff] }
  0xa6   : > { %v1683_v3 = vld [vmem:[#allocation10 + $0x20] sm:$0xff]  ;;  %v1684_v4 = vld [vmem:[#allocation10 + $0x28] sm:$0xff]  ;;  %3842 = vmatprep.subr.bf16.mxu1 %v5804_v53  ;;  %v3846_v5 = vpack.c.bf16 %v1716_v2, %v1715_v1  ;;  %v343_v6 = vld [vmem:[%s4774_s1 + $0x10] sm:$0xff]  ;;  %s4526_s28 = smov [#allocation13]  }
  0xa7   : > { %v3798_v7 = vpack.c.bf16 %v1684_v4, %v1683_v3  ;;  %v1717_v8 = vld [vmem:[#allocation10 + $0x130] sm:$0xff]  ;;  %v1718_v9 = vld [vmem:[#allocation10 + $0x138] sm:$0xff]  ;;  %v1719_v15 = vld [vmem:[#allocation10 + $0x140] sm:$0xff]  ;;  %s4444_s9 = sshll.u32 %s4526_s28, 4  ;;  %s4445_s9 = int_to_ptr.vmem [resolvable:$false] %s4444_s9 }
  0xa8   : > { %3782 = vmatpush1.bf16.msra.mxu0 %v3781_v38  ;;  %v1685_v10 = vld [vmem:[#allocation10 + $0x30] sm:$0xff]  ;;  %v1686_v11 = vld [vmem:[#allocation10 + $0x38] sm:$0xff]  ;;  %v3849_v12 = vpack.c.bf16 %v1718_v9, %v1717_v8  ;;  %v1720_v16 = vld [vmem:[#allocation10 + $0x148] sm:$0xff]  ;;  %s4446_s29 = scalar_lea.vmem %s4445_s9, 8192  ;;  %p4447_p12 = scmp.lt.s32.totalorder %s5746_s12, %s4445_s9 }
  0xa9   : > { %3784 = vmatprep.subr.bf16.mxu0 %v3783_v39  ;;  %3844 = vmatpush1.bf16.msra.mxu1 %v3843_v61  ;;  %v344_v13 = vld [vmem:[%s4774_s1 + $0x18] sm:$0xff]  ;;  %v3801_v14 = vpack.c.bf16 %v1686_v11, %v1685_v10  ;;  %v1687_v17 = vld [vmem:[#allocation10 + $0x40] sm:$0xff]  ;;  %v1688_v18 = vld [vmem:[#allocation10 + $0x48] sm:$0xff]  ;;  %v3852_v19 = vpack.c.bf16 %v1720_v16, %v1719_v15  ;;  %p4448_p2 = scmp.lt.s32.totalorder %s4446_s29, %s4440_s30 }
  0xaa   : > { %3845 = vmatprep.subr.bf16.mxu1 %v5804_v53  ;;  %v345_v20 = vld [vmem:[%s4774_s1 + $0x20] sm:$0xff]  ;;  %v3804_v21 = vpack.c.bf16 %v1688_v18, %v1687_v17  ;;  %v1721_v22 = vld [vmem:[#allocation10 + $0x150] sm:$0xff]  ;;  %v1722_v23 = vld [vmem:[#allocation10 + $0x158] sm:$0xff] }
  0xab   : > { %v1689_v24 = vld [vmem:[#allocation10 + $0x50] sm:$0xff]  ;;  %v1690_v25 = vld [vmem:[#allocation10 + $0x58] sm:$0xff]  ;;  %v3855_v26 = vpack.c.bf16 %v1722_v23, %v1721_v22  ;;  %v346_v27 = vld [vmem:[%s4774_s1 + $0x28] sm:$0xff]  ;;  %p4449_p1 = por %p4448_p2, %p4447_p12 }
  0xac   : > { %3786 = vmatpush1.bf16.msra.mxu0 %v3785_v44  ;;  %v3807_v28 = vpack.c.bf16 %v1690_v25, %v1689_v24  ;;  %v1723_v29 = vld [vmem:[#allocation10 + $0x160] sm:$0xff]  ;;  %v1724_v30 = vld [vmem:[#allocation10 + $0x168] sm:$0xff]  ;;  %v347_v34 = vld [vmem:[%s4774_s1 + $0x30] sm:$0xff] }
  0xad   : > { %3788 = vmatprep.subr.bf16.mxu0 %v3787_v45  ;;  %3847 = vmatpush1.bf16.msra.mxu1 %v3846_v5  ;;  %v1691_v31 = vld [vmem:[#allocation10 + $0x60] sm:$0xff]  ;;  %v1692_v32 = vld [vmem:[#allocation10 + $0x68] sm:$0xff]  ;;  %v3858_v33 = vpack.c.bf16 %v1724_v30, %v1723_v29  ;;  %v1725_v36 = vld [vmem:[#allocation10 + $0x170] sm:$0xff]  ;;  %p4450_p4 = pnand %p4449_p1, %p4443_p7 }
  0xae   : > { %3848 = vmatprep.subr.bf16.mxu1 %v5804_v53  ;;  %v3810_v35 = vpack.c.bf16 %v1692_v32, %v1691_v31  ;;  %v1726_v37 = vld [vmem:[#allocation10 + $0x178] sm:$0xff]  ;;  %v1693_v38 = vld [vmem:[#allocation10 + $0x70] sm:$0xff]  ;;  %v1727_v43 = vld [vmem:[#allocation10 + $0x180] sm:$0xff] }
  0xaf   : > { %v1694_v39 = vld [vmem:[#allocation10 + $0x78] sm:$0xff]  ;;  %v3861_v40 = vpack.c.bf16 %v1726_v37, %v1725_v36  ;;  %v1728_v44 = vld [vmem:[#allocation10 + $0x188] sm:$0xff]  ;;  %v1695_v45 = vld [vmem:[#allocation10 + $0x80] sm:$0xff] }
  0xb0   : > { %3790 = vmatpush1.bf16.msra.mxu0 %v3789_v48  ;;  %v348_v41 = vld [vmem:[%s4774_s1 + $0x38] sm:$0xff]  ;;  %v3813_v42 = vpack.c.bf16 %v1694_v39, %v1693_v38  ;;  %v1696_v46 = vld [vmem:[#allocation10 + $0x88] sm:$0xff]  ;;  %v3864_v47 = vpack.c.bf16 %v1728_v44, %v1727_v43  ;;  %v349_v48 = vld [vmem:[%s4774_s1 + $0x40] sm:$0xff] }
  0xb1   : > { %3791 = vmatprep.subr.bf16.mxu0 %v5804_v53  ;;  %3850 = vmatpush1.bf16.msra.mxu1 %v3849_v12  ;;  %v3816_v49 = vpack.c.bf16 %v1696_v46, %v1695_v45  ;;  %v1729_v50 = vld [vmem:[#allocation10 + $0x190] sm:$0xff]  ;;  %v1698_v54 = vld [vmem:[#allocation10 + $0x98] sm:$0xff]  ;;  %v350_v56 = vld [vmem:[%s4774_s1 + $0x48] sm:$0xff] }
  0xb2   : > { %3851 = vmatprep.subr.bf16.mxu1 %v5804_v53  ;;  %v1731_v58 = vld [vmem:[#allocation10 + $0x1a0] sm:$0xff]  ;;  %v1732_v59 = vld [vmem:[#allocation10 + $0x1a8] sm:$0xff]  ;;  %v1733_v2 = vld [vmem:[#allocation10 + $0x1b0] sm:$0xff] }
  0xb3   : > { %482 = vmatmul.mubr.f32.vlgmr.msra.gmra.mrb[0].mxu0 %v341_v51  ;;  %v1730_v51 = vld [vmem:[#allocation10 + $0x198] sm:$0xff]  ;;  %v1699_v60 = vld [vmem:[#allocation10 + $0xa0] sm:$0xff]  ;;  %v1700_v61 = vld [vmem:[#allocation10 + $0xa8] sm:$0xff] }
  0xb4   : > { %487 = vmatprep.mubr.f32.mxu0 %v4524_v0  ;;  %3793 = vmatpush1.bf16.msra.mxu0 %v3792_v52  ;;  %v1697_v52 = vld [vmem:[#allocation10 + $0x90] sm:$0xff]  ;;  %v3867_v55 = vpack.c.bf16 %v1730_v51, %v1729_v50  ;;  %v3822_v1 = vpack.c.bf16 %v1700_v61, %v1699_v60  ;;  %v1734_v3 = vld [vmem:[#allocation10 + $0x1b8] sm:$0xff]  ;;  %v1735_v9 = vld [vmem:[#allocation10 + $0x1c0] sm:$0xff] }
  0xb5   : > { %3794 = vmatprep.subr.bf16.mxu0 %v5804_v53  ;;  %3853 = vmatpush1.bf16.msra.mxu1 %v3852_v19  ;;  %v3819_v57 = vpack.c.bf16 %v1698_v54, %v1697_v52  ;;  %v1701_v4 = vld [vmem:[#allocation10 + $0xb0] sm:$0xff]  ;;  %v1702_v5 = vld [vmem:[#allocation10 + $0xb8] sm:$0xff]  ;;  %v1736_v10 = vld [vmem:[#allocation10 + $0x1c8] sm:$0xff] }
  0xb6   : > { %3854 = vmatprep.subr.bf16.mxu1 %v5804_v53  ;;  %v3825_v8 = vpack.c.bf16 %v1702_v5, %v1701_v4  ;;  %v1703_v11 = vld [vmem:[#allocation10 + $0xc0] sm:$0xff]  ;;  %v1704_v12 = vld [vmem:[#allocation10 + $0xc8] sm:$0xff]  ;;  %v1705_v16 = vld [vmem:[#allocation10 + $0xd0] sm:$0xff] }
  0xb7   : > { %488 = vmatmul.mubr.f32.gmra.mrb[2].mxu0 %v342_v62  ;;  %v3870_v62 = vpack.c.bf16 %v1732_v59, %v1731_v58  ;;  %v3828_v15 = vpack.c.bf16 %v1704_v12, %v1703_v11  ;;  %v1706_v17 = vld [vmem:[#allocation10 + $0xd8] sm:$0xff]  ;;  %v354_v18 = vld [vmem:[%s4774_s1 + $0x68] sm:$0xff]  ;;  %v355_v22 = vld [vmem:[%s4774_s1 + $0x70] sm:$0xff] }
  0xb8   : > { %493 = vmatprep.mubr.f32.mxu0 %v4524_v0  ;;  %3796 = vmatpush1.bf16.msra.mxu0 %v3795_v63  ;;  %v351_v63 = vld [vmem:[%s4774_s1 + $0x50] sm:$0xff]  ;;  %v3831_v19 = vpack.c.bf16 %v1706_v17, %v1705_v16  ;;  %v356_v24 = vld [vmem:[%s4774_s1 + $0x78] sm:$0xff]  ;;  %v357_v25 = vld [vmem:[%s4774_s1 + $0x80] sm:$0xff] }
  0xb9   : > { %3797 = vmatprep.subr.bf16.mxu0 %v5804_v53  ;;  %3856 = vmatpush1.bf16.msra.mxu1 %v3855_v26  ;;  %v358_v26 = vld [vmem:[%s4774_s1 + $0x88] sm:$0xff]  ;;  %v361_v29 = vld [vmem:[%s4774_s1 + $0xa0] sm:$0xff]  ;;  %v1709_v30 = vld [vmem:[#allocation10 + $0xf0] sm:$0xff] }
  0xba   : > { %3857 = vmatprep.subr.bf16.mxu1 %v5804_v53  ;;  %v1710_v31 = vld [vmem:[#allocation10 + $0xf8] sm:$0xff]  ;;  %v363_v37 = vld [vmem:[%s4774_s1 + $0xb0] sm:$0xff]  ;;  %v1739_v38 = vld [vmem:[#allocation10 + $0x1e0] sm:$0xff] }
  0xbb   : > { %494 = vmatmul.mubr.f32.gmra.mrb[4].mxu0 %v343_v6  ;;  %v3873_v6 = vpack.c.bf16 %v1734_v3, %v1733_v2  ;;  %v3837_v32 = vpack.c.bf16 %v1710_v31, %v1709_v30  ;;  %v1740_v39 = vld [vmem:[#allocation10 + $0x1e8] sm:$0xff]  ;;  %v1742_v43 = vld [vmem:[#allocation10 + $0x1f8] sm:$0xff]  ;;  %v365_v45 = vld [vmem:[%s4774_s1 + $0xc0] sm:$0xff] }
  0xbc   : > { %499 = vmatprep.mubr.f32.mxu0 %v4524_v0  ;;  %3799 = vmatpush1.bf16.msra.mxu0 %v3798_v7  ;;  %v352_v7 = vld [vmem:[%s4774_s1 + $0x58] sm:$0xff]  ;;  %v366_v46 = vld [vmem:[%s4774_s1 + $0xc8] sm:$0xff]  ;;  %v371_v51 = vld [vmem:[%s4774_s1 + $0xf0] sm:$0xff] }
  0xbd   : > { %3800 = vmatprep.subr.bf16.mxu0 %v5804_v53  ;;  %3859 = vmatpush1.bf16.msra.mxu1 %v3858_v33  ;;  %v362_v33 = vld [vmem:[%s4774_s1 + $0xa8] sm:$0xff]  ;;  %v372_v52 = vld [vmem:[%s4774_s1 + $0xf8] sm:$0xff]  ;;  %v1809_v60 = vld [vmem:[#allocation10 + $0x410] sm:$0xff] }
  0xbe   : > { %3860 = vmatprep.subr.bf16.mxu1 %v5804_v53  ;;  %v370_v50 = vld [vmem:[%s4774_s1 + $0xe8] sm:$0xff]  ;;  %v878_v54 = vld [vmem:[#allocation2 + $0x1] sm:$0xff]  ;;  %v1743_v31 = vld [vmem:[#allocation10 + $0x200] sm:$0xff] }
  0xbf   : > { %500 = vmatmul.mubr.f32.gmra.mrb[6].mxu0 %v344_v13  ;;  %v3876_v13 = vpack.c.bf16 %v1736_v10, %v1735_v9  ;;  %v1808_v58 = vld [vmem:[#allocation10 + $0x408] sm:$0xff]  ;;  %v1810_v61 = vld [vmem:[#allocation10 + $0x418] sm:$0xff]  ;;  %v1813_v3 = vld [vmem:[#allocation10 + $0x430] sm:$0xff] }
  0xc0   : > { %505 = vmatprep.mubr.f32.mxu0 %v4524_v0  ;;  %3802 = vmatpush1.bf16.msra.mxu0 %v3801_v14  ;;  %v353_v14 = vld [vmem:[%s4774_s1 + $0x60] sm:$0xff]  ;;  %v1814_v4 = vld [vmem:[#allocation10 + $0x438] sm:$0xff]  ;;  %v1817_v10 = vld [vmem:[#allocation10 + $0x450] sm:$0xff] }
  0xc1   : > { %3803 = vmatprep.subr.bf16.mxu0 %v5804_v53  ;;  %3862 = vmatpush1.bf16.msra.mxu1 %v3861_v40  ;;  %v3882_v40 = vpack.c.bf16 %v1740_v39, %v1739_v38  ;;  %v3995_v5 = vpack.c.bf16 %v1814_v4, %v1813_v3  ;;  %v1818_v11 = vld [vmem:[#allocation10 + $0x458] sm:$0xff]  ;;  %v1820_v16 = vld [vmem:[#allocation10 + $0x468] sm:$0xff]  ;;  %v1751_v4 = vld [vmem:[#allocation10 + $0x240] sm:$0xff] }
  0xc2   : > { %3863 = vmatprep.subr.bf16.mxu1 %v5804_v53  ;;  %v4003_v12 = vpack.c.bf16 %v1818_v11, %v1817_v10 }
  0xc3   : > { %506 = vmatmul.mubr.f32.gmra.mrb[8].mxu0 %v345_v20  ;;  %v1707_v20 = vld [vmem:[#allocation10 + $0xe0] sm:$0xff] }
  0xc4   : > { %511 = vmatprep.mubr.f32.mxu0 %v4524_v0  ;;  %3805 = vmatpush1.bf16.msra.mxu0 %v3804_v21  ;;  %v1708_v21 = vld [vmem:[#allocation10 + $0xe8] sm:$0xff] }
  0xc5   : > { %3806 = vmatprep.subr.bf16.mxu0 %v5804_v53  ;;  %3865 = vmatpush1.bf16.msra.mxu1 %v3864_v47  ;;  %v3834_v23 = vpack.c.bf16 %v1708_v21, %v1707_v20  ;;  %v367_v47 = vld [vmem:[%s4774_s1 + $0xd0] sm:$0xff]  ;;  %v1822_v20 = vld [vmem:[#allocation10 + $0x478] sm:$0xff] }
  0xc6   : > { %3866 = vmatprep.subr.bf16.mxu1 %v5804_v53 }
  0xc7   : > { %512 = vmatmul.mubr.f32.gmra.mrb[10].mxu0 %v346_v27  ;;  %v359_v27 = vld [vmem:[%s4774_s1 + $0x90] sm:$0xff] }
  0xc8   : > { %517 = vmatprep.mubr.f32.mxu0 %v4524_v0  ;;  %3808 = vmatpush1.bf16.msra.mxu0 %v3807_v28  ;;  %v360_v28 = vld [vmem:[%s4774_s1 + $0x98] sm:$0xff] }
  0xc9   : > { %3809 = vmatprep.subr.bf16.mxu0 %v5804_v53  ;;  %3868 = vmatpush1.bf16.msra.mxu1 %v3867_v55  ;;  %v814_v55 = vld [vmem:[#allocation2] sm:$0xff] }
  0xca   : > { %3869 = vmatprep.subr.bf16.mxu1 %v5804_v53 }
  0xcb   : > { %518 = vmatmul.mubr.f32.gmra.mrb[12].mxu0 %v347_v34  ;;  %v1737_v34 = vld [vmem:[#allocation10 + $0x1d0] sm:$0xff] }
  0xcc   : > { %523 = vmatprep.mubr.f32.mxu0 %v4524_v0  ;;  %3811 = vmatpush1.bf16.msra.mxu0 %v3810_v35  ;;  %v1738_v35 = vld [vmem:[#allocation10 + $0x1d8] sm:$0xff] }
  0xcd   : > { %3812 = vmatprep.subr.bf16.mxu0 %v5804_v53  ;;  %3871 = vmatpush1.bf16.msra.mxu1 %v3870_v62  ;;  %v3879_v36 = vpack.c.bf16 %v1738_v35, %v1737_v34  ;;  %v3987_v62 = vpack.c.bf16 %v1810_v61, %v1809_v60 }
  0xce   : > { %3872 = vmatprep.subr.bf16.mxu1 %v5804_v53 }
  0xcf   : > { %524 = vmatmul.mubr.f32.gmra.mrb[14].mxu0 %v348_v41  ;;  %v364_v41 = vld [vmem:[%s4774_s1 + $0xb8] sm:$0xff] }
  0xd0   : > { %529 = vmatprep.mubr.f32.mxu0 %v4524_v0  ;;  %3814 = vmatpush1.bf16.msra.mxu0 %v3813_v42  ;;  %v1741_v42 = vld [vmem:[#allocation10 + $0x1f0] sm:$0xff] }
  0xd1   : > { %3815 = vmatprep.subr.bf16.mxu0 %v5804_v53  ;;  %3874 = vmatpush1.bf16.msra.mxu1 %v3873_v6  ;;  %v3885_v44 = vpack.c.bf16 %v1742_v43, %v1741_v42  ;;  %v407_v6 = vlaneseq }
  0xd2   : > { %3875 = vmatprep.subr.bf16.mxu1 %v5804_v53 }
  0xd3   : > { %530 = vmatmul.mubr.f32.gmra.mrb[16].mxu0 %v349_v48  ;;  %v368_v48 = vld [vmem:[%s4774_s1 + $0xd8] sm:$0xff]  ;;  %v4928_v9 = vshrl.u32 %v407_v6, 7 }
  0xd4   : > { %535 = vmatprep.mubr.f32.mxu0 %v4524_v0  ;;  %3817 = vmatpush1.bf16.msra.mxu0 %v3816_v49  ;;  %v369_v49 = vld [vmem:[%s4774_s1 + $0xe0] sm:$0xff]  ;;  %s3364_s1 = scalar_lea.sflag [#allocation7], %s4768_s20 }
  0xd5   : > { %3818 = vmatprep.subr.bf16.mxu0 %v5804_v53  ;;  %3877 = vmatpush1.bf16.msra.mxu1 %v3876_v13  ;;  %5826 = vst [vmem:[#allocation19_spill] sm:$0xff] %v4928_v9  ;;  %v409_v13 = vsub.s32 0, %v4928_v9 }
  0xd6   : > { %3878 = vmatprep.subr.bf16.mxu1 %v5804_v53 }
  0xd7   : > { %536 = vmatmul.mubr.f32.gmra.mrb[18].mxu0 %v350_v56  ;;  %v879_v56 = vld [vmem:[#allocation2 + $0x9] sm:$0xff] }
  0xd8   : > { %541 = vmatprep.mubr.f32.mxu0 %v4524_v0  ;;  %3820 = vmatpush1.bf16.msra.mxu0 %v3819_v57  ;;  %v1807_v57 = vld [vmem:[#allocation10 + $0x400] sm:$0xff] }
  0xd9   : > { %3821 = vmatprep.subr.bf16.mxu0 %v5804_v53  ;;  %3880 = vmatpush1.bf16.msra.mxu1 %v3879_v36  ;;  %v3983_v59 = vpack.c.bf16 %v1808_v58, %v1807_v57  ;;  %v942_v36 = vld [vmem:[#allocation2 + $0x2] sm:$0xff] }
  0xda   : > { %3881 = vmatprep.subr.bf16.mxu1 %v5804_v53  ;;  %v1749_v58 = vld [vmem:[#allocation10 + $0x230] sm:$0xff] }
  0xdb   : > { %542 = vmatmul.mubr.f32.gmra.mrb[20].mxu0 %v351_v63  ;;  %v1811_v63 = vld [vmem:[#allocation10 + $0x420] sm:$0xff] }
  0xdc   : > { %547 = vmatprep.mubr.f32.mxu0 %v4524_v0  ;;  %3823 = vmatpush1.bf16.msra.mxu0 %v3822_v1  ;;  %v1812_v1 = vld [vmem:[#allocation10 + $0x428] sm:$0xff] }
  0xdd   : > { %3824 = vmatprep.subr.bf16.mxu0 %v5804_v53  ;;  %3883 = vmatpush1.bf16.msra.mxu1 %v3882_v40  ;;  %v3991_v2 = vpack.c.bf16 %v1812_v1, %v1811_v63  ;;  %v1745_v40 = vld [vmem:[#allocation10 + $0x210] sm:$0xff] }
  0xde   : > { %3884 = vmatprep.subr.bf16.mxu1 %v5804_v53 }
  0xdf   : > { %548 = vmatmul.mubr.f32.gmra.mrb[22].mxu0 %v352_v7  ;;  %v1816_v7 = vld [vmem:[#allocation10 + $0x448] sm:$0xff] }
  0xe0   : > { %553 = vmatprep.mubr.f32.mxu0 %v4524_v0  ;;  %3826 = vmatpush1.bf16.msra.mxu0 %v3825_v8 }
  0xe1   : > { %3827 = vmatprep.subr.bf16.mxu0 %v5804_v53  ;;  %3886 = vmatpush1.bf16.msra.mxu1 %v3885_v44 }
  0xe2   : > { %3887 = vmatprep.subr.bf16.mxu1 %v5804_v53 }
  0xe3   : > { %554 = vmatmul.mubr.f32.gmra.mrb[24].mxu0 %v353_v14  ;;  %v405_v14 = vld [vmem:[%s5794_s2] sm:$0x3] }
  0xe4   : > { %559 = vmatprep.mubr.f32.mxu0 %v4524_v0  ;;  %3829 = vmatpush1.bf16.msra.mxu0 %v3828_v15  ;;  %v1819_v15 = vld [vmem:[#allocation10 + $0x460] sm:$0xff] }
  0xe5   : > { %3830 = vmatprep.subr.bf16.mxu0 %v5804_v53  ;;  %v4007_v17 = vpack.c.bf16 %v1820_v16, %v1819_v15 }
  0xe7   : > { %560 = vmatmul.mubr.f32.gmra.mrb[26].mxu0 %v354_v18  ;;  %v4934_v18 = vrot.slane %v405_v14, %v409_v13  ;;  %v1753_v13 = vld [vmem:[#allocation10 + $0x250] sm:$0xff]  ;;  %v1754_v14 = vld [vmem:[#allocation10 + $0x258] sm:$0xff] }
  0xe8   : > { %565 = vmatprep.mubr.f32.mxu0 %v4524_v0  ;;  %3832 = vmatpush1.bf16.msra.mxu0 %v3831_v19  ;;  %v1821_v19 = vld [vmem:[#allocation10 + $0x470] sm:$0xff] }
  0xe9   : > { %3833 = vmatprep.subr.bf16.mxu0 %v5804_v53  ;;  %v4011_v21 = vpack.c.bf16 %v1822_v20, %v1821_v19  ;;  %v3903_v20 = vpack.c.bf16 %v1754_v14, %v1753_v13 }
  0xeb   : > { %566 = vmatmul.mubr.f32.gmra.mrb[28].mxu0 %v355_v22 }
  0xec   : > { %571 = vmatprep.mubr.f32.mxu0 %v4524_v0  ;;  %3835 = vmatpush1.bf16.msra.mxu0 %v3834_v23 }
  0xed   : > { %3836 = vmatprep.subr.bf16.mxu0 %v5804_v53 }
  0xef   : > { %572 = vmatmul.mubr.f32.gmra.mrb[30].mxu0 %v356_v24 }
  0xf0   : > { %577 = vmatprep.mubr.f32.mxu0 %v4524_v0  ;;  %3838 = vmatpush1.bf16.msra.mxu0 %v3837_v32  ;;  %v1744_v32 = vld [vmem:[#allocation10 + $0x208] sm:$0xff] }
  0xf1   : > { %3984 = vmatprep.subr.bf16.mxu0 %v3983_v59 }
  0xf3   : > { %578 = vmatmul.mubr.f32.gmra.mrb[32].mxu0 %v357_v25 }
  0xf4   : > { %583 = vmatprep.mubr.f32.mxu0 %v4524_v0 }
  0xf7   : > { %584 = vmatmul.mubr.f32.gmra.mrb[34].mxu0 %v358_v26 }
  0xf8   : > { %589 = vmatprep.mubr.f32.mxu0 %v4524_v0 }
  0xfb   : > { %590 = vmatmul.mubr.f32.gmra.mrb[36].mxu0 %v359_v27 }
  0xfc   : > { %595 = vmatprep.mubr.f32.mxu0 %v4524_v0 }
  0xff   : > { %596 = vmatmul.mubr.f32.gmra.mrb[38].mxu0 %v360_v28 }
 0x100   : > { %601 = vmatprep.mubr.f32.mxu0 %v4524_v0 }
 0x103   : > { %602 = vmatmul.mubr.f32.gmra.mrb[40].mxu0 %v361_v29 }
 0x104   : > { %607 = vmatprep.mubr.f32.mxu0 %v4524_v0 }
 0x107   : > { %608 = vmatmul.mubr.f32.gmra.mrb[42].mxu0 %v362_v33 }
 0x108   : > { %613 = vmatprep.mubr.f32.mxu0 %v4524_v0 }
 0x10b   : > { %614 = vmatmul.mubr.f32.gmra.mrb[44].mxu0 %v363_v37  ;;  %v3888_v37 = vpack.c.bf16 %v1744_v32, %v1743_v31 }
 0x10c   : > { %619 = vmatprep.mubr.f32.mxu0 %v4524_v0 }
 0x10f   : > { %620 = vmatmul.mubr.f32.gmra.mrb[46].mxu0 %v364_v41  ;;  %v1746_v41 = vld [vmem:[#allocation10 + $0x218] sm:$0xff] }
 0x110   : > { %625 = vmatprep.mubr.f32.mxu0 %v4524_v0 }
 0x113   : > { %626 = vmatmul.mubr.f32.gmra.mrb[48].mxu0 %v365_v45  ;;  %v943_v45 = vld [vmem:[#allocation2 + $0xa] sm:$0xff] }
 0x114   : > { %631 = vmatprep.mubr.f32.mxu0 %v4524_v0 }
 0x117   : > { %632 = vmatmul.mubr.f32.gmra.mrb[50].mxu0 %v366_v46  ;;  %v3891_v46 = vpack.c.bf16 %v1746_v41, %v1745_v40 }
 0x118   : > { %637 = vmatprep.mubr.f32.mxu0 %v4524_v0 }
 0x11b   : > { %638 = vmatmul.mubr.f32.gmra.mrb[52].mxu0 %v367_v47 }
 0x11c   : > { %643 = vmatprep.mubr.f32.mxu0 %v4524_v0 }
 0x11f   : > { %644 = vmatmul.mubr.f32.gmra.mrb[54].mxu0 %v368_v48 }
 0x120   : > { %649 = vmatprep.mubr.f32.mxu0 %v4524_v0 }
 0x123   : > { %650 = vmatmul.mubr.f32.gmra.mrb[56].mxu0 %v369_v49  ;;  %v1747_v49 = vld [vmem:[#allocation10 + $0x220] sm:$0xff] }
 0x124   : > { %655 = vmatprep.mubr.f32.mxu0 %v4524_v0 }
 0x127   : > { %656 = vmatmul.mubr.f32.gmra.mrb[58].mxu0 %v370_v50  ;;  %v1748_v50 = vld [vmem:[#allocation10 + $0x228] sm:$0xff] }
 0x128   : > { %661 = vmatprep.mubr.f32.mxu0 %v4524_v0 }
 0x12b   : > { %662 = vmatmul.mubr.f32.gmra.mrb[60].mxu0 %v371_v51 }
 0x12c   : > { %667 = vmatprep.mubr.f32.mxu0 %v4524_v0 }
 0x12f   : > { %668 = vmatmul.mubr.f32.gmra.mrb[62].mxu0 %v372_v52 }
 0x130   : > { %1894 = vmatprep.mubr.f32.mxu0 %v878_v54 }
 0x133   : > { %1895 = vmatmul.mubr.f32.vlgmr.msra.gmra.mrb[64].mxu0 %v814_v55  ;;  %v3894_v55 = vpack.c.bf16 %v1748_v50, %v1747_v49 }
 0x134   : > { %1899 = vmatprep.mubr.f32.mxu0 %v879_v56  ;;  %3986 = vmatpush3.bf16.msra.mxu0 %v3983_v59  ;;  %v1750_v59 = vld [vmem:[#allocation10 + $0x238] sm:$0xff] }
 0x135   : > { %3988 = vmatprep.subr.bf16.mxu0 %v3987_v62  ;;  %v3897_v1 = vpack.c.bf16 %v1750_v59, %v1749_v58 }
 0x137   : > { %1900 = vmatmul.mubr.f32.gmra.mrb[66].mxu0 %v4524_v0  ;;  %v1815_v0 = vld [vmem:[#allocation10 + $0x440] sm:$0xff] }
 0x138   : > { %3990 = vmatpush3.bf16.msra.mxu0 %v3987_v62  ;;  %v3999_v8 = vpack.c.bf16 %v1816_v7, %v1815_v0 }
 0x139   : > { %3992 = vmatprep.subr.bf16.mxu0 %v3991_v2 }
 0x13c   : > { %3994 = vmatpush3.bf16.msra.mxu0 %v3991_v2 }
 0x13d   : > { %3996 = vmatprep.subr.bf16.mxu0 %v3995_v5 }
 0x140   : > { %3998 = vmatpush3.bf16.msra.mxu0 %v3995_v5  ;;  %v1752_v5 = vld [vmem:[#allocation10 + $0x248] sm:$0xff] }
 0x141   : > { %4000 = vmatprep.subr.bf16.mxu0 %v3999_v8  ;;  %v3900_v10 = vpack.c.bf16 %v1752_v5, %v1751_v4  ;;  %v1763_v4 = vld [vmem:[#allocation10 + $0x2a0] sm:$0xff]  ;;  %v1764_v5 = vld [vmem:[#allocation10 + $0x2a8] sm:$0xff] }
 0x144   : > { %4002 = vmatpush3.bf16.msra.mxu0 %v3999_v8 }
 0x145   : > { %4004 = vmatprep.subr.bf16.mxu0 %v4003_v12 }
 0x148   : > { %4006 = vmatpush3.bf16.msra.mxu0 %v4003_v12 }
 0x149   : > { %4008 = vmatprep.subr.bf16.mxu0 %v4007_v17 }
 0x14c   : > { %4010 = vmatpush3.bf16.msra.mxu0 %v4007_v17 }
 0x14d   : > { %4012 = vmatprep.subr.bf16.mxu0 %v4011_v21 }
 0x150   : > { %4014 = vmatpush3.bf16.msra.mxu0 %v4011_v21 }
 0x186   : > { %v483_v22 = vpop.f32.mrb[0].mxu0 }
 0x187   : > { %v484_v23 = vadd.f32 %v483_v22, %v4934_v18  ;;  %v4937_v24 = vpop.f32.mrb[1].mxu0 }
 0x188   : > { %5827 = vst [vmem:[#allocation20_spill] sm:$0xff] %v4937_v24  ;;  %v1780_v24 = vld [vmem:[#allocation10 + $0x328] sm:$0xff] }
 0x189   : > { %v706_v25 = vmax.f32 %v484_v23, 0.0  ;;  %v1755_v23 = vld [vmem:[#allocation10 + $0x260] sm:$0xff] }
 0x18a   : > { %v489_v26 = vpop.f32.mrb[2].mxu0 }
 0x18b   : > { %782 = vst [vmem:[#allocation2 + $0x19] sm:$0xff] %v706_v25  ;;  %v490_v27 = vadd.f32 %v489_v26, %v4934_v18  ;;  %v4940_v28 = vpop.f32.mrb[3].mxu0  ;;  %1904 = vmatprep.mubr.f32.mxu0 %v706_v25  ;;  %v1756_v25 = vld [vmem:[#allocation10 + $0x268] sm:$0xff] }
 0x18c   : > { %5828 = vst [vmem:[#allocation21_spill] sm:$0xff] %v4940_v28  ;;  %v3906_v31 = vpack.c.bf16 %v1756_v25, %v1755_v23 }
 0x18d   : > { %v707_v29 = vmax.f32 %v490_v27, 0.0 }
 0x18e   : > { %v495_v30 = vpop.f32.mrb[4].mxu0 }
 0x18f   : > { %783 = vst [vmem:[#allocation2 + $0x21] sm:$0xff] %v707_v29  ;;  %v496_v33 = vadd.f32 %v495_v30, %v4934_v18  ;;  %v4943_v34 = vpop.f32.mrb[5].mxu0 }
 0x190   : > { %5829 = vst [vmem:[#allocation22_spill] sm:$0xff] %v4943_v34  ;;  %v5859_v34 = vmov 0.0|0.0  }
 0x191   : > { %v708_v35 = vmax.f32 %v496_v33, 0.0 }
 0x192   : > { %v501_v38 = vpop.f32.mrb[6].mxu0  ;;  %v1006_v39 = vld [vmem:[#allocation2 + $0x18] sm:$0xff] }
 0x193   : > { %784 = vst [vmem:[#allocation2 + $0x31] sm:$0xff] %v708_v35  ;;  %v502_v42 = vadd.f32 %v501_v38, %v4934_v18  ;;  %v4946_v43 = vpop.f32.mrb[7].mxu0  ;;  %2119 = vmatprep.mubr.f32.mxu1 %v1006_v39  ;;  %1905 = vmatmul.mubr.f32.gmra.mrb[68].mxu0 %v1006_v39 }
 0x194   : > { %5830 = vst [vmem:[#allocation23_spill] sm:$0xff] %v4946_v43  ;;  %2120 = vmatmul.mubr.f32.vlgmr.msra.gmra.mrb[0].mxu1 %v942_v36  ;;  %1909 = vmatprep.mubr.f32.mxu0 %v707_v29  ;;  %v1758_v36 = vld [vmem:[#allocation10 + $0x278] sm:$0xff]  ;;  %v1779_v43 = vld [vmem:[#allocation10 + $0x320] sm:$0xff] }
 0x195   : > { %v709_v44 = vmax.f32 %v502_v42, 0.0  ;;  %3889 = vmatpush1.bf16.msra.mxu1 %v3888_v37 }
 0x196   : > { %v507_v47 = vpop.f32.mrb[8].mxu0  ;;  %v1007_v48 = vld [vmem:[#allocation2 + $0x20] sm:$0xff]  ;;  %3890 = vmatprep.subr.bf16.mxu1 %v5804_v53 }
 0x197   : > { %785 = vst [vmem:[#allocation2 + $0x39] sm:$0xff] %v709_v44  ;;  %v508_v51 = vadd.f32 %v507_v47, %v4934_v18  ;;  %v4950_v52 = vpop.f32.mrb[9].mxu0  ;;  %2124 = vmatprep.mubr.f32.mxu1 %v1007_v48  ;;  %1910 = vmatmul.mubr.f32.gmra.mrb[70].mxu0 %v1007_v48  ;;  %v4956_v62 = vld [vmem:[#allocation2 + $0x1a] sm:$0xff]  ;;  %v4963_v7 = vld [vmem:[#allocation2 + $0x22] sm:$0xff] }
 0x198   : > { %5831 = vst [vmem:[#allocation24_spill] sm:$0xff] %v4950_v52  ;;  %2125 = vmatmul.mubr.f32.gmra.mrb[2].mxu1 %v943_v45  ;;  %1914 = vmatprep.mubr.f32.mxu0 %v708_v35  ;;  %v1757_v35 = vld [vmem:[#allocation10 + $0x270] sm:$0xff]  ;;  %v1759_v45 = vld [vmem:[#allocation10 + $0x280] sm:$0xff] }
 0x199   : > { %v710_v54 = vmax.f32 %v508_v51, 0.0  ;;  %3892 = vmatpush1.bf16.msra.mxu1 %v3891_v46  ;;  %v3909_v41 = vpack.c.bf16 %v1758_v36, %v1757_v35  ;;  %v1760_v46 = vld [vmem:[#allocation10 + $0x288] sm:$0xff]  ;;  %v1071_v28 = vld [vmem:[#allocation2 + $0x21] sm:$0xff] }
 0x19a   : > { %v513_v56 = vpop.f32.mrb[10].mxu0  ;;  %v1008_v57 = vld [vmem:[#allocation2 + $0x30] sm:$0xff]  ;;  %3893 = vmatprep.subr.bf16.mxu1 %v5804_v53  ;;  %v3912_v51 = vpack.c.bf16 %v1760_v46, %v1759_v45  ;;  %v1770_v45 = vld [vmem:[#allocation10 + $0x2d8] sm:$0xff]  ;;  %v1070_v52 = vld [vmem:[#allocation2 + $0x19] sm:$0xff] }
 0x19b   : > { %786 = vst [vmem:[#allocation2 + $0x49] sm:$0xff] %v710_v54  ;;  %v514_v60 = vadd.f32 %v513_v56, %v4934_v18  ;;  %v4954_v61 = vpop.f32.mrb[11].mxu0  ;;  %2129 = vmatprep.mubr.f32.mxu1 %v1008_v57  ;;  %1915 = vmatmul.mubr.f32.gmra.mrb[72].mxu0 %v1008_v57  ;;  %v1761_v56 = vld [vmem:[#allocation10 + $0x290] sm:$0xff]  ;;  %v1762_v57 = vld [vmem:[#allocation10 + $0x298] sm:$0xff] }
 0x19c   : > { %5832 = vst [vmem:[#allocation25_spill] sm:$0xff] %v4954_v61  ;;  %2130 = vmatmul.mubr.f32.gmra.mrb[4].mxu1 %v4956_v62  ;;  %1919 = vmatprep.mubr.f32.mxu0 %v709_v44 }
 0x19d   : > { %v711_v63 = vmax.f32 %v514_v60, 0.0  ;;  %3895 = vmatpush1.bf16.msra.mxu1 %v3894_v55 }
 0x19e   : > { %v519_v2 = vpop.f32.mrb[12].mxu0  ;;  %v1009_v3 = vld [vmem:[#allocation2 + $0x38] sm:$0xff]  ;;  %3896 = vmatprep.subr.bf16.mxu1 %v5804_v53 }
 0x19f   : > { %787 = vst [vmem:[#allocation2 + $0x51] sm:$0xff] %v711_v63  ;;  %v520_v6 = vadd.f32 %v519_v2, %v4934_v18  ;;  %v4961_v0 = vpop.f32.mrb[13].mxu0  ;;  %2134 = vmatprep.mubr.f32.mxu1 %v1009_v3  ;;  %1920 = vmatmul.mubr.f32.gmra.mrb[74].mxu0 %v1009_v3  ;;  %v4970_v17 = vld [vmem:[#allocation2 + $0x32] sm:$0xff]  ;;  %v4977_v29 = vld [vmem:[#allocation2 + $0x3a] sm:$0xff] }
 0x1a0   : > { %5833 = vst [vmem:[#allocation26_spill] sm:$0xff] %v4961_v0  ;;  %2135 = vmatmul.mubr.f32.gmra.mrb[6].mxu1 %v4963_v7  ;;  %1924 = vmatprep.mubr.f32.mxu0 %v710_v54  ;;  %v1777_v0 = vld [vmem:[#allocation10 + $0x310] sm:$0xff] }
 0x1a1   : > { %v712_v8 = vmax.f32 %v520_v6, 0.0  ;;  %3898 = vmatpush1.bf16.msra.mxu1 %v3897_v1  ;;  %v3915_v1 = vpack.c.bf16 %v1762_v57, %v1761_v56  ;;  %v1771_v57 = vld [vmem:[#allocation10 + $0x2e0] sm:$0xff] }
 0x1a2   : > { %v525_v11 = vpop.f32.mrb[14].mxu0  ;;  %v1010_v12 = vld [vmem:[#allocation2 + $0x48] sm:$0xff]  ;;  %3899 = vmatprep.subr.bf16.mxu1 %v5804_v53 }
 0x1a3   : > { %788 = vst [vmem:[#allocation2 + $0x61] sm:$0xff] %v712_v8  ;;  %v526_v15 = vadd.f32 %v525_v11, %v4934_v18  ;;  %v4968_v16 = vpop.f32.mrb[15].mxu0  ;;  %2139 = vmatprep.mubr.f32.mxu1 %v1010_v12  ;;  %1925 = vmatmul.mubr.f32.gmra.mrb[76].mxu0 %v1010_v12  ;;  %v3918_v12 = vpack.c.bf16 %v1764_v5, %v1763_v4 }
 0x1a4   : > { %5834 = vst [vmem:[#allocation27_spill] sm:$0xff] %v4968_v16  ;;  %2140 = vmatmul.mubr.f32.gmra.mrb[8].mxu1 %v4970_v17  ;;  %1929 = vmatprep.mubr.f32.mxu0 %v711_v63  ;;  %v1778_v16 = vld [vmem:[#allocation10 + $0x318] sm:$0xff] }
 0x1a5   : > { %v713_v19 = vmax.f32 %v526_v15, 0.0  ;;  %3901 = vmatpush1.bf16.msra.mxu1 %v3900_v10  ;;  %v1765_v15 = vld [vmem:[#allocation10 + $0x2b0] sm:$0xff]  ;;  %v3939_v61 = vpack.c.bf16 %v1778_v16, %v1777_v0 }
 0x1a6   : > { %v531_v21 = vpop.f32.mrb[16].mxu0  ;;  %v1011_v22 = vld [vmem:[#allocation2 + $0x50] sm:$0xff]  ;;  %3902 = vmatprep.subr.bf16.mxu1 %v5804_v53  ;;  %v1785_v16 = vld [vmem:[#allocation10 + $0x350] sm:$0xff] }
 0x1a7   : > { %789 = vst [vmem:[#allocation2 + $0x69] sm:$0xff] %v713_v19  ;;  %v532_v26 = vadd.f32 %v531_v21, %v4934_v18  ;;  %v4975_v27 = vpop.f32.mrb[17].mxu0  ;;  %2144 = vmatprep.mubr.f32.mxu1 %v1011_v22  ;;  %1930 = vmatmul.mubr.f32.gmra.mrb[78].mxu0 %v1011_v22  ;;  %v4984_v39 = vld [vmem:[#allocation2 + $0x4a] sm:$0xff]  ;;  %v4991_v49 = vld [vmem:[#allocation2 + $0x52] sm:$0xff] }
 0x1a8   : > { %5835 = vst [vmem:[#allocation28_spill] sm:$0xff] %v4975_v27  ;;  %2145 = vmatmul.mubr.f32.gmra.mrb[10].mxu1 %v4977_v29  ;;  %1934 = vmatprep.mubr.f32.mxu0 %v712_v8  ;;  %v1776_v27 = vld [vmem:[#allocation10 + $0x308] sm:$0xff] }
 0x1a9   : > { %v714_v30 = vmax.f32 %v532_v26, 0.0  ;;  %3904 = vmatpush1.bf16.msra.mxu1 %v3903_v20 }
 0x1aa   : > { %v537_v32 = vpop.f32.mrb[18].mxu0  ;;  %v1012_v33 = vld [vmem:[#allocation2 + $0x60] sm:$0xff]  ;;  %3905 = vmatprep.subr.bf16.mxu1 %v5804_v53 }
 0x1ab   : > { %790 = vst [vmem:[#allocation2 + $0x79] sm:$0xff] %v714_v30  ;;  %v538_v37 = vadd.f32 %v537_v32, %v4934_v18  ;;  %v4982_v38 = vpop.f32.mrb[19].mxu0  ;;  %2149 = vmatprep.mubr.f32.mxu1 %v1012_v33  ;;  %1935 = vmatmul.mubr.f32.gmra.mrb[80].mxu0 %v1012_v33  ;;  %v1768_v32 = vld [vmem:[#allocation10 + $0x2c8] sm:$0xff] }
 0x1ac   : > { %5836 = vst [vmem:[#allocation29_spill] sm:$0xff] %v4982_v38  ;;  %2150 = vmatmul.mubr.f32.gmra.mrb[12].mxu1 %v4984_v39  ;;  %1939 = vmatprep.mubr.f32.mxu0 %v713_v19  ;;  %v1766_v19 = vld [vmem:[#allocation10 + $0x2b8] sm:$0xff] }
 0x1ad   : > { %v715_v40 = vmax.f32 %v538_v37, 0.0  ;;  %3907 = vmatpush1.bf16.msra.mxu1 %v3906_v31  ;;  %v3921_v25 = vpack.c.bf16 %v1766_v19, %v1765_v15  ;;  %v1767_v31 = vld [vmem:[#allocation10 + $0x2c0] sm:$0xff] }
 0x1ae   : > { %v543_v42 = vpop.f32.mrb[20].mxu0  ;;  %v1013_v44 = vld [vmem:[#allocation2 + $0x68] sm:$0xff]  ;;  %3908 = vmatprep.subr.bf16.mxu1 %v5804_v53 }
 0x1af   : > { %791 = vst [vmem:[#allocation2 + $0x81] sm:$0xff] %v715_v40  ;;  %v544_v47 = vadd.f32 %v543_v42, %v4934_v18  ;;  %v4989_v48 = vpop.f32.mrb[21].mxu0  ;;  %2154 = vmatprep.mubr.f32.mxu1 %v1013_v44  ;;  %1940 = vmatmul.mubr.f32.gmra.mrb[82].mxu0 %v1013_v44  ;;  %v4998_v60 = vld [vmem:[#allocation2 + $0x62] sm:$0xff]  ;;  %v5005_v10 = vld [vmem:[#allocation2 + $0x6a] sm:$0xff] }
 0x1b0   : > { %5837 = vst [vmem:[#allocation30_spill] sm:$0xff] %v4989_v48  ;;  %2155 = vmatmul.mubr.f32.gmra.mrb[14].mxu1 %v4991_v49  ;;  %1944 = vmatprep.mubr.f32.mxu0 %v714_v30  ;;  %v1769_v44 = vld [vmem:[#allocation10 + $0x2d0] sm:$0xff] }
 0x1b1   : > { %v716_v50 = vmax.f32 %v544_v47, 0.0  ;;  %3910 = vmatpush1.bf16.msra.mxu1 %v3909_v41 }
 0x1b2   : > { %v549_v54 = vpop.f32.mrb[22].mxu0  ;;  %v1014_v55 = vld [vmem:[#allocation2 + $0x78] sm:$0xff]  ;;  %3911 = vmatprep.subr.bf16.mxu1 %v5804_v53 }
 0x1b3   : > { %792 = vst [vmem:[#allocation2 + $0x91] sm:$0xff] %v716_v50  ;;  %v550_v58 = vadd.f32 %v549_v54, %v4934_v18  ;;  %v4996_v59 = vpop.f32.mrb[23].mxu0  ;;  %2159 = vmatprep.mubr.f32.mxu1 %v1014_v55  ;;  %1945 = vmatmul.mubr.f32.gmra.mrb[84].mxu0 %v1014_v55  ;;  %v3927_v54 = vpack.c.bf16 %v1770_v45, %v1769_v44 }
 0x1b4   : > { %5838 = vst [vmem:[#allocation31_spill] sm:$0xff] %v4996_v59  ;;  %2160 = vmatmul.mubr.f32.gmra.mrb[16].mxu1 %v4998_v60  ;;  %1949 = vmatprep.mubr.f32.mxu0 %v715_v40  ;;  %v3924_v40 = vpack.c.bf16 %v1768_v32, %v1767_v31 }
 0x1b5   : > { %v717_v63 = vmax.f32 %v550_v58, 0.0  ;;  %3913 = vmatpush1.bf16.msra.mxu1 %v3912_v51  ;;  %v1772_v58 = vld [vmem:[#allocation10 + $0x2e8] sm:$0xff] }
 0x1b6   : > { %v555_v2 = vpop.f32.mrb[24].mxu0  ;;  %v1015_v3 = vld [vmem:[#allocation2 + $0x80] sm:$0xff]  ;;  %3914 = vmatprep.subr.bf16.mxu1 %v5804_v53  ;;  %v3930_v4 = vpack.c.bf16 %v1772_v58, %v1771_v57 }
 0x1b7   : > { %793 = vst [vmem:[#allocation2 + $0x99] sm:$0xff] %v717_v63  ;;  %v556_v6 = vadd.f32 %v555_v2, %v4934_v18  ;;  %v5003_v8 = vpop.f32.mrb[25].mxu0  ;;  %2164 = vmatprep.mubr.f32.mxu1 %v1015_v3  ;;  %1950 = vmatmul.mubr.f32.gmra.mrb[86].mxu0 %v1015_v3  ;;  %v5012_v22 = vld [vmem:[#allocation2 + $0x7a] sm:$0xff]  ;;  %v5019_v36 = vld [vmem:[#allocation2 + $0x82] sm:$0xff] }
 0x1b8   : > { %5839 = vst [vmem:[#allocation32_spill] sm:$0xff] %v5003_v8  ;;  %2165 = vmatmul.mubr.f32.gmra.mrb[18].mxu1 %v5005_v10  ;;  %1954 = vmatprep.mubr.f32.mxu0 %v716_v50 }
 0x1b9   : > { %v718_v11 = vmax.f32 %v556_v6, 0.0  ;;  %3916 = vmatpush1.bf16.msra.mxu1 %v3915_v1 }
 0x1ba   : > { %v561_v13 = vpop.f32.mrb[26].mxu0  ;;  %v1016_v14 = vld [vmem:[#allocation2 + $0x90] sm:$0xff]  ;;  %3917 = vmatprep.subr.bf16.mxu1 %v5804_v53 }
 0x1bb   : > { %794 = vst [vmem:[#allocation2 + $0xa9] sm:$0xff] %v718_v11  ;;  %v562_v20 = vadd.f32 %v561_v13, %v4934_v18  ;;  %v5010_v21 = vpop.f32.mrb[27].mxu0  ;;  %2169 = vmatprep.mubr.f32.mxu1 %v1016_v14  ;;  %1955 = vmatmul.mubr.f32.gmra.mrb[88].mxu0 %v1016_v14 }
 0x1bc   : > { %5840 = vst [vmem:[#allocation33_spill] sm:$0xff] %v5010_v21  ;;  %2170 = vmatmul.mubr.f32.gmra.mrb[20].mxu1 %v5012_v22  ;;  %1959 = vmatprep.mubr.f32.mxu0 %v717_v63 }
 0x1bd   : > { %v719_v23 = vmax.f32 %v562_v20, 0.0  ;;  %3919 = vmatpush1.bf16.msra.mxu1 %v3918_v12  ;;  %v1774_v12 = vld [vmem:[#allocation10 + $0x2f8] sm:$0xff] }
 0x1be   : > { %v567_v26 = vpop.f32.mrb[28].mxu0  ;;  %v1017_v30 = vld [vmem:[#allocation2 + $0x98] sm:$0xff]  ;;  %3920 = vmatprep.subr.bf16.mxu1 %v5804_v53 }
 0x1bf   : > { %795 = vst [vmem:[#allocation2 + $0xb1] sm:$0xff] %v719_v23  ;;  %v568_v33 = vadd.f32 %v567_v26, %v4934_v18  ;;  %v5017_v35 = vpop.f32.mrb[29].mxu0  ;;  %2174 = vmatprep.mubr.f32.mxu1 %v1017_v30  ;;  %1960 = vmatmul.mubr.f32.gmra.mrb[90].mxu0 %v1017_v30  ;;  %v5029_v50 = vld [vmem:[#allocation2 + $0x92] sm:$0xff]  ;;  %v5039_v2 = vld [vmem:[#allocation2 + $0x9a] sm:$0xff] }
 0x1c0   : > { %5841 = vst [vmem:[#allocation34_spill] sm:$0xff] %v5017_v35  ;;  %2175 = vmatmul.mubr.f32.gmra.mrb[22].mxu1 %v5019_v36  ;;  %1964 = vmatprep.mubr.f32.mxu0 %v718_v11  ;;  %v1773_v11 = vld [vmem:[#allocation10 + $0x2f0] sm:$0xff] }
 0x1c1   : > { %v5022_v37 = vmax.f32 %v568_v33, 0.0  ;;  %3922 = vmatpush1.bf16.msra.mxu1 %v3921_v25  ;;  %v3933_v20 = vpack.c.bf16 %v1774_v12, %v1773_v11 }
 0x1c2   : > { %v573_v41 = vpop.f32.mrb[30].mxu0  ;;  %v1018_v42 = vld [vmem:[#allocation2 + $0xa8] sm:$0xff]  ;;  %3923 = vmatprep.subr.bf16.mxu1 %v5804_v53 }
 0x1c3   : > { %796 = vst [vmem:[#allocation2 + $0xc1] sm:$0xff] %v5022_v37  ;;  %v574_v46 = vadd.f32 %v573_v41, %v4934_v18  ;;  %v5027_v47 = vpop.f32.mrb[31].mxu0  ;;  %2179 = vmatprep.mubr.f32.mxu1 %v1018_v42  ;;  %1965 = vmatmul.mubr.f32.gmra.mrb[92].mxu0 %v1018_v42 }
 0x1c4   : > { %5842 = vst [vmem:[#allocation35_spill] sm:$0xff] %v5027_v47  ;;  %2180 = vmatmul.mubr.f32.gmra.mrb[24].mxu1 %v5029_v50  ;;  %1969 = vmatprep.mubr.f32.mxu0 %v719_v23 }
 0x1c5   : > { %v5032_v51 = vmax.f32 %v574_v46, 0.0  ;;  %3925 = vmatpush1.bf16.msra.mxu1 %v3924_v40 }
 0x1c6   : > { %v579_v55 = vpop.f32.mrb[32].mxu0  ;;  %v1019_v56 = vld [vmem:[#allocation2 + $0xb0] sm:$0xff]  ;;  %3926 = vmatprep.subr.bf16.mxu1 %v5804_v53 }
 0x1c7   : > { %797 = vst [vmem:[#allocation2 + $0xc9] sm:$0xff] %v5032_v51  ;;  %v580_v63 = vadd.f32 %v579_v55, %v4934_v18  ;;  %v5037_v1 = vpop.f32.mrb[33].mxu0  ;;  %2184 = vmatprep.mubr.f32.mxu1 %v1019_v56  ;;  %1970 = vmatmul.mubr.f32.gmra.mrb[94].mxu0 %v1019_v56  ;;  %v5050_v15 = vld [vmem:[#allocation2 + $0xaa] sm:$0xff]  ;;  %v5061_v31 = vld [vmem:[#allocation2 + $0xb2] sm:$0xff] }
 0x1c8   : > { %5843 = vst [vmem:[#allocation36_spill] sm:$0xff] %v5037_v1  ;;  %2185 = vmatmul.mubr.f32.gmra.mrb[26].mxu1 %v5039_v2  ;;  %1974 = vmatprep.mubr.f32.mxu0 %v5022_v37 }
 0x1c9   : > { %v5043_v3 = vmax.f32 %v580_v63, 0.0  ;;  %3928 = vmatpush1.bf16.msra.mxu1 %v3927_v54 }
 0x1ca   : > { %v585_v5 = vpop.f32.mrb[34].mxu0  ;;  %v1020_v6 = vld [vmem:[#allocation2 + $0xc0] sm:$0xff]  ;;  %3929 = vmatprep.subr.bf16.mxu1 %v5804_v53 }
 0x1cb   : > { %798 = vst [vmem:[#allocation2 + $0xd9] sm:$0xff] %v5043_v3  ;;  %v586_v13 = vadd.f32 %v585_v5, %v4934_v18  ;;  %v5048_v14 = vpop.f32.mrb[35].mxu0  ;;  %2189 = vmatprep.mubr.f32.mxu1 %v1020_v6  ;;  %1975 = vmatmul.mubr.f32.gmra.mrb[96].mxu0 %v1020_v6 }
 0x1cc   : > { %5844 = vst [vmem:[#allocation37_spill] sm:$0xff] %v5048_v14  ;;  %2190 = vmatmul.mubr.f32.gmra.mrb[28].mxu1 %v5050_v15  ;;  %1979 = vmatprep.mubr.f32.mxu0 %v5032_v51 }
 0x1cd   : > { %v5054_v19 = vmax.f32 %v586_v13, 0.0  ;;  %3931 = vmatpush1.bf16.msra.mxu1 %v3930_v4 }
 0x1ce   : > { %v591_v23 = vpop.f32.mrb[36].mxu0  ;;  %v1021_v25 = vld [vmem:[#allocation2 + $0xc8] sm:$0xff]  ;;  %3932 = vmatprep.subr.bf16.mxu1 %v5804_v53 }
 0x1cf   : > { %799 = vst [vmem:[#allocation2 + $0xe1] sm:$0xff] %v5054_v19  ;;  %v592_v26 = vadd.f32 %v591_v23, %v4934_v18  ;;  %v5059_v30 = vpop.f32.mrb[37].mxu0  ;;  %2194 = vmatprep.mubr.f32.mxu1 %v1021_v25  ;;  %1980 = vmatmul.mubr.f32.gmra.mrb[98].mxu0 %v1021_v25  ;;  %v5072_v44 = vld [vmem:[#allocation2 + $0xc2] sm:$0xff]  ;;  %v5082_v57 = vld [vmem:[#allocation2 + $0xca] sm:$0xff] }
 0x1d0   : > { %5845 = vst [vmem:[#allocation38_spill] sm:$0xff] %v5059_v30  ;;  %2195 = vmatmul.mubr.f32.gmra.mrb[30].mxu1 %v5061_v31  ;;  %1984 = vmatprep.mubr.f32.mxu0 %v5043_v3 }
 0x1d1   : > { %v5065_v32 = vmax.f32 %v592_v26, 0.0  ;;  %3934 = vmatpush1.bf16.msra.mxu1 %v3933_v20 }
 0x1d2   : > { %v597_v33 = vpop.f32.mrb[38].mxu0  ;;  %v1022_v40 = vld [vmem:[#allocation2 + $0xd8] sm:$0xff]  ;;  %3935 = vmatprep.subr.bf16.mxu1 %v5804_v53 }
 0x1d3   : > { %800 = vst [vmem:[#allocation2 + $0xf1] sm:$0xff] %v5065_v32  ;;  %v598_v41 = vadd.f32 %v597_v33, %v4934_v18  ;;  %v5070_v42 = vpop.f32.mrb[39].mxu0  ;;  %2199 = vmatprep.mubr.f32.mxu1 %v1022_v40  ;;  %1985 = vmatmul.mubr.f32.gmra.mrb[100].mxu0 %v1022_v40 }
 0x1d4   : > { %5846 = vst [vmem:[#allocation39_spill] sm:$0xff] %v5070_v42  ;;  %2200 = vmatmul.mubr.f32.gmra.mrb[32].mxu1 %v5072_v44  ;;  %1989 = vmatprep.mubr.f32.mxu0 %v5054_v19 }
 0x1d5   : > { %v5076_v45 = vmax.f32 %v598_v41, 0.0 }
 0x1d6   : > { %v603_v46 = vpop.f32.mrb[40].mxu0  ;;  %v1023_v54 = vld [vmem:[#allocation2 + $0xe0] sm:$0xff] }
 0x1d7   : > { %801 = vst [vmem:[#allocation2 + $0xf9] sm:$0xff] %v5076_v45  ;;  %v604_v55 = vadd.f32 %v603_v46, %v4934_v18  ;;  %v5080_v56 = vpop.f32.mrb[41].mxu0  ;;  %2204 = vmatprep.mubr.f32.mxu1 %v1023_v54  ;;  %1990 = vmatmul.mubr.f32.gmra.mrb[102].mxu0 %v1023_v54  ;;  %v5092_v11 = vld [vmem:[#allocation2 + $0xda] sm:$0xff]  ;;  %v5102_v26 = vld [vmem:[#allocation2 + $0xe2] sm:$0xff] }
 0x1d8   : > { %5847 = vst [vmem:[#allocation40_spill] sm:$0xff] %v5080_v56  ;;  %2205 = vmatmul.mubr.f32.gmra.mrb[34].mxu1 %v5082_v57  ;;  %1994 = vmatprep.mubr.f32.mxu0 %v5065_v32 }
 0x1d9   : > { %v5086_v58 = vmax.f32 %v604_v55, 0.0 }
 0x1da   : > { %v609_v63 = vpop.f32.mrb[42].mxu0  ;;  %v1024_v4 = vld [vmem:[#allocation2 + $0xf0] sm:$0xff] }
 0x1db   : > { %802 = vst [vmem:[#allocation2 + $0x109] sm:$0xff] %v5086_v58  ;;  %v610_v5 = vadd.f32 %v609_v63, %v4934_v18  ;;  %v5090_v6 = vpop.f32.mrb[43].mxu0  ;;  %2209 = vmatprep.mubr.f32.mxu1 %v1024_v4  ;;  %1995 = vmatmul.mubr.f32.gmra.mrb[104].mxu0 %v1024_v4 }
 0x1dc   : > { %5848 = vst [vmem:[#allocation41_spill] sm:$0xff] %v5090_v6  ;;  %2210 = vmatmul.mubr.f32.gmra.mrb[36].mxu1 %v5092_v11  ;;  %1999 = vmatprep.mubr.f32.mxu0 %v5076_v45 }
 0x1dd   : > { %v5096_v12 = vmax.f32 %v610_v5, 0.0 }
 0x1de   : > { %v615_v13 = vpop.f32.mrb[44].mxu0  ;;  %v1025_v20 = vld [vmem:[#allocation2 + $0xf8] sm:$0xff] }
 0x1df   : > { %803 = vst [vmem:[#allocation2 + $0x111] sm:$0xff] %v5096_v12  ;;  %v616_v23 = vadd.f32 %v615_v13, %v4934_v18  ;;  %v5100_v25 = vpop.f32.mrb[45].mxu0  ;;  %2214 = vmatprep.mubr.f32.mxu1 %v1025_v20  ;;  %2000 = vmatmul.mubr.f32.gmra.mrb[106].mxu0 %v1025_v20  ;;  %v5112_v55 = vld [vmem:[#allocation2 + $0xf2] sm:$0xff] }
 0x1e0   : > { %5849 = vst [vmem:[#allocation42_spill] sm:$0xff] %v5100_v25  ;;  %2215 = vmatmul.mubr.f32.gmra.mrb[38].mxu1 %v5102_v26  ;;  %2004 = vmatprep.mubr.f32.mxu0 %v5086_v58 }
 0x1e1   : > { %v5106_v33 = vmax.f32 %v616_v23, 0.0  ;;  %v5122_v23 = vld [vmem:[#allocation2 + $0xfa] sm:$0xff] }
 0x1e2   : > { %v621_v40 = vpop.f32.mrb[46].mxu0  ;;  %v1026_v41 = vld [vmem:[#allocation2 + $0x108] sm:$0xff] }
 0x1e3   : > { %804 = vst [vmem:[#allocation2 + $0x121] sm:$0xff] %v5106_v33  ;;  %v622_v46 = vadd.f32 %v621_v40, %v4934_v18  ;;  %v5110_v54 = vpop.f32.mrb[47].mxu0  ;;  %2219 = vmatprep.mubr.f32.mxu1 %v1026_v41  ;;  %2005 = vmatmul.mubr.f32.gmra.mrb[108].mxu0 %v1026_v41 }
 0x1e4   : > { %5850 = vst [vmem:[#allocation43_spill] sm:$0xff] %v5110_v54  ;;  %2220 = vmatmul.mubr.f32.gmra.mrb[40].mxu1 %v5112_v55  ;;  %2009 = vmatprep.mubr.f32.mxu0 %v5096_v12 }
 0x1e5   : > { %v5116_v63 = vmax.f32 %v622_v46, 0.0 }
 0x1e6   : > { %v627_v4 = vpop.f32.mrb[48].mxu0  ;;  %v1027_v5 = vld [vmem:[#allocation2 + $0x110] sm:$0xff] }
 0x1e7   : > { %805 = vst [vmem:[#allocation2 + $0x129] sm:$0xff] %v5116_v63  ;;  %v628_v13 = vadd.f32 %v627_v4, %v4934_v18  ;;  %v5120_v20 = vpop.f32.mrb[49].mxu0  ;;  %2224 = vmatprep.mubr.f32.mxu1 %v1027_v5  ;;  %2010 = vmatmul.mubr.f32.gmra.mrb[110].mxu0 %v1027_v5  ;;  %v5132_v4 = vld [vmem:[#allocation2 + $0x10a] sm:$0xff] }
 0x1e8   : > { %5851 = vst [vmem:[#allocation44_spill] sm:$0xff] %v5120_v20  ;;  %2225 = vmatmul.mubr.f32.gmra.mrb[42].mxu1 %v5122_v23  ;;  %2014 = vmatprep.mubr.f32.mxu0 %v5106_v33 }
 0x1e9   : > { %v5126_v40 = vmax.f32 %v628_v13, 0.0 }
 0x1ea   : > { %v633_v41 = vpop.f32.mrb[50].mxu0  ;;  %v1028_v46 = vld [vmem:[#allocation2 + $0x120] sm:$0xff] }
 0x1eb   : > { %806 = vst [vmem:[#allocation2 + $0x139] sm:$0xff] %v5126_v40  ;;  %v634_v53 = vadd.f32 %v633_v41, %v4934_v18  ;;  %v5130_v25 = vpop.f32.mrb[51].mxu0  ;;  %2229 = vmatprep.mubr.f32.mxu1 %v1028_v46  ;;  %2015 = vmatmul.mubr.f32.gmra.mrb[112].mxu0 %v1028_v46  ;;  %v5142_v41 = vld [vmem:[#allocation2 + $0x112] sm:$0xff] }
 0x1ec   : > { %5852 = vst [vmem:[#allocation45_spill] sm:$0xff] %v5130_v25  ;;  %2230 = vmatmul.mubr.f32.gmra.mrb[44].mxu1 %v5132_v4  ;;  %2019 = vmatprep.mubr.f32.mxu0 %v5116_v63 }
 0x1ed   : > { %v5136_v5 = vmax.f32 %v634_v53, 0.0 }
 0x1ee   : > { %v639_v13 = vpop.f32.mrb[52].mxu0  ;;  %v1029_v20 = vld [vmem:[#allocation2 + $0x128] sm:$0xff] }
 0x1ef   : > { %807 = vst [vmem:[#allocation2 + $0x141] sm:$0xff] %v5136_v5  ;;  %v640_v54 = vadd.f32 %v639_v13, %v4934_v18  ;;  %v5140_v56 = vpop.f32.mrb[53].mxu0  ;;  %2234 = vmatprep.mubr.f32.mxu1 %v1029_v20  ;;  %2020 = vmatmul.mubr.f32.gmra.mrb[114].mxu0 %v1029_v20  ;;  %v5152_v13 = vld [vmem:[#allocation2 + $0x122] sm:$0xff] }
 0x1f0   : > { %5853 = vst [vmem:[#allocation46_spill] sm:$0xff] %v5140_v56  ;;  %2235 = vmatmul.mubr.f32.gmra.mrb[46].mxu1 %v5142_v41  ;;  %2024 = vmatprep.mubr.f32.mxu0 %v5126_v40 }
 0x1f1   : > { %v5146_v46 = vmax.f32 %v640_v54, 0.0 }
 0x1f2   : > { %v645_v53 = vpop.f32.mrb[54].mxu0  ;;  %v1030_v25 = vld [vmem:[#allocation2 + $0x138] sm:$0xff] }
 0x1f3   : > { %808 = vst [vmem:[#allocation2 + $0x151] sm:$0xff] %v5146_v46  ;;  %v646_v6 = vadd.f32 %v645_v53, %v4934_v18  ;;  %v5150_v30 = vpop.f32.mrb[55].mxu0  ;;  %2239 = vmatprep.mubr.f32.mxu1 %v1030_v25  ;;  %2025 = vmatmul.mubr.f32.gmra.mrb[116].mxu0 %v1030_v25  ;;  %v5162_v53 = vld [vmem:[#allocation2 + $0x12a] sm:$0xff] }
 0x1f4   : > { %5854 = vst [vmem:[#allocation47_spill] sm:$0xff] %v5150_v30  ;;  %2240 = vmatmul.mubr.f32.gmra.mrb[48].mxu1 %v5152_v13  ;;  %2029 = vmatprep.mubr.f32.mxu0 %v5136_v5 }
 0x1f5   : > { %v5156_v20 = vmax.f32 %v646_v6, 0.0 }
 0x1f6   : > { %v651_v54 = vpop.f32.mrb[56].mxu0  ;;  %v1031_v56 = vld [vmem:[#allocation2 + $0x140] sm:$0xff] }
 0x1f7   : > { %809 = vst [vmem:[#allocation2 + $0x159] sm:$0xff] %v5156_v20  ;;  %v652_v42 = vadd.f32 %v651_v54, %v4934_v18  ;;  %v5160_v1 = vpop.f32.mrb[57].mxu0  ;;  %2244 = vmatprep.mubr.f32.mxu1 %v1031_v56  ;;  %2030 = vmatmul.mubr.f32.gmra.mrb[118].mxu0 %v1031_v56  ;;  %v5172_v54 = vld [vmem:[#allocation2 + $0x13a] sm:$0xff] }
 0x1f8   : > { %5855 = vst [vmem:[#allocation48_spill] sm:$0xff] %v5160_v1  ;;  %2245 = vmatmul.mubr.f32.gmra.mrb[50].mxu1 %v5162_v53  ;;  %2034 = vmatprep.mubr.f32.mxu0 %v5146_v46 }
 0x1f9   : > { %v5166_v25 = vmax.f32 %v652_v42, 0.0 }
 0x1fa   : > { %v657_v6 = vpop.f32.mrb[58].mxu0  ;;  %v1032_v30 = vld [vmem:[#allocation2 + $0x150] sm:$0xff] }
 0x1fb   : > { %810 = vst [vmem:[#allocation2 + $0x169] sm:$0xff] %v5166_v25  ;;  %v658_v14 = vadd.f32 %v657_v6, %v4934_v18  ;;  %v5170_v35 = vpop.f32.mrb[59].mxu0  ;;  %2249 = vmatprep.mubr.f32.mxu1 %v1032_v30  ;;  %2035 = vmatmul.mubr.f32.gmra.mrb[120].mxu0 %v1032_v30  ;;  %v5184_v30 = vld [vmem:[#allocation2 + $0x142] sm:$0xff] }
 0x1fc   : > { %5856 = vst [vmem:[#allocation49_spill] sm:$0xff] %v5170_v35  ;;  %2250 = vmatmul.mubr.f32.gmra.mrb[52].mxu1 %v5172_v54  ;;  %2039 = vmatprep.mubr.f32.mxu0 %v5156_v20 }
 0x1fd   : > { %v5176_v56 = vmax.f32 %v658_v14, 0.0 }
 0x1fe   : > { %v663_v42 = vpop.f32.mrb[60].mxu0  ;;  %v1033_v1 = vld [vmem:[#allocation2 + $0x158] sm:$0xff] }
 0x1ff   : > { %811 = vst [vmem:[#allocation2 + $0x171] sm:$0xff] %v5176_v56  ;;  %v5180_v47 = vadd.f32 %v663_v42, %v4934_v18  ;;  %v5182_v6 = vpop.f32.mrb[61].mxu0  ;;  %2254 = vmatprep.mubr.f32.mxu1 %v1033_v1  ;;  %2040 = vmatmul.mubr.f32.gmra.mrb[122].mxu0 %v1033_v1  ;;  %v5196_v1 = vld [vmem:[#allocation2 + $0x152] sm:$0xff] }
 0x200   : > { %5857 = vst [vmem:[#allocation50_spill] sm:$0xff] %v5182_v6  ;;  %2255 = vmatmul.mubr.f32.gmra.mrb[54].mxu1 %v5184_v30  ;;  %2044 = vmatprep.mubr.f32.mxu0 %v5166_v25 }
 0x201   : > { %v5806_v14 = vmax.f32 %v5180_v47, 0.0 }
 0x202   : > { %v669_v35 = vpop.f32.mrb[62].mxu0  ;;  %v1034_v8 = vld [vmem:[#allocation2 + $0x168] sm:$0xff] }
 0x203   : > { %812 = vst [vmem:[#allocation2 + $0x181] sm:$0xff] %v5806_v14  ;;  %v5192_v42 = vadd.f32 %v669_v35, %v4934_v18  ;;  %v5194_v21 = vpop.f32.mrb[63].mxu0  ;;  %2259 = vmatprep.mubr.f32.mxu1 %v1034_v8  ;;  %2045 = vmatmul.mubr.f32.gmra.mrb[124].mxu0 %v1034_v8  ;;  %v5205_v18 = vld [vmem:[#allocation2 + $0x15a] sm:$0xff] }
 0x204   : > { %5858 = vst [vmem:[#allocation51_spill] sm:$0xff] %v5194_v21  ;;  %2260 = vmatmul.mubr.f32.gmra.mrb[56].mxu1 %v5196_v1  ;;  %2049 = vmatprep.mubr.f32.mxu0 %v5176_v56 }
 0x205   : > { %v5807_v6 = vmax.f32 %v5192_v42, 0.0 }
 0x206   : > { %v1035_v48 = vld [vmem:[#allocation2 + $0x170] sm:$0xff]  ;;  %v5201_v59 = vpop.f32.mrb[64].mxu0 }
 0x207   : > { %813 = vst [vmem:[#allocation2 + $0x189] sm:$0xff] %v5807_v6  ;;  %2264 = vmatprep.mubr.f32.mxu1 %v1035_v48  ;;  %2050 = vmatmul.mubr.f32.gmra.mrb[126].mxu0 %v1035_v48  ;;  %v1898_v35 = vpop.f32.mrb[65].mxu0  ;;  %v5214_v21 = vld [vmem:[#allocation2 + $0x16a] sm:$0xff]  ;;  %v5222_v38 = vld [vmem:[#allocation2 + $0x172] sm:$0xff] }
 0x208   : > { %2265 = vmatmul.mubr.f32.gmra.mrb[58].mxu1 %v5205_v18  ;;  %3631 = vmatprep.mubr.f32.mxu0 %v4970_v17  ;;  %v1775_v35 = vld [vmem:[#allocation10 + $0x300] sm:$0xff] }
 0x20a   : > { %v5209_v8 = vld [vmem:[#allocation2 + $0x180] sm:$0xff]  ;;  %v5211_v14 = vpop.f32.mrb[66].mxu0 }
 0x20b   : > { %2269 = vmatprep.mubr.f32.mxu1 %v5209_v8  ;;  %3632 = vmatmul.mubr.f32.vlgmr.msra.gmra.mrb[128].mxu0 %v4977_v29  ;;  %v1903_v6 = vpop.f32.mrb[67].mxu0 }
 0x20c   : > { %2270 = vmatmul.mubr.f32.gmra.mrb[60].mxu1 %v5214_v21  ;;  %3634 = vmatprep.mubr.f32.mxu0 %v4984_v39  ;;  %v3936_v6 = vpack.c.bf16 %v1776_v27, %v1775_v35  ;;  %v1782_v27 = vld [vmem:[#allocation10 + $0x338] sm:$0xff] }
 0x20e   : > { %v5219_v48 = vld [vmem:[#allocation2 + $0x188] sm:$0xff] }
 0x20f   : > { %2274 = vmatprep.mubr.f32.mxu1 %v5219_v48  ;;  %3635 = vmatmul.mubr.f32.gmra.mrb[130].mxu0 %v4991_v49 }
 0x210   : > { %2275 = vmatmul.mubr.f32.gmra.mrb[62].mxu1 %v5222_v38  ;;  %3637 = vmatprep.mubr.f32.mxu0 %v4998_v60 }
 0x211   : > { %2344 = vmatprep.mubr.f32.mxu1 %v4956_v62  ;;  %v1781_v62 = vld [vmem:[#allocation10 + $0x330] sm:$0xff] }
 0x213   : > { %3638 = vmatmul.mubr.f32.gmra.mrb[132].mxu0 %v5005_v10 }
 0x214   : > { %2345 = vmatmul.mubr.f32.vlgmr.msra.gmra.mrb[0].mxu1 %v1070_v52  ;;  %3640 = vmatprep.mubr.f32.mxu0 %v5012_v22  ;;  %v3942_v52 = vpack.c.bf16 %v1780_v24, %v1779_v43  ;;  %v1784_v24 = vld [vmem:[#allocation10 + $0x348] sm:$0xff] }
 0x215   : > { %3937 = vmatpush1.bf16.msra.mxu1 %v3936_v6  ;;  %2349 = vmatprep.mubr.f32.mxu1 %v4963_v7  ;;  %v5236_v7 = vld [vmem:[#allocation2 + $0x31] sm:$0xff]  ;;  %v5243_v43 = vld [vmem:[#allocation2 + $0x39] sm:$0xff] }
 0x216   : > { %3938 = vmatprep.subr.bf16.mxu1 %v5859_v34  ;;  %v1788_v6 = vld [vmem:[#allocation10 + $0x368] sm:$0xff] }
 0x217   : > { %3641 = vmatmul.mubr.f32.gmra.mrb[134].mxu0 %v5019_v36 }
 0x218   : > { %2350 = vmatmul.mubr.f32.gmra.mrb[2].mxu1 %v1071_v28  ;;  %3643 = vmatprep.mubr.f32.mxu0 %v5029_v50  ;;  %v3945_v28 = vpack.c.bf16 %v1782_v27, %v1781_v62  ;;  %v1790_v27 = vld [vmem:[#allocation10 + $0x378] sm:$0xff] }
 0x219   : > { %2354 = vmatprep.mubr.f32.mxu1 %v4970_v17  ;;  %3940 = vmatpush1.bf16.msra.mxu1 %v3939_v61  ;;  %v1783_v61 = vld [vmem:[#allocation10 + $0x340] sm:$0xff]  ;;  %v1786_v17 = vld [vmem:[#allocation10 + $0x358] sm:$0xff] }
 0x21a   : > { %3941 = vmatprep.subr.bf16.mxu1 %v5859_v34  ;;  %v3948_v0 = vpack.c.bf16 %v1784_v24, %v1783_v61  ;;  %v3951_v35 = vpack.c.bf16 %v1786_v17, %v1785_v16  ;;  %v1792_v24 = vld [vmem:[#allocation10 + $0x388] sm:$0xff]  ;;  %v1794_v17 = vld [vmem:[#allocation10 + $0x398] sm:$0xff] }
 0x21b   : > { %3644 = vmatmul.mubr.f32.gmra.mrb[136].mxu0 %v5039_v2 }
 0x21c   : > { %2355 = vmatmul.mubr.f32.gmra.mrb[4].mxu1 %v5236_v7  ;;  %3646 = vmatprep.mubr.f32.mxu0 %v5050_v15 }
 0x21d   : > { %2359 = vmatprep.mubr.f32.mxu1 %v4977_v29  ;;  %3943 = vmatpush1.bf16.msra.mxu1 %v3942_v52  ;;  %v5250_v29 = vld [vmem:[#allocation2 + $0x49] sm:$0xff]  ;;  %v5257_v52 = vld [vmem:[#allocation2 + $0x51] sm:$0xff] }
 0x21e   : > { %3944 = vmatprep.subr.bf16.mxu1 %v5859_v34 }
 0x21f   : > { %3647 = vmatmul.mubr.f32.gmra.mrb[138].mxu0 %v5061_v31 }
 0x220   : > { %2360 = vmatmul.mubr.f32.gmra.mrb[6].mxu1 %v5243_v43  ;;  %3649 = vmatprep.mubr.f32.mxu0 %v5072_v44 }
 0x221   : > { %2364 = vmatprep.mubr.f32.mxu1 %v4984_v39  ;;  %3946 = vmatpush1.bf16.msra.mxu1 %v3945_v28  ;;  %v1787_v39 = vld [vmem:[#allocation10 + $0x360] sm:$0xff]  ;;  %v5264_v28 = vld [vmem:[#allocation2 + $0x61] sm:$0xff] }
 0x222   : > { %3947 = vmatprep.subr.bf16.mxu1 %v5859_v34  ;;  %v3954_v62 = vpack.c.bf16 %v1788_v6, %v1787_v39  ;;  %v1796_v6 = vld [vmem:[#allocation10 + $0x3a8] sm:$0xff] }
 0x223   : > { %3650 = vmatmul.mubr.f32.gmra.mrb[140].mxu0 %v5082_v57 }
 0x224   : > { %2365 = vmatmul.mubr.f32.gmra.mrb[8].mxu1 %v5250_v29  ;;  %3652 = vmatprep.mubr.f32.mxu0 %v5092_v11 }
 0x225   : > { %2369 = vmatprep.mubr.f32.mxu1 %v4991_v49  ;;  %3949 = vmatpush1.bf16.msra.mxu1 %v3948_v0  ;;  %v1789_v49 = vld [vmem:[#allocation10 + $0x370] sm:$0xff]  ;;  %v5271_v0 = vld [vmem:[#allocation2 + $0x69] sm:$0xff] }
 0x226   : > { %3950 = vmatprep.subr.bf16.mxu1 %v5859_v34  ;;  %v3957_v61 = vpack.c.bf16 %v1790_v27, %v1789_v49  ;;  %v1798_v27 = vld [vmem:[#allocation10 + $0x3b8] sm:$0xff] }
 0x227   : > { %3653 = vmatmul.mubr.f32.gmra.mrb[142].mxu0 %v5102_v26 }
 0x228   : > { %2370 = vmatmul.mubr.f32.gmra.mrb[10].mxu1 %v5257_v52  ;;  %3655 = vmatprep.mubr.f32.mxu0 %v5112_v55 }
 0x229   : > { %2374 = vmatprep.mubr.f32.mxu1 %v4998_v60  ;;  %3952 = vmatpush1.bf16.msra.mxu1 %v3951_v35  ;;  %v1791_v60 = vld [vmem:[#allocation10 + $0x380] sm:$0xff]  ;;  %v5278_v35 = vld [vmem:[#allocation2 + $0x79] sm:$0xff] }
 0x22a   : > { %3953 = vmatprep.subr.bf16.mxu1 %v5859_v34  ;;  %v3960_v16 = vpack.c.bf16 %v1792_v24, %v1791_v60  ;;  %v1800_v24 = vld [vmem:[#allocation10 + $0x3c8] sm:$0xff] }
 0x22b   : > { %3656 = vmatmul.mubr.f32.gmra.mrb[144].mxu0 %v5122_v23 }
 0x22c   : > { %2375 = vmatmul.mubr.f32.gmra.mrb[12].mxu1 %v5264_v28  ;;  %3658 = vmatprep.mubr.f32.mxu0 %v5132_v4 }
 0x22d   : > { %2379 = vmatprep.mubr.f32.mxu1 %v5005_v10  ;;  %3955 = vmatpush1.bf16.msra.mxu1 %v3954_v62  ;;  %v1793_v10 = vld [vmem:[#allocation10 + $0x390] sm:$0xff] }
 0x22e   : > { %3956 = vmatprep.subr.bf16.mxu1 %v5859_v34  ;;  %v3963_v39 = vpack.c.bf16 %v1794_v17, %v1793_v10  ;;  %v5285_v62 = vld [vmem:[#allocation2 + $0x81] sm:$0xff]  ;;  %v5307_v17 = vld [vmem:[#allocation2 + $0x18a] sm:$0xff] }
 0x22f   : > { %3659 = vmatmul.mubr.f32.gmra.mrb[146].mxu0 %v5142_v41  ;;  %v5302_v10 = vld [vmem:[#allocation2 + $0x182] sm:$0xff] }
 0x230   : > { %2380 = vmatmul.mubr.f32.gmra.mrb[14].mxu1 %v5271_v0  ;;  %3661 = vmatprep.mubr.f32.mxu0 %v5152_v13 }
 0x231   : > { %2384 = vmatprep.mubr.f32.mxu1 %v5012_v22  ;;  %3958 = vmatpush1.bf16.msra.mxu1 %v3957_v61  ;;  %v1795_v22 = vld [vmem:[#allocation10 + $0x3a0] sm:$0xff] }
 0x232   : > { %3959 = vmatprep.subr.bf16.mxu1 %v5859_v34  ;;  %v3966_v49 = vpack.c.bf16 %v1796_v6, %v1795_v22  ;;  %v5292_v61 = vld [vmem:[#allocation2 + $0x91] sm:$0xff]  ;;  %v1802_v22 = vld [vmem:[#allocation10 + $0x3d8] sm:$0xff] }
 0x233   : > { %3662 = vmatmul.mubr.f32.gmra.mrb[148].mxu0 %v5162_v53  ;;  %v5310_v6 = vld [vmem:[#allocation2 + $0xa9] sm:$0xff] }
 0x234   : > { %2385 = vmatmul.mubr.f32.gmra.mrb[16].mxu1 %v5278_v35  ;;  %3664 = vmatprep.mubr.f32.mxu0 %v5172_v54 }
 0x235   : > { %2389 = vmatprep.mubr.f32.mxu1 %v5019_v36  ;;  %3961 = vmatpush1.bf16.msra.mxu1 %v3960_v16  ;;  %v1797_v36 = vld [vmem:[#allocation10 + $0x3b0] sm:$0xff] }
 0x236   : > { %3962 = vmatprep.subr.bf16.mxu1 %v5859_v34  ;;  %v3969_v60 = vpack.c.bf16 %v1798_v27, %v1797_v36  ;;  %v5299_v16 = vld [vmem:[#allocation2 + $0x99] sm:$0xff]  ;;  %v5316_v27 = vld [vmem:[#allocation2 + $0xb1] sm:$0xff] }
 0x237   : > { %3665 = vmatmul.mubr.f32.gmra.mrb[150].mxu0 %v5184_v30  ;;  %v1804_v36 = vld [vmem:[#allocation10 + $0x3e8] sm:$0xff] }
 0x238   : > { %2390 = vmatmul.mubr.f32.gmra.mrb[18].mxu1 %v5285_v62  ;;  %3667 = vmatprep.mubr.f32.mxu0 %v5196_v1 }
 0x239   : > { %2394 = vmatprep.mubr.f32.mxu1 %v5029_v50  ;;  %3964 = vmatpush1.bf16.msra.mxu1 %v3963_v39  ;;  %v1799_v50 = vld [vmem:[#allocation10 + $0x3c0] sm:$0xff]  ;;  %v1801_v39 = vld [vmem:[#allocation10 + $0x3d0] sm:$0xff] }
 0x23a   : > { %3965 = vmatprep.subr.bf16.mxu1 %v5859_v34 }
 0x23b   : > { %3668 = vmatmul.mubr.f32.gmra.mrb[152].mxu0 %v5205_v18 }
 0x23c   : > { %2395 = vmatmul.mubr.f32.gmra.mrb[20].mxu1 %v5292_v61  ;;  %3670 = vmatprep.mubr.f32.mxu0 %v5214_v21 }
 0x23d   : > { %2399 = vmatprep.mubr.f32.mxu1 %v5039_v2  ;;  %3967 = vmatpush1.bf16.msra.mxu1 %v3966_v49  ;;  %v3972_v2 = vpack.c.bf16 %v1800_v24, %v1799_v50  ;;  %v3975_v49 = vpack.c.bf16 %v1802_v22, %v1801_v39  ;;  %v1805_v50 = vld [vmem:[#allocation10 + $0x3f0] sm:$0xff]  ;;  %v1806_v24 = vld [vmem:[#allocation10 + $0x3f8] sm:$0xff]  ;;  %v2992_v39 = vld [vmem:[#allocation11 + $0x28] sm:$0xff] }
 0x23e   : > { %3968 = vmatprep.subr.bf16.mxu1 %v5859_v34 }
 0x23f   : > { %3671 = vmatmul.mubr.f32.gmra.mrb[154].mxu0 %v5222_v38 }
 0x240   : > { %2400 = vmatmul.mubr.f32.gmra.mrb[22].mxu1 %v5299_v16  ;;  %3673 = vmatprep.mubr.f32.mxu0 %v5302_v10 }
 0x241   : > { %2404 = vmatprep.mubr.f32.mxu1 %v5050_v15  ;;  %3970 = vmatpush1.bf16.msra.mxu1 %v3969_v60  ;;  %v1803_v15 = vld [vmem:[#allocation10 + $0x3e0] sm:$0xff] }
 0x242   : > { %3971 = vmatprep.subr.bf16.mxu1 %v5859_v34  ;;  %v3978_v60 = vpack.c.bf16 %v1804_v36, %v1803_v15  ;;  %v2993_v36 = vld [vmem:[#allocation11 + $0x30] sm:$0xff] }
 0x243   : > { %3674 = vmatmul.mubr.f32.gmra.mrb[156].mxu0 %v5307_v17 }
 0x244   : > { %2405 = vmatmul.mubr.f32.gmra.mrb[24].mxu1 %v5310_v6 }
 0x245   : > { %2409 = vmatprep.mubr.f32.mxu1 %v5061_v31  ;;  %3973 = vmatpush1.bf16.msra.mxu1 %v3972_v2  ;;  %v3981_v31 = vpack.c.bf16 %v1806_v24, %v1805_v50 }
 0x246   : > { %3974 = vmatprep.subr.bf16.mxu1 %v5859_v34 }
 0x248   : > { %2410 = vmatmul.mubr.f32.gmra.mrb[26].mxu1 %v5316_v27 }
 0x249   : > { %2414 = vmatprep.mubr.f32.mxu1 %v5072_v44  ;;  %3976 = vmatpush1.bf16.msra.mxu1 %v3975_v49 }
 0x24a   : > { %3977 = vmatprep.subr.bf16.mxu1 %v5859_v34 }
 0x24c   : > { %2415 = vmatmul.mubr.f32.gmra.mrb[28].mxu1 %v5022_v37 }
 0x24d   : > { %2419 = vmatprep.mubr.f32.mxu1 %v5082_v57  ;;  %3979 = vmatpush1.bf16.msra.mxu1 %v3978_v60  ;;  %v2994_v60 = vld [vmem:[#allocation11 + $0x38] sm:$0xff] }
 0x24e   : > { %3980 = vmatprep.subr.bf16.mxu1 %v5859_v34 }
 0x250   : > { %2420 = vmatmul.mubr.f32.gmra.mrb[30].mxu1 %v5032_v51 }
 0x251   : > { %2424 = vmatprep.mubr.f32.mxu1 %v5092_v11  ;;  %3982 = vmatpush1.bf16.msra.mxu1 %v3981_v31  ;;  %v4027_v31 = vpack.c.bf16 %v2994_v60, %v2993_v36 }
 0x254   : > { %2425 = vmatmul.mubr.f32.gmra.mrb[32].mxu1 %v5043_v3 }
 0x255   : > { %2429 = vmatprep.mubr.f32.mxu1 %v5102_v26 }
 0x258   : > { %2430 = vmatmul.mubr.f32.gmra.mrb[34].mxu1 %v5054_v19 }
 0x259   : > { %2434 = vmatprep.mubr.f32.mxu1 %v5112_v55 }
 0x25c   : > { %2435 = vmatmul.mubr.f32.gmra.mrb[36].mxu1 %v5065_v32 }
 0x25d   : > { %2439 = vmatprep.mubr.f32.mxu1 %v5122_v23 }
 0x260   : > { %2440 = vmatmul.mubr.f32.gmra.mrb[38].mxu1 %v5076_v45 }
 0x261   : > { %2444 = vmatprep.mubr.f32.mxu1 %v5132_v4 }
 0x264   : > { %2445 = vmatmul.mubr.f32.gmra.mrb[40].mxu1 %v5086_v58 }
 0x265   : > { %2449 = vmatprep.mubr.f32.mxu1 %v5142_v41  ;;  %v5860_v41 = vmax.f32 %v5180_v47, 0.0 }
 0x266   : > { %v5336_v34 = vpop.f32.mrb[68].mxu0 }
 0x267   : > { %v1908_v37 = vpop.f32.mrb[69].mxu0 }
 0x268   : > { %2450 = vmatmul.mubr.f32.gmra.mrb[42].mxu1 %v5096_v12  ;;  %v2995_v37 = vld [vmem:[#allocation11 + $0x40] sm:$0xff] }
 0x269   : > { %2454 = vmatprep.mubr.f32.mxu1 %v5152_v13 }
 0x26a   : > { %v5340_v51 = vpop.f32.mrb[70].mxu0 }
 0x26b   : > { %v1913_v3 = vpop.f32.mrb[71].mxu0 }
 0x26c   : > { %2455 = vmatmul.mubr.f32.gmra.mrb[44].mxu1 %v5106_v33  ;;  %v2996_v3 = vld [vmem:[#allocation11 + $0x48] sm:$0xff] }
 0x26d   : > { %2459 = vmatprep.mubr.f32.mxu1 %v5162_v53 }
 0x26e   : > { %v5344_v19 = vpop.f32.mrb[72].mxu0 }
 0x26f   : > { %v1918_v32 = vpop.f32.mrb[73].mxu0 }
 0x270   : > { %2460 = vmatmul.mubr.f32.gmra.mrb[46].mxu1 %v5116_v63 }
 0x271   : > { %2464 = vmatprep.mubr.f32.mxu1 %v5172_v54  ;;  %v1199_v54 = vld [vmem:[#allocation2 + $0x30] sm:$0xff] }
 0x272   : > { %v5348_v44 = vpop.f32.mrb[74].mxu0 }
 0x273   : > { %v1923_v45 = vpop.f32.mrb[75].mxu0 }
 0x274   : > { %2465 = vmatmul.mubr.f32.gmra.mrb[48].mxu1 %v5126_v40 }
 0x275   : > { %2469 = vmatprep.mubr.f32.mxu1 %v5184_v30 }
 0x276   : > { %v5352_v57 = vpop.f32.mrb[76].mxu0 }
 0x277   : > { %v1928_v58 = vpop.f32.mrb[77].mxu0 }
 0x278   : > { %2470 = vmatmul.mubr.f32.gmra.mrb[50].mxu1 %v5136_v5  ;;  %v1203_v58 = vld [vmem:[#allocation2 + $0x60] sm:$0xff] }
 0x279   : > { %2474 = vmatprep.mubr.f32.mxu1 %v5196_v1  ;;  %v2987_v1 = vld [vmem:[#allocation11] sm:$0xff] }
 0x27a   : > { %v5356_v11 = vpop.f32.mrb[78].mxu0 }
 0x27b   : > { %v1933_v12 = vpop.f32.mrb[79].mxu0 }
 0x27c   : > { %2475 = vmatmul.mubr.f32.gmra.mrb[52].mxu1 %v5146_v46  ;;  %v1358_v46 = vld [vmem:[#allocation2 + $0x1a2] sm:$0xff] }
 0x27d   : > { %2479 = vmatprep.mubr.f32.mxu1 %v5205_v18  ;;  %v2988_v18 = vld [vmem:[#allocation11 + $0x8] sm:$0xff]  ;;  %v2997_v12 = vld [vmem:[#allocation11 + $0x50] sm:$0xff] }
 0x27e   : > { %v5360_v26 = vpop.f32.mrb[80].mxu0  ;;  %v4015_v2 = vpack.c.bf16 %v2988_v18, %v2987_v1  ;;  %v1208_v1 = vld [vmem:[#allocation2 + $0x98] sm:$0xff] }
 0x27f   : > { %v1938_v33 = vpop.f32.mrb[81].mxu0 }
 0x280   : > { %2480 = vmatmul.mubr.f32.gmra.mrb[54].mxu1 %v5156_v20  ;;  %v5861_v20 = vmax.f32 %v5192_v42, 0.0  ;;  %v2990_v42 = vld [vmem:[#allocation11 + $0x18] sm:$0xff]  ;;  %4016 = vmatprep.subr.bf16.mxu0 %v4015_v2 }
 0x281   : > { %2484 = vmatprep.mubr.f32.mxu1 %v5214_v21  ;;  %v1357_v21 = vld [vmem:[#allocation2 + $0x19a] sm:$0xff]  ;;  %4018 = vmatpush3.bf16.msra.mxu0 %v4015_v2  ;;  %v2998_v33 = vld [vmem:[#allocation11 + $0x58] sm:$0xff] }
 0x282   : > { %v5364_v55 = vpop.f32.mrb[82].mxu0  ;;  %3676 = vmatprep.mubr.f32.mxu0 %v1357_v21 }
 0x283   : > { %v1943_v63 = vpop.f32.mrb[83].mxu0  ;;  %3677 = vmatmul.mubr.f32.gmra.mrb[158].mxu0 %v1358_v46  ;;  %v1205_v46 = vld [vmem:[#allocation2 + $0x78] sm:$0xff] }
 0x284   : > { %2485 = vmatmul.mubr.f32.gmra.mrb[56].mxu1 %v5166_v25 }
 0x285   : > { %2489 = vmatprep.mubr.f32.mxu1 %v5222_v38 }
 0x286   : > { %v5368_v23 = vpop.f32.mrb[84].mxu0 }
 0x287   : > { %v1948_v40 = vpop.f32.mrb[85].mxu0 }
 0x288   : > { %2490 = vmatmul.mubr.f32.gmra.mrb[58].mxu1 %v5176_v56  ;;  %v1200_v56 = vld [vmem:[#allocation2 + $0x38] sm:$0xff] }
 0x289   : > { %2494 = vmatprep.mubr.f32.mxu1 %v5302_v10  ;;  %v2989_v10 = vld [vmem:[#allocation11 + $0x10] sm:$0xff] }
 0x28a   : > { %v5372_v4 = vpop.f32.mrb[86].mxu0 }
 0x28b   : > { %v1953_v5 = vpop.f32.mrb[87].mxu0 }
 0x28c   : > { %2495 = vmatmul.mubr.f32.gmra.mrb[60].mxu1 %v5860_v41  ;;  %v1204_v5 = vld [vmem:[#allocation2 + $0x68] sm:$0xff] }
 0x28d   : > { %2499 = vmatprep.mubr.f32.mxu1 %v5307_v17  ;;  %v2991_v17 = vld [vmem:[#allocation11 + $0x20] sm:$0xff] }
 0x28e   : > { %v5377_v13 = vpop.f32.mrb[88].mxu0  ;;  %v4023_v15 = vpack.c.bf16 %v2992_v39, %v2991_v17  ;;  %v1211_v39 = vld [vmem:[#allocation2 + $0xc0] sm:$0xff] }
 0x28f   : > { %v1958_v38 = vpop.f32.mrb[89].mxu0 }
 0x290   : > { %2500 = vmatmul.mubr.f32.gmra.mrb[62].mxu1 %v5861_v20  ;;  %v1206_v20 = vld [vmem:[#allocation2 + $0x80] sm:$0xff] }
 0x291   : > { %2569 = vmatprep.mubr.f32.mxu1 %v5236_v7  ;;  %v4019_v7 = vpack.c.bf16 %v2990_v42, %v2989_v10  ;;  %v1209_v10 = vld [vmem:[#allocation2 + $0xa8] sm:$0xff]  ;;  %v1210_v42 = vld [vmem:[#allocation2 + $0xb0] sm:$0xff] }
 0x292   : > { %v5382_v53 = vpop.f32.mrb[90].mxu0 }
 0x293   : > { %v1963_v25 = vpop.f32.mrb[91].mxu0  ;;  %4020 = vmatprep.subr.bf16.mxu0 %v4019_v7 }
 0x294   : > { %2570 = vmatmul.mubr.f32.vlgmr.msra.gmra.mrb[0].mxu1 %v1199_v54  ;;  %4022 = vmatpush3.bf16.msra.mxu0 %v4019_v7  ;;  %v1207_v54 = vld [vmem:[#allocation2 + $0x90] sm:$0xff] }
 0x295   : > { %2574 = vmatprep.mubr.f32.mxu1 %v5243_v43  ;;  %v1201_v43 = vld [vmem:[#allocation2 + $0x48] sm:$0xff]  ;;  %4024 = vmatprep.subr.bf16.mxu0 %v4023_v15 }
 0x296   : > { %v5385_v47 = vpop.f32.mrb[92].mxu0 }
 0x297   : > { %v1968_v30 = vpop.f32.mrb[93].mxu0 }
 0x298   : > { %2575 = vmatmul.mubr.f32.gmra.mrb[2].mxu1 %v1200_v56  ;;  %4026 = vmatpush3.bf16.msra.mxu0 %v4023_v15  ;;  %v1212_v15 = vld [vmem:[#allocation2 + $0xc8] sm:$0xff] }
 0x299   : > { %2579 = vmatprep.mubr.f32.mxu1 %v5250_v29  ;;  %v1202_v29 = vld [vmem:[#allocation2 + $0x50] sm:$0xff]  ;;  %4028 = vmatprep.subr.bf16.mxu0 %v4027_v31 }
 0x29a   : > { %v5388_v22 = vpop.f32.mrb[94].mxu0 }
 0x29b   : > { %v1973_v49 = vpop.f32.mrb[95].mxu0 }
 0x29c   : > { %2580 = vmatmul.mubr.f32.gmra.mrb[4].mxu1 %v1201_v43  ;;  %4030 = vmatpush3.bf16.msra.mxu0 %v4027_v31 }
 0x29d   : > { %2584 = vmatprep.mubr.f32.mxu1 %v5257_v52  ;;  %v4031_v52 = vpack.c.bf16 %v2996_v3, %v2995_v37  ;;  %v1214_v3 = vld [vmem:[#allocation2 + $0xe0] sm:$0xff] }
 0x29e   : > { %v5391_v50 = vpop.f32.mrb[96].mxu0 }
 0x29f   : > { %v1978_v24 = vpop.f32.mrb[97].mxu0  ;;  %4032 = vmatprep.subr.bf16.mxu0 %v4031_v52 }
 0x2a0   : > { %2585 = vmatmul.mubr.f32.gmra.mrb[6].mxu1 %v1202_v29  ;;  %4034 = vmatpush3.bf16.msra.mxu0 %v4031_v52  ;;  %v1213_v24 = vld [vmem:[#allocation2 + $0xd8] sm:$0xff]  ;;  %v1278_v29 = vld [vmem:[#allocation2 + $0xe1] sm:$0xff] }
 0x2a1   : > { %2589 = vmatprep.mubr.f32.mxu1 %v5264_v28  ;;  %v4035_v28 = vpack.c.bf16 %v2998_v33, %v2997_v12  ;;  %v1215_v12 = vld [vmem:[#allocation2 + $0xf0] sm:$0xff]  ;;  %v1280_v33 = vld [vmem:[#allocation2 + $0xf9] sm:$0xff] }
 0x2a2   : > { %v5394_v32 = vpop.f32.mrb[98].mxu0 }
 0x2a3   : > { %v1983_v45 = vpop.f32.mrb[99].mxu0  ;;  %4036 = vmatprep.subr.bf16.mxu0 %v4035_v28 }
 0x2a4   : > { %2590 = vmatmul.mubr.f32.gmra.mrb[8].mxu1 %v1203_v58  ;;  %4038 = vmatpush3.bf16.msra.mxu0 %v4035_v28  ;;  %v1279_v45 = vld [vmem:[#allocation2 + $0xf1] sm:$0xff] }
 0x2a5   : > { %2594 = vmatprep.mubr.f32.mxu1 %v5271_v0  ;;  %v1216_v28 = vld [vmem:[#allocation2 + $0xf8] sm:$0xff] }
 0x2a6   : > { %v5397_v63 = vpop.f32.mrb[100].mxu0 }
 0x2a7   : > { %v1988_v40 = vpop.f32.mrb[101].mxu0 }
 0x2a8   : > { %2595 = vmatmul.mubr.f32.gmra.mrb[10].mxu1 %v1204_v5 }
 0x2a9   : > { %2599 = vmatprep.mubr.f32.mxu1 %v5278_v35 }
 0x2aa   : > { %v5400_v41 = vpop.f32.mrb[102].mxu0 }
 0x2ab   : > { %v1993_v21 = vpop.f32.mrb[103].mxu0 }
 0x2ac   : > { %2600 = vmatmul.mubr.f32.gmra.mrb[12].mxu1 %v1205_v46  ;;  %v1281_v21 = vld [vmem:[#allocation2 + $0x109] sm:$0xff] }
 0x2ad   : > { %2604 = vmatprep.mubr.f32.mxu1 %v5285_v62 }
 0x2ae   : > { %v5403_v0 = vpop.f32.mrb[104].mxu0 }
 0x2af   : > { %v1998_v38 = vpop.f32.mrb[105].mxu0 }
 0x2b0   : > { %2605 = vmatmul.mubr.f32.gmra.mrb[14].mxu1 %v1206_v20  ;;  %v1217_v20 = vld [vmem:[#allocation2 + $0x108] sm:$0xff] }
 0x2b1   : > { %2609 = vmatprep.mubr.f32.mxu1 %v5292_v61 }
 0x2b2   : > { %v5406_v25 = vpop.f32.mrb[106].mxu0 }
 0x2b3   : > { %v2003_v35 = vpop.f32.mrb[107].mxu0 }
 0x2b4   : > { %2610 = vmatmul.mubr.f32.gmra.mrb[16].mxu1 %v1207_v54  ;;  %v1282_v35 = vld [vmem:[#allocation2 + $0x111] sm:$0xff] }
 0x2b5   : > { %2614 = vmatprep.mubr.f32.mxu1 %v5299_v16  ;;  %v1275_v16 = vld [vmem:[#allocation2 + $0xc1] sm:$0xff] }
 0x2b6   : > { %v5409_v56 = vpop.f32.mrb[108].mxu0 }
 0x2b7   : > { %v2008_v30 = vpop.f32.mrb[109].mxu0 }
 0x2b8   : > { %2615 = vmatmul.mubr.f32.gmra.mrb[18].mxu1 %v1208_v1  ;;  %v1218_v30 = vld [vmem:[#allocation2 + $0x110] sm:$0xff] }
 0x2b9   : > { %2619 = vmatprep.mubr.f32.mxu1 %v5310_v6  ;;  %v1276_v6 = vld [vmem:[#allocation2 + $0xc9] sm:$0xff] }
 0x2ba   : > { %v5412_v62 = vpop.f32.mrb[110].mxu0 }
 0x2bb   : > { %v2013_v18 = vpop.f32.mrb[111].mxu0 }
 0x2bc   : > { %2620 = vmatmul.mubr.f32.gmra.mrb[20].mxu1 %v1209_v10  ;;  %v1283_v18 = vld [vmem:[#allocation2 + $0x121] sm:$0xff] }
 0x2bd   : > { %2624 = vmatprep.mubr.f32.mxu1 %v5316_v27  ;;  %v1277_v27 = vld [vmem:[#allocation2 + $0xd9] sm:$0xff] }
 0x2be   : > { %v5415_v61 = vpop.f32.mrb[112].mxu0 }
 0x2bf   : > { %v2018_v2 = vpop.f32.mrb[113].mxu0 }
 0x2c0   : > { %2625 = vmatmul.mubr.f32.gmra.mrb[22].mxu1 %v1210_v42  ;;  %v1219_v2 = vld [vmem:[#allocation2 + $0x120] sm:$0xff] }
 0x2c1   : > { %2629 = vmatprep.mubr.f32.mxu1 %v1275_v16  ;;  %v1284_v16 = vld [vmem:[#allocation2 + $0x129] sm:$0xff] }
 0x2c2   : > { %v5417_v7 = vpop.f32.mrb[114].mxu0 }
 0x2c3   : > { %5862 = vst [vmem:[#allocation52_spill] sm:$0xff] %v5417_v7  ;;  %v2023_v17 = vpop.f32.mrb[115].mxu0 }
 0x2c4   : > { %2630 = vmatmul.mubr.f32.gmra.mrb[24].mxu1 %v1211_v39  ;;  %v1220_v39 = vld [vmem:[#allocation2 + $0x128] sm:$0xff] }
 0x2c5   : > { %2634 = vmatprep.mubr.f32.mxu1 %v1276_v6 }
 0x2c6   : > { %v5419_v49 = vpop.f32.mrb[116].mxu0 }
 0x2c7   : > { %5863 = vst [vmem:[#allocation53_spill] sm:$0xff] %v5419_v49  ;;  %v2028_v43 = vpop.f32.mrb[117].mxu0 }
 0x2c8   : > { %2635 = vmatmul.mubr.f32.gmra.mrb[26].mxu1 %v1212_v15  ;;  %v1285_v43 = vld [vmem:[#allocation2 + $0x139] sm:$0xff]  ;;  %v2999_v15 = vld [vmem:[#allocation11 + $0x60] sm:$0xff] }
 0x2c9   : > { %2639 = vmatprep.mubr.f32.mxu1 %v1277_v27  ;;  %v3000_v27 = vld [vmem:[#allocation11 + $0x68] sm:$0xff] }
 0x2ca   : > { %v5421_v36 = vpop.f32.mrb[118].mxu0 }
 0x2cb   : > { %5864 = vst [vmem:[#allocation54_spill] sm:$0xff] %v5421_v36  ;;  %v2033_v60 = vpop.f32.mrb[119].mxu0 }
 0x2cc   : > { %2640 = vmatmul.mubr.f32.gmra.mrb[28].mxu1 %v1213_v24  ;;  %v4039_v60 = vpack.c.bf16 %v3000_v27, %v2999_v15  ;;  %v1225_v15 = vld [vmem:[#allocation2 + $0x168] sm:$0xff] }
 0x2cd   : > { %2644 = vmatprep.mubr.f32.mxu1 %v1278_v29  ;;  %v1221_v29 = vld [vmem:[#allocation2 + $0x138] sm:$0xff] }
 0x2ce   : > { %v5423_v31 = vpop.f32.mrb[120].mxu0  ;;  %4040 = vmatprep.subr.bf16.mxu0 %v4039_v60 }
 0x2cf   : > { %5865 = vst [vmem:[#allocation55_spill] sm:$0xff] %v5423_v31  ;;  %v2038_v37 = vpop.f32.mrb[121].mxu0  ;;  %4042 = vmatpush3.bf16.msra.mxu0 %v4039_v60  ;;  %v1290_v60 = vld [vmem:[#allocation2 + $0x171] sm:$0xff] }
 0x2d0   : > { %2645 = vmatmul.mubr.f32.gmra.mrb[30].mxu1 %v1214_v3  ;;  %v1286_v3 = vld [vmem:[#allocation2 + $0x141] sm:$0xff] }
 0x2d1   : > { %2649 = vmatprep.mubr.f32.mxu1 %v1279_v45  ;;  %v3001_v45 = vld [vmem:[#allocation11 + $0x70] sm:$0xff] }
 0x2d2   : > { %v5425_v58 = vpop.f32.mrb[122].mxu0 }
 0x2d3   : > { %5866 = vst [vmem:[#allocation56_spill] sm:$0xff] %v5425_v58  ;;  %v2043_v52 = vpop.f32.mrb[123].mxu0 }
 0x2d4   : > { %2650 = vmatmul.mubr.f32.gmra.mrb[32].mxu1 %v1215_v12  ;;  %v3002_v52 = vld [vmem:[#allocation11 + $0x78] sm:$0xff] }
 0x2d5   : > { %2654 = vmatprep.mubr.f32.mxu1 %v1280_v33  ;;  %v4043_v12 = vpack.c.bf16 %v3002_v52, %v3001_v45  ;;  %v1291_v52 = vld [vmem:[#allocation2 + $0x181] sm:$0xff] }
 0x2d6   : > { %v5427_v40 = vpop.f32.mrb[124].mxu0 }
 0x2d7   : > { %5867 = vst [vmem:[#allocation57_spill] sm:$0xff] %v5427_v40  ;;  %v2048_v5 = vpop.f32.mrb[125].mxu0  ;;  %4044 = vmatprep.subr.bf16.mxu0 %v4043_v12 }
 0x2d8   : > { %2655 = vmatmul.mubr.f32.gmra.mrb[34].mxu1 %v1216_v28  ;;  %v1222_v5 = vld [vmem:[#allocation2 + $0x140] sm:$0xff]  ;;  %4046 = vmatpush3.bf16.msra.mxu0 %v4043_v12 }
 0x2d9   : > { %2659 = vmatprep.mubr.f32.mxu1 %v1281_v21  ;;  %v1287_v21 = vld [vmem:[#allocation2 + $0x151] sm:$0xff] }
 0x2da   : > { %v5429_v46 = vpop.f32.mrb[126].mxu0 }
 0x2db   : > { %5868 = vst [vmem:[#allocation58_spill] sm:$0xff] %v5429_v46  ;;  %v2053_v38 = vpop.f32.mrb[127].mxu0 }
 0x2dc   : > { %2660 = vmatmul.mubr.f32.gmra.mrb[36].mxu1 %v1217_v20  ;;  %v1223_v20 = vld [vmem:[#allocation2 + $0x150] sm:$0xff] }
 0x2dd   : > { %2664 = vmatprep.mubr.f32.mxu1 %v1282_v35 }
 0x2de   : > { %v5431_v54 = vpop.f32.mrb[128].mxu0 }
 0x2df   : > { %v5433_v1 = vpop.f32.mrb[129].mxu0 }
 0x2e0   : > { %2665 = vmatmul.mubr.f32.gmra.mrb[38].mxu1 %v1218_v30  ;;  %v1288_v30 = vld [vmem:[#allocation2 + $0x159] sm:$0xff] }
 0x2e1   : > { %2669 = vmatprep.mubr.f32.mxu1 %v1283_v18 }
 0x2e2   : > { %v5435_v10 = vpop.f32.mrb[130].mxu0 }
 0x2e3   : > { %v5437_v42 = vpop.f32.mrb[131].mxu0 }
 0x2e4   : > { %2670 = vmatmul.mubr.f32.gmra.mrb[40].mxu1 %v1219_v2  ;;  %v1224_v2 = vld [vmem:[#allocation2 + $0x158] sm:$0xff] }
 0x2e5   : > { %2674 = vmatprep.mubr.f32.mxu1 %v1284_v16 }
 0x2e6   : > { %v5439_v17 = vpop.f32.mrb[132].mxu0 }
 0x2e7   : > { %v5441_v6 = vpop.f32.mrb[133].mxu0 }
 0x2e8   : > { %2675 = vmatmul.mubr.f32.gmra.mrb[42].mxu1 %v1220_v39  ;;  %v1289_v39 = vld [vmem:[#allocation2 + $0x169] sm:$0xff] }
 0x2e9   : > { %2679 = vmatprep.mubr.f32.mxu1 %v1285_v43 }
 0x2ea   : > { %v5443_v24 = vpop.f32.mrb[134].mxu0 }
 0x2eb   : > { %v5445_v37 = vpop.f32.mrb[135].mxu0 }
 0x2ec   : > { %2680 = vmatmul.mubr.f32.gmra.mrb[44].mxu1 %v1221_v29 }
 0x2ed   : > { %2684 = vmatprep.mubr.f32.mxu1 %v1286_v3  ;;  %v1226_v3 = vld [vmem:[#allocation2 + $0x170] sm:$0xff] }
 0x2ee   : > { %v5447_v33 = vpop.f32.mrb[136].mxu0 }
 0x2ef   : > { %v5449_v28 = vpop.f32.mrb[137].mxu0 }
 0x2f0   : > { %2685 = vmatmul.mubr.f32.gmra.mrb[46].mxu1 %v1222_v5 }
 0x2f1   : > { %2689 = vmatprep.mubr.f32.mxu1 %v1287_v21  ;;  %v1292_v21 = vld [vmem:[#allocation2 + $0x189] sm:$0xff] }
 0x2f2   : > { %v5451_v38 = vpop.f32.mrb[138].mxu0 }
 0x2f3   : > { %v5453_v35 = vpop.f32.mrb[139].mxu0 }
 0x2f4   : > { %2690 = vmatmul.mubr.f32.gmra.mrb[48].mxu1 %v1223_v20 }
 0x2f5   : > { %2694 = vmatprep.mubr.f32.mxu1 %v1288_v30  ;;  %v1293_v30 = vld [vmem:[#allocation2 + $0x199] sm:$0xff] }
 0x2f6   : > { %v5455_v18 = vpop.f32.mrb[140].mxu0 }
 0x2f7   : > { %v5457_v16 = vpop.f32.mrb[141].mxu0 }
 0x2f8   : > { %2695 = vmatmul.mubr.f32.gmra.mrb[50].mxu1 %v1224_v2 }
 0x2f9   : > { %2699 = vmatprep.mubr.f32.mxu1 %v1289_v39  ;;  %v1229_v39 = vld [vmem:[#allocation2 + $0x198] sm:$0xff] }
 0x2fa   : > { %v5459_v43 = vpop.f32.mrb[142].mxu0 }
 0x2fb   : > { %v5461_v27 = vpop.f32.mrb[143].mxu0 }
 0x2fc   : > { %2700 = vmatmul.mubr.f32.gmra.mrb[52].mxu1 %v1225_v15 }
 0x2fd   : > { %2704 = vmatprep.mubr.f32.mxu1 %v1290_v60  ;;  %v1294_v60 = vld [vmem:[#allocation2 + $0x1a1] sm:$0xff] }
 0x2fe   : > { %v5463_v29 = vpop.f32.mrb[144].mxu0 }
 0x2ff   : > { %v5465_v45 = vpop.f32.mrb[145].mxu0 }
 0x300   : > { %2705 = vmatmul.mubr.f32.gmra.mrb[54].mxu1 %v1226_v3 }
 0x301   : > { %2709 = vmatprep.mubr.f32.mxu1 %v1291_v52 }
 0x302   : > { %v5467_v12 = vpop.f32.mrb[146].mxu0 }
 0x303   : > { %v5469_v5 = vpop.f32.mrb[147].mxu0 }
 0x304   : > { %2710 = vmatmul.mubr.f32.gmra.mrb[56].mxu1 %v5209_v8 }
 0x305   : > { %2714 = vmatprep.mubr.f32.mxu1 %v1292_v21  ;;  %v4324_v21 = vld [vmem:[#allocation2 + $0x8] sm:$0xff] }
 0x306   : > { %v5472_v20 = vpop.f32.mrb[148].mxu0 }
 0x307   : > { %v5474_v2 = vpop.f32.mrb[149].mxu0 }
 0x308   : > { %2715 = vmatmul.mubr.f32.gmra.mrb[58].mxu1 %v5219_v48 }
 0x309   : > { %2719 = vmatprep.mubr.f32.mxu1 %v1293_v30 }
 0x30a   : > { %v5477_v15 = vpop.f32.mrb[150].mxu0 }
 0x30b   : > { %v5479_v3 = vpop.f32.mrb[151].mxu0 }
 0x30c   : > { %2720 = vmatmul.mubr.f32.gmra.mrb[60].mxu1 %v1229_v39  ;;  %v5500_v39 = vld [vmem:[%s5796_s4] ss:$0 sm:$0xff] }
 0x30d   : > { %2724 = vmatprep.mubr.f32.mxu1 %v1294_v60  ;;  %v1897_v60 = vadd.f32 %v5500_v39, %v5201_v59 }
 0x30e   : > { %v5481_v52 = vpop.f32.mrb[152].mxu0 }
 0x30f   : > { %5869 = vst [vmem:[#allocation59_spill] sm:$0xff] %v5481_v52  ;;  %v5483_v8 = vpop.f32.mrb[153].mxu0  ;;  %v1907_v52 = vadd.f32 %v5500_v39, %v5336_v34  ;;  %v1917_v34 = vadd.f32 %v5500_v39, %v5344_v19  ;;  %v1927_v19 = vadd.f32 %v5500_v39, %v5352_v57  ;;  %v1937_v57 = vadd.f32 %v5500_v39, %v5360_v26 }
 0x310   : > { %5870 = vst [vmem:[#allocation60_spill] sm:$0xff] %v5483_v8  ;;  %2725 = vmatmul.mubr.f32.gmra.mrb[62].mxu1 %v4324_v21  ;;  %v1947_v26 = vadd.f32 %v5500_v39, %v5368_v23  ;;  %v1957_v23 = vadd.f32 %v5500_v39, %v5377_v13  ;;  %v1967_v13 = vadd.f32 %v5500_v39, %v5385_v47 }
 0x311   : > { %v1977_v47 = vadd.f32 %v5500_v39, %v5391_v50  ;;  %v1987_v50 = vadd.f32 %v5500_v39, %v5397_v63  ;;  %v1997_v63 = vadd.f32 %v5500_v39, %v5403_v0  ;;  %v2007_v0 = vadd.f32 %v5500_v39, %v5409_v56 }
 0x312   : > { %v5485_v9 = vpop.f32.mrb[154].mxu0  ;;  %v2017_v56 = vadd.f32 %v5500_v39, %v5415_v61 }
 0x313   : > { %5871 = vst [vmem:[#allocation61_spill] sm:$0xff] %v5485_v9  ;;  %v5487_v46 = vpop.f32.mrb[155].mxu0 }
 0x314   : > { %5872 = vst [vmem:[#allocation62_spill] sm:$0xff] %v5487_v46 }
 0x316   : > { %v5489_v48 = vpop.f32.mrb[156].mxu0 }
 0x317   : > { %5873 = vst [vmem:[#allocation63_spill] sm:$0xff] %v5489_v48  ;;  %v5491_v30 = vpop.f32.mrb[157].mxu0  ;;  %v1902_v48 = vadd.f32 %v5500_v39, %v5211_v14 }
 0x318   : > { %5874 = vst [vmem:[#allocation64_spill] sm:$0xff] %v5491_v30 }
 0x356   : > { %v5493_v40 = vpop.f32.mrb[158].mxu0 }
 0x357   : > { %5875 = vst [vmem:[#allocation65_spill] sm:$0xff] %v5493_v40  ;;  %v5495_v58 = vpop.f32.mrb[159].mxu0 }
 0x358   : > { %5876 = vst [vmem:[#allocation66_spill] sm:$0xff] %v5495_v58 }
 0x367   : > { %v2571_v21 = vpop.f32.mrb[0].mxu1 }
 0x368   : > { %v4048_v9 = vadd.f32 %v2571_v21, %v1897_v60  ;;  %v2573_v31 = vpop.f32.mrb[1].mxu1 }
 0x369   : > { %v1912_v31 = vadd.f32 %v5500_v39, %v5340_v51  ;;  %v1922_v51 = vadd.f32 %v5500_v39, %v5348_v44  ;;  %v1932_v44 = vadd.f32 %v5500_v39, %v5356_v11  ;;  %v1942_v11 = vadd.f32 %v5500_v39, %v5364_v55 }
 0x36a   : > { %v2797_v30 = vadd.f32 %v4048_v9, %v5433_v1  ;;  %v1952_v55 = vadd.f32 %v5500_v39, %v5372_v4  ;;  %v1962_v4 = vadd.f32 %v5500_v39, %v5382_v53  ;;  %v1972_v53 = vadd.f32 %v5500_v39, %v5388_v22 }
 0x36b   : > { %v2576_v46 = vpop.f32.mrb[2].mxu1  ;;  %v1982_v22 = vadd.f32 %v5500_v39, %v5394_v32  ;;  %v1992_v32 = vadd.f32 %v5500_v39, %v5400_v41  ;;  %v2002_v41 = vadd.f32 %v5500_v39, %v5406_v25  ;;  %v2012_v25 = vadd.f32 %v5500_v39, %v5412_v62 }
 0x36c   : > { %v2955_v40 = vmax.f32 %v2797_v30, 0.0  ;;  %v4050_v36 = vadd.f32 %v2576_v46, %v1902_v48  ;;  %v2578_v58 = vpop.f32.mrb[3].mxu1 }
 0x36e   : > { %v2802_v49 = vadd.f32 %v4050_v36, %v5431_v54  ;;  %3711 = vmatprep.mubr.f32.mxu0 %v2955_v40 }
 0x36f   : > { %v2581_v8 = vpop.f32.mrb[4].mxu1 }
 0x370   : > { %v2956_v59 = vmax.f32 %v2802_v49, 0.0  ;;  %v4052_v7 = vadd.f32 %v2581_v8, %v1907_v52  ;;  %v2583_v60 = vpop.f32.mrb[5].mxu1 }
 0x372   : > { %v2807_v14 = vadd.f32 %v4052_v7, %v5437_v42  ;;  %3712 = vmatmul.mubr.f32.vlgmr.msra.gmra.mrb[160].mxu0 %v2956_v59 }
 0x373   : > { %v2586_v9 = vpop.f32.mrb[6].mxu1 }
 0x374   : > { %v2957_v1 = vmax.f32 %v2807_v14, 0.0  ;;  %v4054_v46 = vadd.f32 %v2586_v9, %v1912_v31  ;;  %v2588_v58 = vpop.f32.mrb[7].mxu1 }
 0x376   : > { %v2812_v36 = vadd.f32 %v4054_v46, %v5435_v10  ;;  %3714 = vmatprep.mubr.f32.mxu0 %v2957_v1 }
 0x377   : > { %v2591_v40 = vpop.f32.mrb[8].mxu1 }
 0x378   : > { %v2958_v49 = vmax.f32 %v2812_v36, 0.0  ;;  %v4056_v54 = vadd.f32 %v2591_v40, %v1917_v34  ;;  %v2593_v52 = vpop.f32.mrb[9].mxu1 }
 0x37a   : > { %v2817_v7 = vadd.f32 %v4056_v54, %v5441_v6  ;;  %3715 = vmatmul.mubr.f32.gmra.mrb[162].mxu0 %v2958_v49 }
 0x37b   : > { %v2596_v42 = vpop.f32.mrb[10].mxu1 }
 0x37c   : > { %v2959_v8 = vmax.f32 %v2817_v7, 0.0  ;;  %v4058_v48 = vadd.f32 %v2596_v42, %v1922_v51  ;;  %v2598_v30 = vpop.f32.mrb[11].mxu1 }
 0x37e   : > { %v2822_v10 = vadd.f32 %v4058_v48, %v5439_v17  ;;  %3717 = vmatprep.mubr.f32.mxu0 %v2959_v8 }
 0x37f   : > { %v2601_v21 = vpop.f32.mrb[12].mxu1 }
 0x380   : > { %v2960_v59 = vmax.f32 %v2822_v10, 0.0  ;;  %v4060_v60 = vadd.f32 %v2601_v21, %v1927_v19  ;;  %v2603_v31 = vpop.f32.mrb[13].mxu1 }
 0x382   : > { %v2827_v6 = vadd.f32 %v4060_v60, %v5445_v37  ;;  %3718 = vmatmul.mubr.f32.gmra.mrb[164].mxu0 %v2960_v59 }
 0x383   : > { %v2606_v14 = vpop.f32.mrb[14].mxu1 }
 0x384   : > { %v2961_v9 = vmax.f32 %v2827_v6, 0.0  ;;  %v4062_v1 = vadd.f32 %v2606_v14, %v1932_v44  ;;  %v2608_v46 = vpop.f32.mrb[15].mxu1 }
 0x386   : > { %v2832_v17 = vadd.f32 %v4062_v1, %v5443_v24  ;;  %3720 = vmatprep.mubr.f32.mxu0 %v2961_v9 }
 0x387   : > { %v2611_v58 = vpop.f32.mrb[16].mxu1 }
 0x388   : > { %v2962_v34 = vmax.f32 %v2832_v17, 0.0  ;;  %v4064_v36 = vadd.f32 %v2611_v58, %v1937_v57  ;;  %v2613_v40 = vpop.f32.mrb[17].mxu1 }
 0x38a   : > { %v2837_v37 = vadd.f32 %v4064_v36, %v5449_v28  ;;  %3721 = vmatmul.mubr.f32.gmra.mrb[166].mxu0 %v2962_v34 }
 0x38b   : > { %v2616_v49 = vpop.f32.mrb[18].mxu1 }
 0x38c   : > { %v2963_v54 = vmax.f32 %v2837_v37, 0.0  ;;  %v4066_v52 = vadd.f32 %v2616_v49, %v1942_v11  ;;  %v2618_v51 = vpop.f32.mrb[19].mxu1 }
 0x38e   : > { %v2842_v24 = vadd.f32 %v4066_v52, %v5447_v33  ;;  %3723 = vmatprep.mubr.f32.mxu0 %v2963_v54 }
 0x38f   : > { %v2621_v7 = vpop.f32.mrb[20].mxu1 }
 0x390   : > { %v2964_v42 = vmax.f32 %v2842_v24, 0.0  ;;  %v4068_v8 = vadd.f32 %v2621_v7, %v1947_v26  ;;  %v2623_v48 = vpop.f32.mrb[21].mxu1 }
 0x392   : > { %v2847_v28 = vadd.f32 %v4068_v8, %v5453_v35  ;;  %3724 = vmatmul.mubr.f32.gmra.mrb[168].mxu0 %v2964_v42 }
 0x393   : > { %v2626_v30 = vpop.f32.mrb[22].mxu1 }
 0x394   : > { %v2965_v19 = vmax.f32 %v2847_v28, 0.0  ;;  %v4070_v10 = vadd.f32 %v2626_v30, %v1952_v55  ;;  %v2628_v21 = vpop.f32.mrb[23].mxu1 }
 0x396   : > { %v2852_v33 = vadd.f32 %v4070_v10, %v5451_v38  ;;  %3726 = vmatprep.mubr.f32.mxu0 %v2965_v19 }
 0x397   : > { %v2631_v59 = vpop.f32.mrb[24].mxu1 }
 0x398   : > { %v2966_v60 = vmax.f32 %v2852_v33, 0.0  ;;  %v4072_v31 = vadd.f32 %v2631_v59, %v1957_v23  ;;  %v2633_v44 = vpop.f32.mrb[25].mxu1 }
 0x39a   : > { %v2857_v35 = vadd.f32 %v4072_v31, %v5457_v16  ;;  %3727 = vmatmul.mubr.f32.gmra.mrb[170].mxu0 %v2966_v60 }
 0x39b   : > { %v2636_v6 = vpop.f32.mrb[26].mxu1 }
 0x39c   : > { %v2967_v14 = vmax.f32 %v2857_v35, 0.0  ;;  %v4074_v9 = vadd.f32 %v2636_v6, %v1962_v4  ;;  %v2638_v1 = vpop.f32.mrb[27].mxu1 }
 0x39e   : > { %v2862_v38 = vadd.f32 %v4074_v9, %v5455_v18  ;;  %3729 = vmatprep.mubr.f32.mxu0 %v2967_v14 }
 0x39f   : > { %v2641_v46 = vpop.f32.mrb[28].mxu1 }
 0x3a0   : > { %v2968_v57 = vmax.f32 %v2862_v38, 0.0  ;;  %v4076_v17 = vadd.f32 %v2641_v46, %v1967_v13  ;;  %v2643_v58 = vpop.f32.mrb[29].mxu1 }
 0x3a2   : > { %v2867_v16 = vadd.f32 %v4076_v17, %v5461_v27  ;;  %3730 = vmatmul.mubr.f32.gmra.mrb[172].mxu0 %v2968_v57 }
 0x3a3   : > { %v2646_v34 = vpop.f32.mrb[30].mxu1 }
 0x3a4   : > { %v2969_v36 = vmax.f32 %v2867_v16, 0.0  ;;  %v4078_v40 = vadd.f32 %v2646_v34, %v1972_v53  ;;  %v2648_v11 = vpop.f32.mrb[31].mxu1  ;;  %v5877_v16 = vld [vmem:[#allocation52_spill] sm:$0xff] }
 0x3a5   : > { %v2022_v62 = vadd.f32 %v5500_v39, %v5877_v16  ;;  %v5878_v34 = vld [vmem:[#allocation60_spill] sm:$0xff] }
 0x3a6   : > { %v2872_v18 = vadd.f32 %v4078_v40, %v5459_v43  ;;  %3732 = vmatprep.mubr.f32.mxu0 %v2969_v36 }
 0x3a7   : > { %v2651_v37 = vpop.f32.mrb[32].mxu1 }
 0x3a8   : > { %v2970_v49 = vmax.f32 %v2872_v18, 0.0  ;;  %v4080_v54 = vadd.f32 %v2651_v37, %v1977_v47  ;;  %v2653_v52 = vpop.f32.mrb[33].mxu1  ;;  %v5879_v18 = vld [vmem:[#allocation53_spill] sm:$0xff]  ;;  %v5880_v37 = vld [vmem:[#allocation59_spill] sm:$0xff] }
 0x3a9   : > { %v2027_v61 = vadd.f32 %v5500_v39, %v5879_v18 }
 0x3aa   : > { %v2877_v27 = vadd.f32 %v4080_v54, %v5465_v45  ;;  %3733 = vmatmul.mubr.f32.gmra.mrb[174].mxu0 %v2970_v49 }
 0x3ab   : > { %v2656_v51 = vpop.f32.mrb[34].mxu1 }
 0x3ac   : > { %v2971_v26 = vmax.f32 %v2877_v27, 0.0  ;;  %v4082_v24 = vadd.f32 %v2656_v51, %v1982_v22  ;;  %v2658_v7 = vpop.f32.mrb[35].mxu1  ;;  %v5881_v27 = vld [vmem:[#allocation54_spill] sm:$0xff] }
 0x3ad   : > { %v2032_v51 = vadd.f32 %v5500_v39, %v5881_v27 }
 0x3ae   : > { %v2882_v43 = vadd.f32 %v4082_v24, %v5463_v29  ;;  %3735 = vmatprep.mubr.f32.mxu0 %v2971_v26  ;;  %v5882_v26 = vld [vmem:[#allocation62_spill] sm:$0xff] }
 0x3af   : > { %v2661_v42 = vpop.f32.mrb[36].mxu1 }
 0x3b0   : > { %v2972_v8 = vmax.f32 %v2882_v43, 0.0  ;;  %v4084_v48 = vadd.f32 %v2661_v42, %v1987_v50  ;;  %v2663_v55 = vpop.f32.mrb[37].mxu1 }
 0x3b1   : > { %v5884_v55 = vld [vmem:[#allocation61_spill] sm:$0xff] }
 0x3b2   : > { %v2887_v45 = vadd.f32 %v4084_v48, %v5469_v5  ;;  %3736 = vmatmul.mubr.f32.gmra.mrb[176].mxu0 %v2972_v8  ;;  %v5883_v8 = vld [vmem:[#allocation55_spill] sm:$0xff] }
 0x3b3   : > { %v2666_v28 = vpop.f32.mrb[38].mxu1  ;;  %v2037_v48 = vadd.f32 %v5500_v39, %v5883_v8 }
 0x3b4   : > { %v2973_v30 = vmax.f32 %v2887_v45, 0.0  ;;  %v4086_v19 = vadd.f32 %v2666_v28, %v1992_v32  ;;  %v2668_v10 = vpop.f32.mrb[39].mxu1 }
 0x3b5   : > { %v5885_v10 = vld [vmem:[#allocation56_spill] sm:$0xff] }
 0x3b6   : > { %v2892_v29 = vadd.f32 %v4086_v19, %v5467_v12  ;;  %3738 = vmatprep.mubr.f32.mxu0 %v2973_v30 }
 0x3b7   : > { %v2671_v21 = vpop.f32.mrb[40].mxu1 }
 0x3b8   : > { %v2974_v23 = vmax.f32 %v2892_v29, 0.0  ;;  %v4088_v33 = vadd.f32 %v2671_v21, %v1997_v63  ;;  %v2673_v59 = vpop.f32.mrb[41].mxu1  ;;  %v2042_v63 = vadd.f32 %v5500_v39, %v5885_v10  ;;  %v5886_v29 = vld [vmem:[#allocation64_spill] sm:$0xff] }
 0x3ba   : > { %v2897_v5 = vadd.f32 %v4088_v33, %v5474_v2  ;;  %3739 = vmatmul.mubr.f32.gmra.mrb[178].mxu0 %v2974_v23 }
 0x3bb   : > { %v2676_v60 = vpop.f32.mrb[42].mxu1 }
 0x3bc   : > { %v2975_v31 = vmax.f32 %v2897_v5, 0.0  ;;  %v4090_v44 = vadd.f32 %v2676_v60, %v2002_v41  ;;  %v2678_v4 = vpop.f32.mrb[43].mxu1  ;;  %v5887_v5 = vld [vmem:[#allocation57_spill] sm:$0xff] }
 0x3bd   : > { %v2047_v60 = vadd.f32 %v5500_v39, %v5887_v5 }
 0x3be   : > { %v2902_v12 = vadd.f32 %v4090_v44, %v5472_v20  ;;  %3741 = vmatprep.mubr.f32.mxu0 %v2975_v31  ;;  %v5888_v31 = vld [vmem:[#allocation63_spill] sm:$0xff] }
 0x3bf   : > { %v2681_v35 = vpop.f32.mrb[44].mxu1 }
 0x3c0   : > { %v2976_v6 = vmax.f32 %v2902_v12, 0.0  ;;  %v4092_v14 = vadd.f32 %v2681_v35, %v2007_v0  ;;  %v2683_v9 = vpop.f32.mrb[45].mxu1 }
 0x3c1   : > { %v5890_v9 = vld [vmem:[#allocation66_spill] sm:$0xff] }
 0x3c2   : > { %v2907_v2 = vadd.f32 %v4092_v14, %v5479_v3  ;;  %3742 = vmatmul.mubr.f32.gmra.mrb[180].mxu0 %v2976_v6  ;;  %v5889_v6 = vld [vmem:[#allocation58_spill] sm:$0xff] }
 0x3c3   : > { %v2686_v1 = vpop.f32.mrb[46].mxu1  ;;  %v2052_v14 = vadd.f32 %v5500_v39, %v5889_v6 }
 0x3c4   : > { %v2977_v13 = vmax.f32 %v2907_v2, 0.0  ;;  %v4094_v38 = vadd.f32 %v2686_v1, %v2012_v25  ;;  %v2688_v46 = vpop.f32.mrb[47].mxu1 }
 0x3c5   : > { %v5891_v46 = vld [vmem:[#allocation65_spill] sm:$0xff] }
 0x3c6   : > { %v2912_v20 = vadd.f32 %v4094_v38, %v5477_v15  ;;  %3744 = vmatprep.mubr.f32.mxu0 %v2977_v13 }
 0x3c7   : > { %v2691_v57 = vpop.f32.mrb[48].mxu1 }
 0x3c8   : > { %v2978_v17 = vmax.f32 %v2912_v20, 0.0  ;;  %v4096_v58 = vadd.f32 %v2691_v57, %v2017_v56  ;;  %v2693_v53 = vpop.f32.mrb[49].mxu1  ;;  %v5892_v57 = vld [vmem:[#allocation19_spill] sm:$0xff] }
 0x3c9   : > { %v5607_v53 = vld [vmem:[%s5798_s6] ss:$0 sm:$0xff] }
 0x3ca   : > { %v2917_v3 = vadd.f32 %v4096_v58, %v5878_v34  ;;  %3745 = vmatmul.mubr.f32.gmra.mrb[182].mxu0 %v2978_v17  ;;  %v413_v17 = vsub.s32 1, %v5892_v57  ;;  %v4325_v58 = vld [vmem:[%s5794_s2] sm:$0x3] }
 0x3cb   : > { %v2696_v36 = vpop.f32.mrb[50].mxu1 }
 0x3cc   : > { %v2979_v40 = vmax.f32 %v2917_v3, 0.0  ;;  %v4098_v11 = vadd.f32 %v2696_v36, %v2022_v62  ;;  %v2698_v47 = vpop.f32.mrb[51].mxu1  ;;  %v5602_v39 = vrot.slane %v4325_v58, %v413_v17  ;;  %v5893_v62 = vld [vmem:[#allocation21_spill] sm:$0xff]  ;;  %v5903_v58 = vld [vmem:[#allocation31_spill] sm:$0xff] }
 0x3ce   : > { %v2922_v15 = vadd.f32 %v4098_v11, %v5880_v37  ;;  %3747 = vmatprep.mubr.f32.mxu0 %v2979_v40  ;;  %v492_v34 = vadd.f32 %v5893_v62, %v5602_v39  ;;  %v5894_v40 = vld [vmem:[#allocation20_spill] sm:$0xff] }
 0x3cf   : > { %v2701_v49 = vpop.f32.mrb[52].mxu1  ;;  %v486_v11 = vadd.f32 %v5894_v40, %v5602_v39 }
 0x3d0   : > { %v2980_v54 = vmax.f32 %v2922_v15, 0.0  ;;  %v4100_v52 = vadd.f32 %v2701_v49, %v2027_v61  ;;  %v2703_v22 = vpop.f32.mrb[53].mxu1 }
 0x3d2   : > { %v2927_v24 = vadd.f32 %v4100_v52, %v5882_v26  ;;  %3748 = vmatmul.mubr.f32.gmra.mrb[184].mxu0 %v2980_v54  ;;  %v5895_v54 = vld [vmem:[#allocation23_spill] sm:$0xff] }
 0x3d3   : > { %v2706_v7 = vpop.f32.mrb[54].mxu1  ;;  %v504_v52 = vadd.f32 %v5895_v54, %v5602_v39 }
 0x3d4   : > { %v2981_v50 = vmax.f32 %v2927_v24, 0.0  ;;  %v4102_v43 = vadd.f32 %v2706_v7, %v2032_v51  ;;  %v2708_v42 = vpop.f32.mrb[55].mxu1  ;;  %v5896_v51 = vld [vmem:[#allocation22_spill] sm:$0xff] }
 0x3d5   : > { %v498_v26 = vadd.f32 %v5896_v51, %v5602_v39 }
 0x3d6   : > { %v2932_v32 = vadd.f32 %v4102_v43, %v5884_v55  ;;  %3750 = vmatprep.mubr.f32.mxu0 %v2981_v50 }
 0x3d7   : > { %v2711_v45 = vpop.f32.mrb[56].mxu1 }
 0x3d8   : > { %v2982_v28 = vmax.f32 %v2932_v32, 0.0  ;;  %v4104_v30 = vadd.f32 %v2711_v45, %v2037_v48  ;;  %v2713_v19 = vpop.f32.mrb[57].mxu1  ;;  %v5897_v48 = vld [vmem:[#allocation25_spill] sm:$0xff] }
 0x3d9   : > { %v516_v55 = vadd.f32 %v5897_v48, %v5602_v39 }
 0x3da   : > { %v2937_v21 = vadd.f32 %v4104_v30, %v5886_v29  ;;  %3751 = vmatmul.mubr.f32.gmra.mrb[186].mxu0 %v2982_v28  ;;  %v5898_v28 = vld [vmem:[#allocation24_spill] sm:$0xff] }
 0x3db   : > { %v2716_v23 = vpop.f32.mrb[58].mxu1  ;;  %v510_v30 = vadd.f32 %v5898_v28, %v5602_v39 }
 0x3dc   : > { %v2983_v33 = vmax.f32 %v2937_v21, 0.0  ;;  %v4106_v59 = vadd.f32 %v2716_v23, %v2042_v63  ;;  %v2718_v41 = vpop.f32.mrb[59].mxu1 }
 0x3de   : > { %v2942_v44 = vadd.f32 %v4106_v59, %v5888_v31  ;;  %3753 = vmatprep.mubr.f32.mxu0 %v2983_v33  ;;  %v5899_v33 = vld [vmem:[#allocation27_spill] sm:$0xff] }
 0x3df   : > { %v2721_v4 = vpop.f32.mrb[60].mxu1  ;;  %v528_v59 = vadd.f32 %v5899_v33, %v5602_v39 }
 0x3e0   : > { %v2984_v0 = vmax.f32 %v2942_v44, 0.0  ;;  %v4108_v12 = vadd.f32 %v2721_v4, %v2047_v60  ;;  %v2723_v35 = vpop.f32.mrb[61].mxu1  ;;  %v5900_v60 = vld [vmem:[#allocation26_spill] sm:$0xff] }
 0x3e1   : > { %v522_v31 = vadd.f32 %v5900_v60, %v5602_v39 }
 0x3e2   : > { %v2947_v25 = vadd.f32 %v4108_v12, %v5890_v9  ;;  %3754 = vmatmul.mubr.f32.gmra.mrb[188].mxu0 %v2984_v0 }
 0x3e3   : > { %v2726_v2 = vpop.f32.mrb[62].mxu1 }
 0x3e4   : > { %v2985_v1 = vmax.f32 %v2947_v25, 0.0  ;;  %v4110_v13 = vadd.f32 %v2726_v2, %v2052_v14  ;;  %v2728_v38 = vpop.f32.mrb[63].mxu1  ;;  %v5901_v14 = vld [vmem:[#allocation29_spill] sm:$0xff] }
 0x3e5   : > { %v540_v9 = vadd.f32 %v5901_v14, %v5602_v39 }
 0x3e6   : > { %v2952_v56 = vadd.f32 %v4110_v13, %v5891_v46  ;;  %3756 = vmatprep.mubr.f32.mxu0 %v2985_v1  ;;  %v5902_v1 = vld [vmem:[#allocation28_spill] sm:$0xff] }
 0x3e7   : > { %v534_v13 = vadd.f32 %v5902_v1, %v5602_v39 }
 0x3e8   : > { %v2986_v20 = vmax.f32 %v2952_v56, 0.0 }
 0x3ea   : > { %3757 = vmatmul.mubr.f32.gmra.mrb[190].mxu0 %v2986_v20 }
 0x445   : > { %v3713_v16 = vpop.f32.mrb[160].mxu0 }
 0x446   : > { %v3082_v3 = vadd.f32 %v3713_v16, %v5607_v53  ;;  %v3076_v36 = vpop.f32.mrb[161].mxu0  ;;  %v552_v16 = vadd.f32 %v5903_v58, %v5602_v39 }
 0x447   : > { %v3077_v47 = vadd.f32 %v5607_v53, %v3076_v36 }
 0x448   : > { %v3268_v18 = vadd.f32 %v3082_v3, %v492_v34  ;;  %v5904_v3 = vld [vmem:[#allocation30_spill] sm:$0xff] }
 0x449   : > { %v3267_v61 = vadd.f32 %v3077_v47, %v486_v11  ;;  %v546_v36 = vadd.f32 %v5904_v3, %v5602_v39 }
 0x44a   : > { %v3300_v37 = vmax.f32 %v3268_v18, 0.0 }
 0x44b   : > { %v3299_v15 = vmax.f32 %v3267_v61, 0.0 }
 0x44c   : > { %3332 = vst [vmem:[%s5617_s16 + $0x8] sm:$0xff] %v3300_v37 }
 0x44d   : > { %3331 = vst [vmem:[%s5617_s16] sm:$0xff] %v3299_v15  ;;  %v3716_v49 = vpop.f32.mrb[162].mxu0  ;;  %v5905_v15 = vld [vmem:[#allocation33_spill] sm:$0xff] }
 0x44e   : > { %v3092_v22 = vadd.f32 %v3716_v49, %v5607_v53  ;;  %v3086_v27 = vpop.f32.mrb[163].mxu0  ;;  %v564_v49 = vadd.f32 %v5905_v15, %v5602_v39 }
 0x44f   : > { %v3087_v24 = vadd.f32 %v5607_v53, %v3086_v27 }
 0x450   : > { %v3270_v7 = vadd.f32 %v3092_v22, %v504_v52  ;;  %v5906_v22 = vld [vmem:[#allocation32_spill] sm:$0xff] }
 0x451   : > { %v3269_v50 = vadd.f32 %v3087_v24, %v498_v26  ;;  %v558_v27 = vadd.f32 %v5906_v22, %v5602_v39 }
 0x452   : > { %v3302_v43 = vmax.f32 %v3270_v7, 0.0 }
 0x453   : > { %v3301_v42 = vmax.f32 %v3269_v50, 0.0 }
 0x454   : > { %3334 = vst [vmem:[%s5617_s16 + $0x18] sm:$0xff] %v3302_v43 }
 0x455   : > { %3333 = vst [vmem:[%s5617_s16 + $0x10] sm:$0xff] %v3301_v42  ;;  %v3719_v8 = vpop.f32.mrb[164].mxu0  ;;  %v5907_v42 = vld [vmem:[#allocation35_spill] sm:$0xff] }
 0x456   : > { %v3102_v32 = vadd.f32 %v3719_v8, %v5607_v53  ;;  %v3096_v45 = vpop.f32.mrb[165].mxu0  ;;  %v576_v8 = vadd.f32 %v5907_v42, %v5602_v39 }
 0x457   : > { %v3097_v19 = vadd.f32 %v5607_v53, %v3096_v45 }
 0x458   : > { %v3272_v10 = vadd.f32 %v3102_v32, %v516_v55  ;;  %v5908_v32 = vld [vmem:[#allocation34_spill] sm:$0xff] }
 0x459   : > { %v3271_v63 = vadd.f32 %v3097_v19, %v510_v30  ;;  %v570_v45 = vadd.f32 %v5908_v32, %v5602_v39 }
 0x45a   : > { %v3304_v29 = vmax.f32 %v3272_v10, 0.0 }
 0x45b   : > { %v3303_v21 = vmax.f32 %v3271_v63, 0.0 }
 0x45c   : > { %3336 = vst [vmem:[%s5617_s16 + $0x28] sm:$0xff] %v3304_v29 }
 0x45d   : > { %3335 = vst [vmem:[%s5617_s16 + $0x20] sm:$0xff] %v3303_v21  ;;  %v3722_v23 = vpop.f32.mrb[166].mxu0  ;;  %v5909_v21 = vld [vmem:[#allocation37_spill] sm:$0xff] }
 0x45e   : > { %v3112_v41 = vadd.f32 %v3722_v23, %v5607_v53  ;;  %v3106_v5 = vpop.f32.mrb[167].mxu0  ;;  %v588_v23 = vadd.f32 %v5909_v21, %v5602_v39 }
 0x45f   : > { %v3107_v44 = vadd.f32 %v5607_v53, %v3106_v5 }
 0x460   : > { %v3274_v4 = vadd.f32 %v3112_v41, %v528_v59  ;;  %v5910_v41 = vld [vmem:[#allocation36_spill] sm:$0xff] }
 0x461   : > { %v3273_v0 = vadd.f32 %v3107_v44, %v522_v31  ;;  %v582_v5 = vadd.f32 %v5910_v41, %v5602_v39 }
 0x462   : > { %v3306_v12 = vmax.f32 %v3274_v4, 0.0 }
 0x463   : > { %v3305_v35 = vmax.f32 %v3273_v0, 0.0 }
 0x464   : > { %3338 = vst [vmem:[%s5617_s16 + $0x38] sm:$0xff] %v3306_v12 }
 0x465   : > { %3337 = vst [vmem:[%s5617_s16 + $0x30] sm:$0xff] %v3305_v35  ;;  %v3725_v6 = vpop.f32.mrb[168].mxu0  ;;  %v5911_v35 = vld [vmem:[#allocation39_spill] sm:$0xff] }
 0x466   : > { %v3122_v25 = vadd.f32 %v3725_v6, %v5607_v53  ;;  %v3116_v2 = vpop.f32.mrb[169].mxu0  ;;  %v600_v6 = vadd.f32 %v5911_v35, %v5602_v39 }
 0x467   : > { %v3117_v38 = vadd.f32 %v5607_v53, %v3116_v2 }
 0x468   : > { %v3276_v46 = vadd.f32 %v3122_v25, %v540_v9  ;;  %v5912_v25 = vld [vmem:[#allocation38_spill] sm:$0xff] }
 0x469   : > { %v3275_v56 = vadd.f32 %v3117_v38, %v534_v13  ;;  %v594_v2 = vadd.f32 %v5912_v25, %v5602_v39 }
 0x46a   : > { %v3308_v20 = vmax.f32 %v3276_v46, 0.0 }
 0x46b   : > { %v3307_v57 = vmax.f32 %v3275_v56, 0.0 }
 0x46c   : > { %3340 = vst [vmem:[%s5617_s16 + $0x48] sm:$0xff] %v3308_v20 }
 0x46d   : > { %3339 = vst [vmem:[%s5617_s16 + $0x40] sm:$0xff] %v3307_v57  ;;  %v3728_v17 = vpop.f32.mrb[170].mxu0  ;;  %v5913_v57 = vld [vmem:[#allocation41_spill] sm:$0xff] }
 0x46e   : > { %v3132_v62 = vadd.f32 %v3728_v17, %v5607_v53  ;;  %v3126_v34 = vpop.f32.mrb[171].mxu0  ;;  %v612_v17 = vadd.f32 %v5913_v57, %v5602_v39 }
 0x46f   : > { %v3127_v40 = vadd.f32 %v5607_v53, %v3126_v34 }
 0x470   : > { %v3278_v11 = vadd.f32 %v3132_v62, %v552_v16  ;;  %v5914_v62 = vld [vmem:[#allocation40_spill] sm:$0xff] }
 0x471   : > { %v3277_v47 = vadd.f32 %v3127_v40, %v546_v36  ;;  %v606_v34 = vadd.f32 %v5914_v62, %v5602_v39 }
 0x472   : > { %v3310_v18 = vmax.f32 %v3278_v11, 0.0 }
 0x473   : > { %v3309_v61 = vmax.f32 %v3277_v47, 0.0 }
 0x474   : > { %3342 = vst [vmem:[%s5617_s16 + $0x58] sm:$0xff] %v3310_v18 }
 0x475   : > { %3341 = vst [vmem:[%s5617_s16 + $0x50] sm:$0xff] %v3309_v61  ;;  %v3731_v37 = vpop.f32.mrb[172].mxu0  ;;  %v5915_v61 = vld [vmem:[#allocation43_spill] sm:$0xff] }
 0x476   : > { %v3142_v54 = vadd.f32 %v3731_v37, %v5607_v53  ;;  %v3136_v52 = vpop.f32.mrb[173].mxu0  ;;  %v624_v37 = vadd.f32 %v5915_v61, %v5602_v39 }
 0x477   : > { %v3137_v51 = vadd.f32 %v5607_v53, %v3136_v52 }
 0x478   : > { %v3280_v26 = vadd.f32 %v3142_v54, %v564_v49  ;;  %v5916_v54 = vld [vmem:[#allocation42_spill] sm:$0xff] }
 0x479   : > { %v3279_v24 = vadd.f32 %v3137_v51, %v558_v27  ;;  %v618_v52 = vadd.f32 %v5916_v54, %v5602_v39 }
 0x47a   : > { %v3312_v7 = vmax.f32 %v3280_v26, 0.0 }
 0x47b   : > { %v3311_v50 = vmax.f32 %v3279_v24, 0.0 }
 0x47c   : > { %3344 = vst [vmem:[%s5617_s16 + $0x68] sm:$0xff] %v3312_v7 }
 0x47d   : > { %3343 = vst [vmem:[%s5617_s16 + $0x60] sm:$0xff] %v3311_v50  ;;  %v3734_v43 = vpop.f32.mrb[174].mxu0  ;;  %v5917_v50 = vld [vmem:[#allocation45_spill] sm:$0xff] }
 0x47e   : > { %v3152_v48 = vadd.f32 %v3734_v43, %v5607_v53  ;;  %v3146_v55 = vpop.f32.mrb[175].mxu0  ;;  %v636_v43 = vadd.f32 %v5917_v50, %v5602_v39 }
 0x47f   : > { %v3147_v28 = vadd.f32 %v5607_v53, %v3146_v55 }
 0x480   : > { %v3282_v30 = vadd.f32 %v3152_v48, %v576_v8  ;;  %v5918_v48 = vld [vmem:[#allocation44_spill] sm:$0xff] }
 0x481   : > { %v3281_v19 = vadd.f32 %v3147_v28, %v570_v45  ;;  %v630_v55 = vadd.f32 %v5918_v48, %v5602_v39 }
 0x482   : > { %v3314_v10 = vmax.f32 %v3282_v30, 0.0 }
 0x483   : > { %v3313_v63 = vmax.f32 %v3281_v19, 0.0 }
 0x484   : > { %3346 = vst [vmem:[%s5617_s16 + $0x78] sm:$0xff] %v3314_v10 }
 0x485   : > { %3345 = vst [vmem:[%s5617_s16 + $0x70] sm:$0xff] %v3313_v63  ;;  %v3737_v29 = vpop.f32.mrb[176].mxu0  ;;  %v5919_v63 = vld [vmem:[#allocation47_spill] sm:$0xff] }
 0x486   : > { %v3162_v33 = vadd.f32 %v3737_v29, %v5607_v53  ;;  %v3156_v59 = vpop.f32.mrb[177].mxu0  ;;  %v648_v29 = vadd.f32 %v5919_v63, %v5602_v39 }
 0x487   : > { %v3157_v60 = vadd.f32 %v5607_v53, %v3156_v59 }
 0x488   : > { %v3284_v31 = vadd.f32 %v3162_v33, %v588_v23  ;;  %v5920_v33 = vld [vmem:[#allocation46_spill] sm:$0xff] }
 0x489   : > { %v3283_v44 = vadd.f32 %v3157_v60, %v582_v5  ;;  %v642_v59 = vadd.f32 %v5920_v33, %v5602_v39 }
 0x48a   : > { %v3316_v4 = vmax.f32 %v3284_v31, 0.0 }
 0x48b   : > { %v3315_v0 = vmax.f32 %v3283_v44, 0.0 }
 0x48c   : > { %3348 = vst [vmem:[%s5617_s16 + $0x88] sm:$0xff] %v3316_v4 }
 0x48d   : > { %3347 = vst [vmem:[%s5617_s16 + $0x80] sm:$0xff] %v3315_v0  ;;  %v3740_v12 = vpop.f32.mrb[178].mxu0  ;;  %v5921_v0 = vld [vmem:[#allocation49_spill] sm:$0xff] }
 0x48e   : > { %v3172_v14 = vadd.f32 %v3740_v12, %v5607_v53  ;;  %v3166_v9 = vpop.f32.mrb[179].mxu0  ;;  %v660_v12 = vadd.f32 %v5921_v0, %v5602_v39 }
 0x48f   : > { %v3167_v1 = vadd.f32 %v5607_v53, %v3166_v9 }
 0x490   : > { %v3286_v13 = vadd.f32 %v3172_v14, %v600_v6  ;;  %v5922_v14 = vld [vmem:[#allocation48_spill] sm:$0xff] }
 0x491   : > { %v3285_v38 = vadd.f32 %v3167_v1, %v594_v2  ;;  %v654_v9 = vadd.f32 %v5922_v14, %v5602_v39 }
 0x492   : > { %v3318_v46 = vmax.f32 %v3286_v13, 0.0 }
 0x493   : > { %v3317_v56 = vmax.f32 %v3285_v38, 0.0 }
 0x494   : > { %3350 = vst [vmem:[%s5617_s16 + $0x98] sm:$0xff] %v3318_v46 }
 0x495   : > { %3349 = vst [vmem:[%s5617_s16 + $0x90] sm:$0xff] %v3317_v56  ;;  %v3743_v20 = vpop.f32.mrb[180].mxu0  ;;  %v5923_v56 = vld [vmem:[#allocation51_spill] sm:$0xff] }
 0x496   : > { %v3182_v58 = vadd.f32 %v3743_v20, %v5607_v53  ;;  %v3176_v16 = vpop.f32.mrb[181].mxu0  ;;  %v672_v20 = vadd.f32 %v5923_v56, %v5602_v39 }
 0x497   : > { %v3177_v3 = vadd.f32 %v5607_v53, %v3176_v16 }
 0x498   : > { %v3288_v36 = vadd.f32 %v3182_v58, %v612_v17  ;;  %v5924_v58 = vld [vmem:[#allocation50_spill] sm:$0xff] }
 0x499   : > { %v3287_v40 = vadd.f32 %v3177_v3, %v606_v34  ;;  %v666_v16 = vadd.f32 %v5924_v58, %v5602_v39 }
 0x49a   : > { %v3320_v11 = vmax.f32 %v3288_v36, 0.0 }
 0x49b   : > { %v3319_v47 = vmax.f32 %v3287_v40, 0.0 }
 0x49c   : > { %3352 = vst [vmem:[%s5617_s16 + $0xa8] sm:$0xff] %v3320_v11 }
 0x49d   : > { %3351 = vst [vmem:[%s5617_s16 + $0xa0] sm:$0xff] %v3319_v47  ;;  %v3746_v18 = vpop.f32.mrb[182].mxu0 }
 0x49e   : > { %v3192_v15 = vadd.f32 %v3746_v18, %v5607_v53  ;;  %v3186_v49 = vpop.f32.mrb[183].mxu0 }
 0x49f   : > { %v3187_v22 = vadd.f32 %v5607_v53, %v3186_v49 }
 0x4a0   : > { %v3290_v27 = vadd.f32 %v3192_v15, %v624_v37 }
 0x4a1   : > { %v3289_v51 = vadd.f32 %v3187_v22, %v618_v52 }
 0x4a2   : > { %v3322_v26 = vmax.f32 %v3290_v27, 0.0 }
 0x4a3   : > { %v3321_v24 = vmax.f32 %v3289_v51, 0.0 }
 0x4a4   : > { %3354 = vst [vmem:[%s5617_s16 + $0xb8] sm:$0xff] %v3322_v26 }
 0x4a5   : > { %3353 = vst [vmem:[%s5617_s16 + $0xb0] sm:$0xff] %v3321_v24  ;;  %v3749_v7 = vpop.f32.mrb[184].mxu0 }
 0x4a6   : > { %v3202_v42 = vadd.f32 %v3749_v7, %v5607_v53  ;;  %v3196_v8 = vpop.f32.mrb[185].mxu0 }
 0x4a7   : > { %v3197_v32 = vadd.f32 %v5607_v53, %v3196_v8 }
 0x4a8   : > { %v3292_v45 = vadd.f32 %v3202_v42, %v636_v43 }
 0x4a9   : > { %v3291_v28 = vadd.f32 %v3197_v32, %v630_v55 }
 0x4aa   : > { %v3324_v30 = vmax.f32 %v3292_v45, 0.0 }
 0x4ab   : > { %v3323_v19 = vmax.f32 %v3291_v28, 0.0 }
 0x4ac   : > { %3356 = vst [vmem:[%s5617_s16 + $0xc8] sm:$0xff] %v3324_v30 }
 0x4ad   : > { %3355 = vst [vmem:[%s5617_s16 + $0xc0] sm:$0xff] %v3323_v19  ;;  %v3752_v10 = vpop.f32.mrb[186].mxu0 }
 0x4ae   : > { %v3212_v21 = vadd.f32 %v3752_v10, %v5607_v53  ;;  %v3206_v23 = vpop.f32.mrb[187].mxu0 }
 0x4af   : > { %v3207_v41 = vadd.f32 %v5607_v53, %v3206_v23 }
 0x4b0   : > { %v3294_v5 = vadd.f32 %v3212_v21, %v648_v29 }
 0x4b1   : > { %v3293_v60 = vadd.f32 %v3207_v41, %v642_v59 }
 0x4b2   : > { %v3326_v31 = vmax.f32 %v3294_v5, 0.0 }
 0x4b3   : > { %v3325_v44 = vmax.f32 %v3293_v60, 0.0 }
 0x4b4   : > { %3358 = vst [vmem:[%s5617_s16 + $0xd8] sm:$0xff] %v3326_v31 }
 0x4b5   : > { %3357 = vst [vmem:[%s5617_s16 + $0xd0] sm:$0xff] %v3325_v44  ;;  %v3755_v4 = vpop.f32.mrb[188].mxu0 }
 0x4b6   : > { %v3222_v35 = vadd.f32 %v3755_v4, %v5607_v53  ;;  %v3216_v6 = vpop.f32.mrb[189].mxu0 }
 0x4b7   : > { %v3217_v25 = vadd.f32 %v5607_v53, %v3216_v6 }
 0x4b8   : > { %v3296_v2 = vadd.f32 %v3222_v35, %v660_v12 }
 0x4b9   : > { %v3295_v1 = vadd.f32 %v3217_v25, %v654_v9 }
 0x4ba   : > { %v3328_v13 = vmax.f32 %v3296_v2, 0.0 }
 0x4bb   : > { %v3327_v38 = vmax.f32 %v3295_v1, 0.0 }
 0x4bc   : > { %3360 = vst [vmem:[%s5617_s16 + $0xe8] sm:$0xff] %v3328_v13 }
 0x4bd   : > { %3359 = vst [vmem:[%s5617_s16 + $0xe0] sm:$0xff] %v3327_v38  ;;  %v3758_v46 = vpop.f32.mrb[190].mxu0 }
 0x4be   : > { %v3232_v57 = vadd.f32 %v3758_v46, %v5607_v53  ;;  %v3226_v17 = vpop.f32.mrb[191].mxu0 }
 0x4bf   : > { %v3227_v62 = vadd.f32 %v5607_v53, %v3226_v17 }
 0x4c0   : > { %v3298_v34 = vadd.f32 %v3232_v57, %v672_v20 }
 0x4c1   : > { %v3297_v3 = vadd.f32 %v3227_v62, %v666_v16 }
 0x4c2   : > { %v3330_v36 = vmax.f32 %v3298_v34, 0.0 }
 0x4c3   : > { %v3329_v40 = vmax.f32 %v3297_v3, 0.0 }
 0x4c4   : > { %3362 = vst [vmem:[%s5617_s16 + $0xf8] sm:$0xff] %v3330_v36 }
 0x4c5   : > { %3361 = vst [vmem:[%s5617_s16 + $0xf0] sm:$0xff] %v3329_v40 }
 0x4c6   : > { %4453 = shalt.err (!%p4450_p4)
}
 0x4c7   : > { %s4454_s10 = scalar_lea.hbm %s5744_s22, 4096  ;;  %s4458_s8 = scalar_lea.hbm %s5799_s7, 8192 }
 0x4c8   : > { %p4455_p9 = scmp.ne.s32.totalorder %s5744_s22, %s4454_s10  ;;  %p4459_p8 = scmp.lt.u32.totalorder %s5744_s22, %s5799_s7 }
 0x4c9   : > { %p4460_p13 = scmp.lt.u32.totalorder %s4458_s8, %s4454_s10  ;;  %p4462_p10 = scmp.lt.u32.totalorder %s4454_s10, %s5744_s22 }
 0x4ca   : > { %p4456_p0 = pnand %p4455_p9, %p4717_p5 }
 0x4cb   : > { %p4461_p6 = por %p4460_p13, %p4459_p8 }
 0x4cc   : > { %p4457_p11 = pneg %p4456_p0 }
 0x4cd   : > { %p4463_p3 = por %p4462_p10, %p4461_p6 }
 0x4cf   : > { %p4464_p7 = pnand %p4463_p3, %p4457_p11 }
 0x4d1   : > { %4467 = shalt.err (!%p4464_p7)
}
 0x4d2   : > { %s4527_s11 = smov 128   ;;  %s4528_s19 = smov 8  }
 0x4d3   : > { %4253 = dma.vmem_to_hbm [thread:$0]  (%p4717_p5), %s5746_s12, 4096, %s5744_s22, %s3364_s1, %s4527_s11, %s4527_s11, %s4528_s19  }
 0x4d4 PF: > { %s5925_s21 = sld [smem:[#allocation18_spill]]  ;;  %s3392_s30 = sand.u32 1, %s4502_s24  }
 0x4d5   : > { %p5927_p2 = scmp.ge.s32.totalorder %s4514_s27, 2  ;;  %s3393_s28 = scalar_lea.sflag [#allocation7], %s3392_s30 }
 0x4da   : > { %p5926_p12 = scmp.ne.s32.totalorder %s5925_s21, 0 }
 0x4dc   : > { %p4270_p1 = pnand %p5927_p2, %p5926_p12 }
 0x4de   : > { %4497 = dma.done.wait (!%p4270_p1), %s3393_s28, 4096  }
 0x4df   : > { %4499 = vsyncadd (!%p4270_p1), %s3393_s28, 4294963200  ;;  %p22_p4 = scmp.ge.s32.totalorder %s4682_s18, 4   ;;  %s5928_s24 = smov %s4506_s25 }
 0x4e0   : > { %s5929_s25 = smov %s4510_s26  ;;  %s5930_s26 = smov %s4713_s13 }
 0x4e1   : > { %s5931_s27 = smov %s4682_s18  ;;  %24 = sbr.rel (!%p22_p4) target bundleno = 9 (0x9), region = 108 }
 0x4e8   :  { %3398 = vsyncpa [#allocation6], 1 }
 0x4e9   :  { %3400 = vsyncpa [#allocation6 + $0x1], 1 }
 0x4ea   :  { %3401 = vsyncpa [#allocation9], 1 }
 0x4eb   :  { %3402 = vsyncpa [#allocation12], 1 }
 0x4ec   :  { %3403 = vsyncpa [#allocation7], 1 }
 0x4ed   :  { %3405 = vsyncpa [#allocation7 + $0x1], 1 }

</bundles_post_ra>
